<compile_context>
chip_gen: v5e
topology: v5e:2x2
jax: 0.10.0
libtpu: 0.0.40
codegen_flags: <defaults>
</compile_context>

<pallas_src>
import numpy as np
import jax
import jax.numpy as jnp
from jax.experimental import pallas as pl
from jax.experimental.pallas import tpu as pltpu

NZ = 100
NGF = 64
NC = 1
BN_EPS = 1e-5
LRELU_SLOPE = 0.2
NZ_PAD = 128          # latent channel dim padded to a full lane tile
OUT_LANES = 128       # lane-dense output slab for the Cout=1 head
BN_COLS = NGF * 8     # widest BN channel count; packed BN slab lane width (512)


# ---------------------------------------------------------------------------
# Fused Pallas kernel: the entire generator forward on one grid step.
# ---------------------------------------------------------------------------
def _generator_kernel(x_ref, bn_ref,
                      w1_ref, s1_ref,
                      w2_ref,
                      w3_ref, s3_ref,
                      w4_ref, s4_ref,
                      w5_ref, o_ref):
    f32 = jnp.float32

    def lrelu(v):
        return jnp.where(v >= 0, v, LRELU_SLOPE * v)

    def lrelu_bn(v, row):
        # LeakyReLU(0.2) then eval-mode BatchNorm as per-channel affine.  The
        # scale/bias rows live in one packed (8, 512) slab; static slices only.
        c = v.shape[1]
        s = bn_ref[row:row + 1, 0:c]
        b = bn_ref[row + 1:row + 2, 0:c]
        return lrelu(v) * s + b

    def conv_transpose(a, w_ref, s_ref):
        # Tap-batched ConvTranspose2d: one (M_in, Cin) @ (Cin, T*Cout) matmul on
        # the MXU, then each tap's column block is scattered/accumulated onto the
        # flattened output rows by a tiny constant 0/1-matrix matmul (the conv
        # geometry is static, so the scatter matrices are plain inputs).
        n_taps = s_ref.shape[0]
        cout = w_ref.shape[1] // n_taps
        y = jnp.dot(a, w_ref[...], preferred_element_type=f32)
        h = None
        for t in range(n_taps):
            ht = jnp.dot(s_ref[t], y[:, t * cout:(t + 1) * cout],
                         preferred_element_type=f32)
            h = ht if h is None else h + ht
        return h

    x = x_ref[...]                                                   # (M0, 128)

    # Block 1: ConvT(nz->512, k=2, s=(1,2), p=0) -> LReLU -> BN -> Dropout(id)
    a = lrelu_bn(conv_transpose(x, w1_ref, s1_ref), 0)
    # Block 2: ConvT(512->256, k=1, s=(1,1), p=0) -> LReLU -> BN -> Dropout(id)
    a = lrelu_bn(jnp.dot(a, w2_ref[...], preferred_element_type=f32), 2)
    # Block 3: ConvT(256->128, k=2, s=(1,3), p=1) -> LReLU -> BN -> Dropout(id)
    a = lrelu_bn(conv_transpose(a, w3_ref, s3_ref), 4)
    # Block 4: ConvT(128->64, k=1, s=(1,2), p=0) -> LReLU -> BN -> Dropout(id)
    a = lrelu_bn(conv_transpose(a, w4_ref, s4_ref), 6)
    # Block 5: weight_norm ConvT(64->1, k=1) -> LReLU -> Tanh.  w5 is zero-padded
    # to 128 output columns so this store is a lane-dense full-tile write.
    y5 = jnp.dot(a, w5_ref[...], preferred_element_type=f32)        # (M_out, 128)
    o_ref[...] = jnp.tanh(lrelu(y5))


def _zero_map(ndim):
    return lambda i, _nd=ndim: (0,) * _nd


def _fused_generator(x_slab, prep):
    args = (x_slab, prep["bn"],
            prep["w1"], prep["s1"],
            prep["w2"],
            prep["w3"], prep["s3"],
            prep["w4"], prep["s4"],
            prep["w5"])
    m_out = prep["s4"].shape[1]
    return pl.pallas_call(
        _generator_kernel,
        grid=(1,),
        in_specs=[pl.BlockSpec(a.shape, _zero_map(a.ndim)) for a in args],
        out_specs=pl.BlockSpec((m_out, OUT_LANES), _zero_map(2)),
        out_shape=jax.ShapeDtypeStruct((m_out, OUT_LANES), jnp.float32),
        compiler_params=pltpu.CompilerParams(
            dimension_semantics=("arbitrary",)),  # tiny: keep on one TensorCore
    )(*args)


@jax.jit
def generator_forward(x_nchw, prep):
    n, c, h, w = x_nchw.shape
    # NCHW latent -> channels-last (N*H*W, C) slab, zero-padded to 128 channels
    # (one tiny XLA fusion; keeps the kernel's first matmul K dim lane-aligned).
    x = jnp.transpose(x_nchw.astype(jnp.float32), (0, 2, 3, 1)).reshape(n * h * w, c)
    x = jnp.pad(x, ((0, 0), (0, prep["w1"].shape[0] - c)))
    out = _fused_generator(x, prep)                    # (N*Hout*Wout, 128)
    # Final spatial H == 1 for this architecture; column 0 holds the nc=1 image.
    w_out = prep["s4"].shape[1] // n
    return out[:, 0].reshape(n, NC, 1, w_out)


# ---------------------------------------------------------------------------
# Parameters: deterministic DCGAN-style init + one-time kernel-ready packing.
# ---------------------------------------------------------------------------
def init_params(key):
    k1, k2, k3, k4, k5 = jax.random.split(key, 5)
    params = {
        "w1": 0.02 * jax.random.normal(k1, (NZ, NGF * 8, 2, 2), jnp.float32),
        "w2": 0.02 * jax.random.normal(k2, (NGF * 8, NGF * 4, 1, 1), jnp.float32),
        "w3": 0.02 * jax.random.normal(k3, (NGF * 4, NGF * 2, 2, 2), jnp.float32),
        "w4": 0.02 * jax.random.normal(k4, (NGF * 2, NGF, 1, 1), jnp.float32),
        "v5": 0.02 * jax.random.normal(k5, (NGF, NC, 1, 1), jnp.float32),
    }
    # weight_norm(dim=0): g initialized to ||v|| over dims (1, 2, 3).
    params["g5"] = jnp.sqrt(jnp.sum(params["v5"] ** 2, axis=(1, 2, 3), keepdims=True))
    return params


def _scatter_mats(batch, h_in, w_in, k, stride, padding):
    """Per-tap 0/1 matrices mapping (n,h,w)-flattened ConvTranspose2d input rows
    onto its (n,h,w)-flattened output rows (oh = hi*sh + kh - ph, etc.)."""
    sh, sw = stride
    ph, pw = padding
    h_out = (h_in - 1) * sh - 2 * ph + k
    w_out = (w_in - 1) * sw - 2 * pw + k
    mats = []
    for kh in range(k):
        for kw in range(k):
            s = np.zeros((batch * h_out * w_out, batch * h_in * w_in), np.float32)
            for n in range(batch):
                for hi in range(h_in):
                    oh = hi * sh + kh - ph
                    if not 0 <= oh < h_out:
                        continue
                    for wi in range(w_in):
                        ow = wi * sw + kw - pw
                        if not 0 <= ow < w_out:
                            continue
                        s[(n * h_out + oh) * w_out + ow,
                          (n * h_in + hi) * w_in + wi] = 1.0
            mats.append(s)
    return jnp.asarray(np.stack(mats)), (h_out, w_out)


def prepare_params(params, batch, h0, w0):
    """One-time, out-of-hot-path prep: pad + tap-concatenate conv weights, build
    the static scatter matrices, resolve weight_norm, and pack the eval-mode
    BatchNorm per-channel scale/bias rows into one aligned (8, 512) slab.  The
    scatter matrices depend on the batch/spatial geometry, so re-run this if
    those change."""
    s1, (h1, w1s) = _scatter_mats(batch, h0, w0, 2, (1, 2), (0, 0))
    s3, (h3, w3s) = _scatter_mats(batch, h1, w1s, 2, (1, 3), (1, 1))
    s4, _ = _scatter_mats(batch, h3, w3s, 1, (1, 2), (0, 0))

    def taps_cat(w, cin_pad=None):
        cin, _, kh_n, kw_n = w.shape
        if cin_pad is not None and cin_pad > cin:
            w = jnp.pad(w, ((0, cin_pad - cin), (0, 0), (0, 0), (0, 0)))
        return jnp.concatenate(
            [w[:, :, kh, kw] for kh in range(kh_n) for kw in range(kw_n)], axis=1)

    def bn_affine(c):
        gamma = np.ones((c,), np.float32)
        beta = np.zeros((c,), np.float32)
        mean = np.zeros((c,), np.float32)
        var = np.ones((c,), np.float32)
        scale = gamma / np.sqrt(var + BN_EPS)
        return scale, beta - mean * scale

    # Packed BN slab: rows [bn1_s, bn1_b, bn2_s, bn2_b, bn3_s, bn3_b, bn4_s, bn4_b],
    # each zero-padded to 512 lanes -> one (8, 512) fully tile-aligned operand.
    rows = []
    for c in (NGF * 8, NGF * 4, NGF * 2, NGF):
        s, b = bn_affine(c)
        rows.append(np.pad(s, (0, BN_COLS - c)))
        rows.append(np.pad(b, (0, BN_COLS - c)))
    bn = jnp.asarray(np.stack(rows))                     # (8, 512)

    # weight_norm resolution (done once here, not per forward pass).
    v = params["v5"]
    norm = jnp.sqrt(jnp.sum(v * v, axis=(1, 2, 3), keepdims=True))
    w5 = (params["g5"] * v / norm).reshape(NGF, NC)
    w5 = jnp.pad(w5, ((0, 0), (0, OUT_LANES - NC)))      # lane-dense head

    return {
        "w1": taps_cat(params["w1"], cin_pad=NZ_PAD), "s1": s1,
        "w2": params["w2"][:, :, 0, 0],
        "w3": taps_cat(params["w3"]), "s3": s3,
        "w4": params["w4"][:, :, 0, 0], "s4": s4,
        "w5": w5,
        "bn": bn,
    }


# ---------------------------------------------------------------------------
# Pure-JAX reference (lax.conv_general_dilated) for correctness checking.
# ---------------------------------------------------------------------------
def _ref_conv_transpose(x, w, stride, padding):
    """PyTorch ConvTranspose2d(bias=False) semantics."""
    _, _, kh, kw = w.shape
    sh, sw = stride
    ph, pw = padding
    w_t = jnp.flip(jnp.transpose(w, (1, 0, 2, 3)), axis=(2, 3))
    return jax.lax.conv_general_dilated(
        x, w_t, window_strides=(1, 1),
        padding=[(kh - 1 - ph, kh - 1 - ph), (kw - 1 - pw, kw - 1 - pw)],
        lhs_dilation=(sh, sw), rhs_dilation=(1, 1),
        dimension_numbers=("NCHW", "OIHW", "NCHW"),
        precision=jax.lax.Precision.HIGHEST)


@jax.jit
def _ref_forward(x, params):
    def lrelu(v):
        return jnp.where(v >= 0, v, LRELU_SLOPE * v)

    def bn(v):
        return v / jnp.sqrt(1.0 + BN_EPS)   # fresh-init eval-mode BatchNorm

    h = bn(lrelu(_ref_conv_transpose(x, params["w1"], (1, 2), (0, 0))))
    h = bn(lrelu(_ref_conv_transpose(h, params["w2"], (1, 1), (0, 0))))
    h = bn(lrelu(_ref_conv_transpose(h, params["w3"], (1, 3), (1, 1))))
    h = bn(lrelu(_ref_conv_transpose(h, params["w4"], (1, 2), (0, 0))))
    v = params["v5"]
    norm = jnp.sqrt(jnp.sum(v * v, axis=(1, 2, 3), keepdims=True))
    w5 = params["g5"] * v / norm
    return jnp.tanh(lrelu(_ref_conv_transpose(h, w5, (1, 1), (0, 0))))


if __name__ == "__main__":
    key = jax.random.PRNGKey(0)
    k_params, k_input = jax.random.split(key)

    params = init_params(k_params)

    # Small latent consistent with the module: (batch=2, nz=100, H=1, W=4).
    batch, h0, w0 = 2, 1, 4
    prep = prepare_params(params, batch, h0, w0)   # one-time, outside hot path
    x = jax.random.normal(k_input, (batch, NZ, h0, w0), jnp.float32)

    out = jax.block_until_ready(generator_forward(x, prep))

    # Expected: (2, 1, 1, 41), finite, tanh range.
    assert out.shape == (batch, NC, 1, 41), out.shape
    assert out.dtype == jnp.float32
    assert bool(jnp.all(jnp.isfinite(out)))

    # Correctness vs the pure-JAX conv-transpose reference of the module.
    ref = jax.block_until_ready(_ref_forward(x, params))
    np.testing.assert_allclose(np.asarray(out), np.asarray(ref),
                               rtol=5e-2, atol=1e-5)

    print("KERNEL_OK")
</pallas_src>

<mosaic_0001>
module attributes {stable_mosaic.version = 11 : i64} {
  func.func @_generator_kernel(%arg0: i32, %arg1: memref<8x128xf32, #tpu.memory_space<vmem>>, %arg2: memref<8x512xf32, #tpu.memory_space<vmem>>, %arg3: memref<128x2048xf32, #tpu.memory_space<vmem>>, %arg4: memref<4x32x8xf32, #tpu.memory_space<vmem>>, %arg5: memref<512x256xf32, #tpu.memory_space<vmem>>, %arg6: memref<256x512xf32, #tpu.memory_space<vmem>>, %arg7: memref<4x42x32xf32, #tpu.memory_space<vmem>>, %arg8: memref<128x64xf32, #tpu.memory_space<vmem>>, %arg9: memref<1x82x42xf32, #tpu.memory_space<vmem>>, %arg10: memref<64x128xf32, #tpu.memory_space<vmem>>, %arg11: memref<82x128xf32, #tpu.memory_space<vmem>>) attributes {dimension_semantics = [#tpu.dimension_semantics<arbitrary>], iteration_bounds = array<i64: 1>, scalar_prefetch = 0 : i64, scratch_operands = 0 : i64, tpu.core_type = #tpu.core_type<tc>, window_params = [{pipeline_mode = #tpu.pipeline_mode<synchronous>, transform_indices = @transform_0, window_bounds = array<i64: 8, 128>}, {pipeline_mode = #tpu.pipeline_mode<synchronous>, transform_indices = @transform_1, window_bounds = array<i64: 8, 512>}, {pipeline_mode = #tpu.pipeline_mode<synchronous>, transform_indices = @transform_2, window_bounds = array<i64: 128, 2048>}, {pipeline_mode = #tpu.pipeline_mode<synchronous>, transform_indices = @transform_3, window_bounds = array<i64: 4, 32, 8>}, {pipeline_mode = #tpu.pipeline_mode<synchronous>, transform_indices = @transform_4, window_bounds = array<i64: 512, 256>}, {pipeline_mode = #tpu.pipeline_mode<synchronous>, transform_indices = @transform_5, window_bounds = array<i64: 256, 512>}, {pipeline_mode = #tpu.pipeline_mode<synchronous>, transform_indices = @transform_6, window_bounds = array<i64: 4, 42, 32>}, {pipeline_mode = #tpu.pipeline_mode<synchronous>, transform_indices = @transform_7, window_bounds = array<i64: 128, 64>}, {pipeline_mode = #tpu.pipeline_mode<synchronous>, transform_indices = @transform_8, window_bounds = array<i64: 1, 82, 42>}, {pipeline_mode = #tpu.pipeline_mode<synchronous>, transform_indices = @transform_9, window_bounds = array<i64: 64, 128>}, {pipeline_mode = #tpu.pipeline_mode<synchronous>, transform_indices = @transform_10, window_bounds = array<i64: 82, 128>}]} {
    %c0 = arith.constant 0 : index
    %c0_0 = arith.constant 0 : index
    %0 = vector.load %arg1[%c0, %c0_0] : memref<8x128xf32, #tpu.memory_space<vmem>>, vector<8x128xf32>
    %c0_1 = arith.constant 0 : index
    %c0_2 = arith.constant 0 : index
    %1 = vector.load %arg3[%c0_1, %c0_2] : memref<128x2048xf32, #tpu.memory_space<vmem>>, vector<128x2048xf32>
    %cst = arith.constant dense<0.000000e+00> : vector<8x2048xf32>
    %2 = tpu.matmul %0, %1, %cst {dimension_numbers = #tpu.dot_dimension_numbers<[1], [0], [0], [1], [0, 0, 1, 1], [], []>} : vector<8x128xf32>, vector<128x2048xf32>, vector<8x2048xf32> -> vector<8x2048xf32>
    %c0_3 = arith.constant 0 : index
    %c0_4 = arith.constant 0 : index
    %c0_5 = arith.constant 0 : index
    %3 = vector.load %arg4[%c0_3, %c0_4, %c0_5] : memref<4x32x8xf32, #tpu.memory_space<vmem>>, vector<1x32x8xf32>
    %4 = vector.shape_cast %3 : vector<1x32x8xf32> to vector<32x8xf32>
    %5 = vector.extract_strided_slice %2 {offsets = [0, 0], sizes = [8, 512], strides = [1, 1]} : vector<8x2048xf32> to vector<8x512xf32>
    %cst_6 = arith.constant dense<0.000000e+00> : vector<32x512xf32>
    %6 = tpu.matmul %4, %5, %cst_6 {dimension_numbers = #tpu.dot_dimension_numbers<[1], [0], [0], [1], [0, 0, 1, 1], [], []>} : vector<32x8xf32>, vector<8x512xf32>, vector<32x512xf32> -> vector<32x512xf32>
    %c1 = arith.constant 1 : index
    %c0_7 = arith.constant 0 : index
    %c0_8 = arith.constant 0 : index
    %7 = vector.load %arg4[%c1, %c0_7, %c0_8] : memref<4x32x8xf32, #tpu.memory_space<vmem>>, vector<1x32x8xf32>
    %8 = vector.shape_cast %7 : vector<1x32x8xf32> to vector<32x8xf32>
    %9 = vector.extract_strided_slice %2 {offsets = [0, 512], sizes = [8, 512], strides = [1, 1]} : vector<8x2048xf32> to vector<8x512xf32>
    %cst_9 = arith.constant dense<0.000000e+00> : vector<32x512xf32>
    %10 = tpu.matmul %8, %9, %cst_9 {dimension_numbers = #tpu.dot_dimension_numbers<[1], [0], [0], [1], [0, 0, 1, 1], [], []>} : vector<32x8xf32>, vector<8x512xf32>, vector<32x512xf32> -> vector<32x512xf32>
    %11 = arith.addf %6, %10 : vector<32x512xf32>
    %c2 = arith.constant 2 : index
    %c0_10 = arith.constant 0 : index
    %c0_11 = arith.constant 0 : index
    %12 = vector.load %arg4[%c2, %c0_10, %c0_11] : memref<4x32x8xf32, #tpu.memory_space<vmem>>, vector<1x32x8xf32>
    %13 = vector.shape_cast %12 : vector<1x32x8xf32> to vector<32x8xf32>
    %14 = vector.extract_strided_slice %2 {offsets = [0, 1024], sizes = [8, 512], strides = [1, 1]} : vector<8x2048xf32> to vector<8x512xf32>
    %cst_12 = arith.constant dense<0.000000e+00> : vector<32x512xf32>
    %15 = tpu.matmul %13, %14, %cst_12 {dimension_numbers = #tpu.dot_dimension_numbers<[1], [0], [0], [1], [0, 0, 1, 1], [], []>} : vector<32x8xf32>, vector<8x512xf32>, vector<32x512xf32> -> vector<32x512xf32>
    %16 = arith.addf %11, %15 : vector<32x512xf32>
    %c3 = arith.constant 3 : index
    %c0_13 = arith.constant 0 : index
    %c0_14 = arith.constant 0 : index
    %17 = vector.load %arg4[%c3, %c0_13, %c0_14] : memref<4x32x8xf32, #tpu.memory_space<vmem>>, vector<1x32x8xf32>
    %18 = vector.shape_cast %17 : vector<1x32x8xf32> to vector<32x8xf32>
    %19 = vector.extract_strided_slice %2 {offsets = [0, 1536], sizes = [8, 512], strides = [1, 1]} : vector<8x2048xf32> to vector<8x512xf32>
    %cst_15 = arith.constant dense<0.000000e+00> : vector<32x512xf32>
    %20 = tpu.matmul %18, %19, %cst_15 {dimension_numbers = #tpu.dot_dimension_numbers<[1], [0], [0], [1], [0, 0, 1, 1], [], []>} : vector<32x8xf32>, vector<8x512xf32>, vector<32x512xf32> -> vector<32x512xf32>
    %21 = arith.addf %16, %20 : vector<32x512xf32>
    %c0_16 = arith.constant 0 : index
    %c0_17 = arith.constant 0 : index
    %22 = vector.load %arg2[%c0_16, %c0_17] : memref<8x512xf32, #tpu.memory_space<vmem>>, vector<1x512xf32>
    %c1_18 = arith.constant 1 : index
    %c0_19 = arith.constant 0 : index
    %23 = vector.load %arg2[%c1_18, %c0_19] : memref<8x512xf32, #tpu.memory_space<vmem>>, vector<1x512xf32>
    %cst_20 = arith.constant 0.000000e+00 : f32
    %24 = vector.broadcast %cst_20 : f32 to vector<32x512xf32>
    %25 = arith.cmpf oge, %21, %24 : vector<32x512xf32>
    %cst_21 = arith.constant 2.000000e-01 : f32
    %26 = vector.broadcast %cst_21 : f32 to vector<32x512xf32>
    %27 = arith.mulf %26, %21 : vector<32x512xf32>
    %28 = arith.select %25, %21, %27 : vector<32x512xi1>, vector<32x512xf32>
    %29 = vector.broadcast %22 : vector<1x512xf32> to vector<32x512xf32>
    %30 = arith.mulf %28, %29 : vector<32x512xf32>
    %31 = vector.broadcast %23 : vector<1x512xf32> to vector<32x512xf32>
    %32 = arith.addf %30, %31 : vector<32x512xf32>
    %c0_22 = arith.constant 0 : index
    %c0_23 = arith.constant 0 : index
    %33 = vector.load %arg5[%c0_22, %c0_23] : memref<512x256xf32, #tpu.memory_space<vmem>>, vector<512x256xf32>
    %cst_24 = arith.constant dense<0.000000e+00> : vector<32x256xf32>
    %34 = tpu.matmul %32, %33, %cst_24 {dimension_numbers = #tpu.dot_dimension_numbers<[1], [0], [0], [1], [0, 0, 1, 1], [], []>} : vector<32x512xf32>, vector<512x256xf32>, vector<32x256xf32> -> vector<32x256xf32>
    %c2_25 = arith.constant 2 : index
    %c0_26 = arith.constant 0 : index
    %35 = vector.load %arg2[%c2_25, %c0_26] : memref<8x512xf32, #tpu.memory_space<vmem>>, vector<1x256xf32>
    %c3_27 = arith.constant 3 : index
    %c0_28 = arith.constant 0 : index
    %36 = vector.load %arg2[%c3_27, %c0_28] : memref<8x512xf32, #tpu.memory_space<vmem>>, vector<1x256xf32>
    %cst_29 = arith.constant 0.000000e+00 : f32
    %37 = vector.broadcast %cst_29 : f32 to vector<32x256xf32>
    %38 = arith.cmpf oge, %34, %37 : vector<32x256xf32>
    %cst_30 = arith.constant 2.000000e-01 : f32
    %39 = vector.broadcast %cst_30 : f32 to vector<32x256xf32>
    %40 = arith.mulf %39, %34 : vector<32x256xf32>
    %41 = arith.select %38, %34, %40 : vector<32x256xi1>, vector<32x256xf32>
    %42 = vector.broadcast %35 : vector<1x256xf32> to vector<32x256xf32>
    %43 = arith.mulf %41, %42 : vector<32x256xf32>
    %44 = vector.broadcast %36 : vector<1x256xf32> to vector<32x256xf32>
    %45 = arith.addf %43, %44 : vector<32x256xf32>
    %c0_31 = arith.constant 0 : index
    %c0_32 = arith.constant 0 : index
    %46 = vector.load %arg6[%c0_31, %c0_32] : memref<256x512xf32, #tpu.memory_space<vmem>>, vector<256x512xf32>
    %cst_33 = arith.constant dense<0.000000e+00> : vector<32x512xf32>
    %47 = tpu.matmul %45, %46, %cst_33 {dimension_numbers = #tpu.dot_dimension_numbers<[1], [0], [0], [1], [0, 0, 1, 1], [], []>} : vector<32x256xf32>, vector<256x512xf32>, vector<32x512xf32> -> vector<32x512xf32>
    %c0_34 = arith.constant 0 : index
    %c0_35 = arith.constant 0 : index
    %c0_36 = arith.constant 0 : index
    %48 = vector.load %arg7[%c0_34, %c0_35, %c0_36] : memref<4x42x32xf32, #tpu.memory_space<vmem>>, vector<1x42x32xf32>
    %49 = vector.shape_cast %48 : vector<1x42x32xf32> to vector<42x32xf32>
    %50 = vector.extract_strided_slice %47 {offsets = [0, 0], sizes = [32, 128], strides = [1, 1]} : vector<32x512xf32> to vector<32x128xf32>
    %cst_37 = arith.constant dense<0.000000e+00> : vector<42x128xf32>
    %51 = tpu.matmul %49, %50, %cst_37 {dimension_numbers = #tpu.dot_dimension_numbers<[1], [0], [0], [1], [0, 0, 1, 1], [], []>} : vector<42x32xf32>, vector<32x128xf32>, vector<42x128xf32> -> vector<42x128xf32>
    %c1_38 = arith.constant 1 : index
    %c0_39 = arith.constant 0 : index
    %c0_40 = arith.constant 0 : index
    %52 = vector.load %arg7[%c1_38, %c0_39, %c0_40] : memref<4x42x32xf32, #tpu.memory_space<vmem>>, vector<1x42x32xf32>
    %53 = vector.shape_cast %52 : vector<1x42x32xf32> to vector<42x32xf32>
    %54 = vector.extract_strided_slice %47 {offsets = [0, 128], sizes = [32, 128], strides = [1, 1]} : vector<32x512xf32> to vector<32x128xf32>
    %cst_41 = arith.constant dense<0.000000e+00> : vector<42x128xf32>
    %55 = tpu.matmul %53, %54, %cst_41 {dimension_numbers = #tpu.dot_dimension_numbers<[1], [0], [0], [1], [0, 0, 1, 1], [], []>} : vector<42x32xf32>, vector<32x128xf32>, vector<42x128xf32> -> vector<42x128xf32>
    %56 = arith.addf %51, %55 : vector<42x128xf32>
    %c2_42 = arith.constant 2 : index
    %c0_43 = arith.constant 0 : index
    %c0_44 = arith.constant 0 : index
    %57 = vector.load %arg7[%c2_42, %c0_43, %c0_44] : memref<4x42x32xf32, #tpu.memory_space<vmem>>, vector<1x42x32xf32>
    %58 = vector.shape_cast %57 : vector<1x42x32xf32> to vector<42x32xf32>
    %59 = vector.extract_strided_slice %47 {offsets = [0, 256], sizes = [32, 128], strides = [1, 1]} : vector<32x512xf32> to vector<32x128xf32>
    %cst_45 = arith.constant dense<0.000000e+00> : vector<42x128xf32>
    %60 = tpu.matmul %58, %59, %cst_45 {dimension_numbers = #tpu.dot_dimension_numbers<[1], [0], [0], [1], [0, 0, 1, 1], [], []>} : vector<42x32xf32>, vector<32x128xf32>, vector<42x128xf32> -> vector<42x128xf32>
    %61 = arith.addf %56, %60 : vector<42x128xf32>
    %c3_46 = arith.constant 3 : index
    %c0_47 = arith.constant 0 : index
    %c0_48 = arith.constant 0 : index
    %62 = vector.load %arg7[%c3_46, %c0_47, %c0_48] : memref<4x42x32xf32, #tpu.memory_space<vmem>>, vector<1x42x32xf32>
    %63 = vector.shape_cast %62 : vector<1x42x32xf32> to vector<42x32xf32>
    %64 = vector.extract_strided_slice %47 {offsets = [0, 384], sizes = [32, 128], strides = [1, 1]} : vector<32x512xf32> to vector<32x128xf32>
    %cst_49 = arith.constant dense<0.000000e+00> : vector<42x128xf32>
    %65 = tpu.matmul %63, %64, %cst_49 {dimension_numbers = #tpu.dot_dimension_numbers<[1], [0], [0], [1], [0, 0, 1, 1], [], []>} : vector<42x32xf32>, vector<32x128xf32>, vector<42x128xf32> -> vector<42x128xf32>
    %66 = arith.addf %61, %65 : vector<42x128xf32>
    %c4 = arith.constant 4 : index
    %c0_50 = arith.constant 0 : index
    %67 = vector.load %arg2[%c4, %c0_50] : memref<8x512xf32, #tpu.memory_space<vmem>>, vector<1x128xf32>
    %c5 = arith.constant 5 : index
    %c0_51 = arith.constant 0 : index
    %68 = vector.load %arg2[%c5, %c0_51] : memref<8x512xf32, #tpu.memory_space<vmem>>, vector<1x128xf32>
    %cst_52 = arith.constant 0.000000e+00 : f32
    %69 = vector.broadcast %cst_52 : f32 to vector<42x128xf32>
    %70 = arith.cmpf oge, %66, %69 : vector<42x128xf32>
    %cst_53 = arith.constant 2.000000e-01 : f32
    %71 = vector.broadcast %cst_53 : f32 to vector<42x128xf32>
    %72 = arith.mulf %71, %66 : vector<42x128xf32>
    %73 = arith.select %70, %66, %72 : vector<42x128xi1>, vector<42x128xf32>
    %74 = vector.broadcast %67 : vector<1x128xf32> to vector<42x128xf32>
    %75 = arith.mulf %73, %74 : vector<42x128xf32>
    %76 = vector.broadcast %68 : vector<1x128xf32> to vector<42x128xf32>
    %77 = arith.addf %75, %76 : vector<42x128xf32>
    %c0_54 = arith.constant 0 : index
    %c0_55 = arith.constant 0 : index
    %78 = vector.load %arg8[%c0_54, %c0_55] : memref<128x64xf32, #tpu.memory_space<vmem>>, vector<128x64xf32>
    %cst_56 = arith.constant dense<0.000000e+00> : vector<42x64xf32>
    %79 = tpu.matmul %77, %78, %cst_56 {dimension_numbers = #tpu.dot_dimension_numbers<[1], [0], [0], [1], [0, 0, 1, 1], [], []>} : vector<42x128xf32>, vector<128x64xf32>, vector<42x64xf32> -> vector<42x64xf32>
    %c0_57 = arith.constant 0 : index
    %c0_58 = arith.constant 0 : index
    %c0_59 = arith.constant 0 : index
    %80 = vector.load %arg9[%c0_57, %c0_58, %c0_59] : memref<1x82x42xf32, #tpu.memory_space<vmem>>, vector<1x82x42xf32>
    %81 = vector.shape_cast %80 : vector<1x82x42xf32> to vector<82x42xf32>
    %cst_60 = arith.constant dense<0.000000e+00> : vector<82x64xf32>
    %82 = tpu.matmul %81, %79, %cst_60 {dimension_numbers = #tpu.dot_dimension_numbers<[1], [0], [0], [1], [0, 0, 1, 1], [], []>} : vector<82x42xf32>, vector<42x64xf32>, vector<82x64xf32> -> vector<82x64xf32>
    %c6 = arith.constant 6 : index
    %c0_61 = arith.constant 0 : index
    %83 = vector.load %arg2[%c6, %c0_61] : memref<8x512xf32, #tpu.memory_space<vmem>>, vector<1x64xf32>
    %c7 = arith.constant 7 : index
    %c0_62 = arith.constant 0 : index
    %84 = vector.load %arg2[%c7, %c0_62] : memref<8x512xf32, #tpu.memory_space<vmem>>, vector<1x64xf32>
    %cst_63 = arith.constant 0.000000e+00 : f32
    %85 = vector.broadcast %cst_63 : f32 to vector<82x64xf32>
    %86 = arith.cmpf oge, %82, %85 : vector<82x64xf32>
    %cst_64 = arith.constant 2.000000e-01 : f32
    %87 = vector.broadcast %cst_64 : f32 to vector<82x64xf32>
    %88 = arith.mulf %87, %82 : vector<82x64xf32>
    %89 = arith.select %86, %82, %88 : vector<82x64xi1>, vector<82x64xf32>
    %90 = vector.broadcast %83 : vector<1x64xf32> to vector<82x64xf32>
    %91 = arith.mulf %89, %90 : vector<82x64xf32>
    %92 = vector.broadcast %84 : vector<1x64xf32> to vector<82x64xf32>
    %93 = arith.addf %91, %92 : vector<82x64xf32>
    %c0_65 = arith.constant 0 : index
    %c0_66 = arith.constant 0 : index
    %94 = vector.load %arg10[%c0_65, %c0_66] : memref<64x128xf32, #tpu.memory_space<vmem>>, vector<64x128xf32>
    %cst_67 = arith.constant dense<0.000000e+00> : vector<82x128xf32>
    %95 = tpu.matmul %93, %94, %cst_67 {dimension_numbers = #tpu.dot_dimension_numbers<[1], [0], [0], [1], [0, 0, 1, 1], [], []>} : vector<82x64xf32>, vector<64x128xf32>, vector<82x128xf32> -> vector<82x128xf32>
    %cst_68 = arith.constant 0.000000e+00 : f32
    %96 = vector.broadcast %cst_68 : f32 to vector<82x128xf32>
    %97 = arith.cmpf oge, %95, %96 : vector<82x128xf32>
    %cst_69 = arith.constant 2.000000e-01 : f32
    %98 = vector.broadcast %cst_69 : f32 to vector<82x128xf32>
    %99 = arith.mulf %98, %95 : vector<82x128xf32>
    %100 = arith.select %97, %95, %99 : vector<82x128xi1>, vector<82x128xf32>
    %101 = math.tanh %100 : vector<82x128xf32>
    %c0_70 = arith.constant 0 : index
    %c0_71 = arith.constant 0 : index
    %102 = vector.load %arg11[%c0_70, %c0_71] : memref<82x128xf32, #tpu.memory_space<vmem>>, vector<82x128xf32>
    tpu.vector_store %arg11[%c0_70, %c0_71], %101 {strides = array<i32>} : memref<82x128xf32, #tpu.memory_space<vmem>>, vector<82x128xf32>,
    return
  }
  func.func @transform_0(%arg0: i32) -> (i32, i32) {
    %c0_i32 = arith.constant 0 : i32
    %c0_i32_0 = arith.constant 0 : i32
    %c0_i32_1 = arith.constant 0 : i32
    return %c0_i32, %c0_i32_0 : i32, i32
  }
  func.func @transform_1(%arg0: i32) -> (i32, i32) {
    %c0_i32 = arith.constant 0 : i32
    %c0_i32_0 = arith.constant 0 : i32
    %c0_i32_1 = arith.constant 0 : i32
    return %c0_i32, %c0_i32_0 : i32, i32
  }
  func.func @transform_2(%arg0: i32) -> (i32, i32) {
    %c0_i32 = arith.constant 0 : i32
    %c0_i32_0 = arith.constant 0 : i32
    %c0_i32_1 = arith.constant 0 : i32
    return %c0_i32, %c0_i32_0 : i32, i32
  }
  func.func @transform_3(%arg0: i32) -> (i32, i32, i32) {
    %c0_i32 = arith.constant 0 : i32
    %c0_i32_0 = arith.constant 0 : i32
    %c0_i32_1 = arith.constant 0 : i32
    %c0_i32_2 = arith.constant 0 : i32
    return %c0_i32, %c0_i32_0, %c0_i32_1 : i32, i32, i32
  }
  func.func @transform_4(%arg0: i32) -> (i32, i32) {
    %c0_i32 = arith.constant 0 : i32
    %c0_i32_0 = arith.constant 0 : i32
    %c0_i32_1 = arith.constant 0 : i32
    return %c0_i32, %c0_i32_0 : i32, i32
  }
  func.func @transform_5(%arg0: i32) -> (i32, i32) {
    %c0_i32 = arith.constant 0 : i32
    %c0_i32_0 = arith.constant 0 : i32
    %c0_i32_1 = arith.constant 0 : i32
    return %c0_i32, %c0_i32_0 : i32, i32
  }
  func.func @transform_6(%arg0: i32) -> (i32, i32, i32) {
    %c0_i32 = arith.constant 0 : i32
    %c0_i32_0 = arith.constant 0 : i32
    %c0_i32_1 = arith.constant 0 : i32
    %c0_i32_2 = arith.constant 0 : i32
    return %c0_i32, %c0_i32_0, %c0_i32_1 : i32, i32, i32
  }
  func.func @transform_7(%arg0: i32) -> (i32, i32) {
    %c0_i32 = arith.constant 0 : i32
    %c0_i32_0 = arith.constant 0 : i32
    %c0_i32_1 = arith.constant 0 : i32
    return %c0_i32, %c0_i32_0 : i32, i32
  }
  func.func @transform_8(%arg0: i32) -> (i32, i32, i32) {
    %c0_i32 = arith.constant 0 : i32
    %c0_i32_0 = arith.constant 0 : i32
    %c0_i32_1 = arith.constant 0 : i32
    %c0_i32_2 = arith.constant 0 : i32
    return %c0_i32, %c0_i32_0, %c0_i32_1 : i32, i32, i32
  }
  func.func @transform_9(%arg0: i32) -> (i32, i32) {
    %c0_i32 = arith.constant 0 : i32
    %c0_i32_0 = arith.constant 0 : i32
    %c0_i32_1 = arith.constant 0 : i32
    return %c0_i32, %c0_i32_0 : i32, i32
  }
  func.func @transform_10(%arg0: i32) -> (i32, i32) {
    %c0_i32 = arith.constant 0 : i32
    %c0_i32_0 = arith.constant 0 : i32
    %c0_i32_1 = arith.constant 0 : i32
    return %c0_i32, %c0_i32_0 : i32, i32
  }
}

</mosaic_0001>

<bundles_post_ra>
// kernel: squeeze.1
= control target key start
LH: loop header
LB: loop body
LE: loop exit
PB: predicated region body
PF: predicated region fallthrough
CT: control target
= control target key end

     0   :  { %s80_s0 = inlined_call_operand.vmem [shape: f32[82], index: 0, kind: input, shape index: {}]   ;;  %s81_s1 = inlined_call_operand.hbm [shape: f32[2,1,1,41], index: 1, kind: output, shape index: {}]  }
   0x1   :  { %v5_v0 = vld [vmem:[%s80_s0] sm:$0x1] }
   0x2   :  { %2 = vsyncpa [#allocation1], 0  ;;  %6 = vst [vmem:[#allocation3] sm:$0x1] %v5_v0  ;;  %vm8_vm0 = vcmask 334848   ;;  %s62_s0 = smov 87  }
   0x3   :  { %s63_s8 = smov [#allocation0]   ;;  %s27_s1 = sshll.u32 %s81_s1, 4  ;;  %s28_s1 = int_to_ptr.hbm [resolvable:$true] %s27_s1 }
   0x4   :  { %s25_s9 = sshll.u32 %s63_s8, 4  ;;  %s26_s9 = int_to_ptr.vmem [resolvable:$true] %s25_s9 }
   0x9   :  { %v10_v1 = vld [vmem:[#allocation3] sm:$0x1]  }
   0xa   :  { %v7_v2 = vld [vmem:[#allocation3] sm:$0x1]   ;;  %11 = vrot.lane.b32.xlu0 %v10_v1, %s62_s0 }
   0xb   :  { %9 = vst.msk [vmem:[#allocation2] sm:$0x1] %vm8_vm0, %v7_v2  }
  0x7c   :  { %v12_v3 = vpop.permute.xlu0 %11  }
  0x7d   :  { %15 = vst.msk [vmem:[#allocation2 + $0x1] sm:$0x1] %vm8_vm0, %v12_v3  }
  0x84   :  { %v18_v4 = vld [vmem:[#allocation2] sm:$0x3] }
  0x85   :  { %21 = vst [vmem:[#allocation0] sm:$0x3] %v18_v4 }
  0x86   :  { %30 = dma.vmem_to_hbm [thread:$0]  %s26_s9, 32, %s28_s1, [#allocation1]  }
  0x87   :  { %60 = dma.done.wait [#allocation1], 32  }
  0x88   :  { %61 = vsyncadd [#allocation1], 4294967264 }
  0x89   :  { %33 = vsyncpa [#allocation1], 1 }

// kernel: generator_forward.1
= control target key start
LH: loop header
LB: loop body
LE: loop exit
PB: predicated region body
PF: predicated region fallthrough
CT: control target
= control target key end

     0   :  { %15 = vsyncpa [#allocation3], 0  ;;  %s3816_s0 = inlined_call_operand.vmem [shape: f32[8,128], index: 0, kind: input, shape index: {}]   ;;  %s3817_s1 = inlined_call_operand.vmem [shape: f32[8,512], index: 1, kind: input, shape index: {}]   ;;  %s3818_s2 = inlined_call_operand.hbm [shape: f32[128,2048], index: 2, kind: input, shape index: {}]   ;;  %s3819_s3 = inlined_call_operand.vmem [shape: f32[4,32,8], index: 3, kind: input, shape index: {}]   ;;  %s3820_s4 = inlined_call_operand.hbm [shape: f32[512,256], index: 4, kind: input, shape index: {}]   ;;  %s3821_s5 = inlined_call_operand.hbm [shape: f32[256,512], index: 5, kind: input, shape index: {}]   ;;  %s3822_s6 = inlined_call_operand.vmem [shape: f32[4,42,32], index: 6, kind: input, shape index: {}]   ;;  %s3823_s7 = inlined_call_operand.vmem [shape: f32[128,64], index: 7, kind: input, shape index: {}]   ;;  %s3824_s8 = inlined_call_operand.vmem [shape: f32[1,82,42], index: 8, kind: input, shape index: {}]   ;;  %s3825_s9 = inlined_call_operand.vmem [shape: f32[64,128], index: 9, kind: input, shape index: {}]   ;;  %s3826_s10 = inlined_call_operand.vmem [shape: f32[82,128], index: 10, kind: output, shape index: {}]  }
   0x1   :  { %16 = vsyncpa [#allocation5], 0  ;;  %s40_s15 = sshll.u32 %s3820_s4, 4  ;;  %s2995_s16 = smov [#allocation4]   ;;  %s41_s15 = int_to_ptr.hbm [resolvable:$true] %s40_s15 }
   0x2   :  { %s42_s17 = sshll.u32 %s2995_s16, 4  ;;  %s25_s20 = sshll.u32 %s3818_s2, 4  ;;  %s43_s17 = int_to_ptr.vmem [resolvable:$true] %s42_s17  ;;  %s26_s20 = int_to_ptr.hbm [resolvable:$true] %s25_s20 }
   0x3   :  { %s2996_s21 = smov 256   ;;  %s2997_s22 = smov 16  }
   0x4   :  { %48 = dma.hbm_to_vmem [thread:$0]  %s41_s15, 16384, %s43_s17, [#allocation5], %s2996_s21, %s2996_s21, %s2997_s22  }
   0x5   :  { %s2998_s23 = smov [#allocation2]   ;;  %s2999_s25 = smov 2048  }
   0x6   :  { %s27_s24 = sshll.u32 %s2998_s23, 4  ;;  %s3000_s26 = smov 128   ;;  %s28_s24 = int_to_ptr.vmem [resolvable:$true] %s27_s24 }
   0x7   :  { %33 = dma.hbm_to_vmem [thread:$0]  %s26_s20, 32768, %s28_s24, [#allocation3], %s2999_s25, %s2999_s25, %s3000_s26  }
   0x8   :  { %s53_s28 = sshll.u32 %s3821_s5, 4  ;;  %s3001_s29 = smov [#allocation6]   ;;  %s54_s28 = int_to_ptr.hbm [resolvable:$true] %s53_s28 }
   0x9   :  { %s55_s30 = sshll.u32 %s3001_s29, 4  ;;  %s3002_s11 = smov 512   ;;  %s56_s30 = int_to_ptr.vmem [resolvable:$true] %s55_s30 }
   0xa   :  { %s3003_s2 = smov 32  }
   0xb   :  { %61 = dma.hbm_to_vmem [thread:$0]  %s54_s28, 16384, %s56_s30, [#allocation5], %s3002_s11, %s3002_s11, %s3003_s2  }
   0xc   :  { %2991 = dma.done.wait [#allocation3], 32768  }
   0xd   :  { %2992 = vsyncadd [#allocation3], 4294934528 }
   0xe   :  { %2993 = dma.done.wait [#allocation5], 32768  }
   0xf   :  { %2994 = vsyncadd [#allocation5], 4294934528  ;;  %v323_v0 = vld [vmem:[#allocation2 + $0x780] sm:$0xff]  ;;  %v324_v1 = vld [vmem:[#allocation2 + $0x788] sm:$0xff]  ;;  %vm668_vm0 = vcmask 64512  }
  0x10   :  { %v325_v2 = vld [vmem:[#allocation2 + $0x790] sm:$0xff]  ;;  %339 = vmatpush.msra.mxu0 %v323_v0  ;;  %359 = vmatpush.msra.mxu1 %v324_v1  ;;  %v326_v3 = vld [vmem:[#allocation2 + $0x798] sm:$0xff]  ;;  %v307_v4 = vld [vmem:[#allocation2 + $0x700] sm:$0xff] }
  0x11   :  { %v308_v5 = vld [vmem:[#allocation2 + $0x708] sm:$0xff]  ;;  %379 = vmatpush.msra.mxu2 %v325_v2  ;;  %399 = vmatpush.msra.mxu3 %v326_v3  ;;  %v309_v6 = vld [vmem:[#allocation2 + $0x710] sm:$0xff]  ;;  %v310_v7 = vld [vmem:[#allocation2 + $0x718] sm:$0xff] }
  0x12   :  { %v291_v8 = vld [vmem:[#allocation2 + $0x680] sm:$0xff]  ;;  %340 = vmatpush.msra.mxu0 %v307_v4  ;;  %360 = vmatpush.msra.mxu1 %v308_v5  ;;  %v292_v9 = vld [vmem:[#allocation2 + $0x688] sm:$0xff]  ;;  %v293_v10 = vld [vmem:[#allocation2 + $0x690] sm:$0xff] }
  0x13   :  { %v294_v11 = vld [vmem:[#allocation2 + $0x698] sm:$0xff]  ;;  %380 = vmatpush.msra.mxu2 %v309_v6  ;;  %400 = vmatpush.msra.mxu3 %v310_v7  ;;  %v275_v12 = vld [vmem:[#allocation2 + $0x600] sm:$0xff]  ;;  %v276_v13 = vld [vmem:[#allocation2 + $0x608] sm:$0xff] }
  0x14   :  { %341 = vmatpush.msra.mxu0 %v291_v8  ;;  %361 = vmatpush.msra.mxu1 %v292_v9  ;;  %v277_v14 = vld [vmem:[#allocation2 + $0x610] sm:$0xff]  ;;  %v278_v15 = vld [vmem:[#allocation2 + $0x618] sm:$0xff]  ;;  %v259_v16 = vld [vmem:[#allocation2 + $0x580] sm:$0xff] }
  0x15   :  { %381 = vmatpush.msra.mxu2 %v293_v10  ;;  %401 = vmatpush.msra.mxu3 %v294_v11  ;;  %v260_v17 = vld [vmem:[#allocation2 + $0x588] sm:$0xff]  ;;  %v261_v18 = vld [vmem:[#allocation2 + $0x590] sm:$0xff]  ;;  %v262_v19 = vld [vmem:[#allocation2 + $0x598] sm:$0xff] }
  0x16   :  { %342 = vmatpush.msra.mxu0 %v275_v12  ;;  %362 = vmatpush.msra.mxu1 %v276_v13  ;;  %v243_v20 = vld [vmem:[#allocation2 + $0x500] sm:$0xff]  ;;  %v244_v21 = vld [vmem:[#allocation2 + $0x508] sm:$0xff]  ;;  %v245_v22 = vld [vmem:[#allocation2 + $0x510] sm:$0xff] }
  0x17   :  { %382 = vmatpush.msra.mxu2 %v277_v14  ;;  %402 = vmatpush.msra.mxu3 %v278_v15  ;;  %v246_v23 = vld [vmem:[#allocation2 + $0x518] sm:$0xff]  ;;  %v227_v24 = vld [vmem:[#allocation2 + $0x480] sm:$0xff]  ;;  %v228_v25 = vld [vmem:[#allocation2 + $0x488] sm:$0xff] }
  0x18   :  { %343 = vmatpush.msra.mxu0 %v259_v16  ;;  %363 = vmatpush.msra.mxu1 %v260_v17  ;;  %v229_v26 = vld [vmem:[#allocation2 + $0x490] sm:$0xff]  ;;  %v230_v27 = vld [vmem:[#allocation2 + $0x498] sm:$0xff]  ;;  %v211_v28 = vld [vmem:[#allocation2 + $0x400] sm:$0xff] }
  0x19   :  { %383 = vmatpush.msra.mxu2 %v261_v18  ;;  %403 = vmatpush.msra.mxu3 %v262_v19  ;;  %v212_v29 = vld [vmem:[#allocation2 + $0x408] sm:$0xff]  ;;  %v213_v30 = vld [vmem:[#allocation2 + $0x410] sm:$0xff]  ;;  %v214_v31 = vld [vmem:[#allocation2 + $0x418] sm:$0xff] }
  0x1a   :  { %344 = vmatpush.msra.mxu0 %v243_v20  ;;  %364 = vmatpush.msra.mxu1 %v244_v21  ;;  %v195_v32 = vld [vmem:[#allocation2 + $0x380] sm:$0xff]  ;;  %v196_v33 = vld [vmem:[#allocation2 + $0x388] sm:$0xff]  ;;  %v197_v34 = vld [vmem:[#allocation2 + $0x390] sm:$0xff] }
  0x1b   :  { %384 = vmatpush.msra.mxu2 %v245_v22  ;;  %404 = vmatpush.msra.mxu3 %v246_v23  ;;  %v198_v35 = vld [vmem:[#allocation2 + $0x398] sm:$0xff]  ;;  %v179_v36 = vld [vmem:[#allocation2 + $0x300] sm:$0xff]  ;;  %v180_v37 = vld [vmem:[#allocation2 + $0x308] sm:$0xff] }
  0x1c   :  { %345 = vmatpush.msra.mxu0 %v227_v24  ;;  %365 = vmatpush.msra.mxu1 %v228_v25  ;;  %v181_v38 = vld [vmem:[#allocation2 + $0x310] sm:$0xff]  ;;  %v182_v39 = vld [vmem:[#allocation2 + $0x318] sm:$0xff]  ;;  %v163_v40 = vld [vmem:[#allocation2 + $0x280] sm:$0xff] }
  0x1d   :  { %385 = vmatpush.msra.mxu2 %v229_v26  ;;  %405 = vmatpush.msra.mxu3 %v230_v27  ;;  %v164_v41 = vld [vmem:[#allocation2 + $0x288] sm:$0xff]  ;;  %v165_v42 = vld [vmem:[#allocation2 + $0x290] sm:$0xff]  ;;  %v166_v43 = vld [vmem:[#allocation2 + $0x298] sm:$0xff] }
  0x1e   :  { %346 = vmatpush.msra.mxu0 %v211_v28  ;;  %366 = vmatpush.msra.mxu1 %v212_v29  ;;  %v147_v44 = vld [vmem:[#allocation2 + $0x200] sm:$0xff]  ;;  %v148_v45 = vld [vmem:[#allocation2 + $0x208] sm:$0xff]  ;;  %v149_v46 = vld [vmem:[#allocation2 + $0x210] sm:$0xff] }
  0x1f   :  { %386 = vmatpush.msra.mxu2 %v213_v30  ;;  %406 = vmatpush.msra.mxu3 %v214_v31  ;;  %v150_v47 = vld [vmem:[#allocation2 + $0x218] sm:$0xff]  ;;  %v131_v48 = vld [vmem:[#allocation2 + $0x180] sm:$0xff]  ;;  %v132_v49 = vld [vmem:[#allocation2 + $0x188] sm:$0xff] }
  0x20   :  { %347 = vmatpush.msra.mxu0 %v195_v32  ;;  %367 = vmatpush.msra.mxu1 %v196_v33  ;;  %v133_v50 = vld [vmem:[#allocation2 + $0x190] sm:$0xff]  ;;  %v134_v51 = vld [vmem:[#allocation2 + $0x198] sm:$0xff]  ;;  %v115_v52 = vld [vmem:[#allocation2 + $0x100] sm:$0xff] }
  0x21   :  { %387 = vmatpush.msra.mxu2 %v197_v34  ;;  %407 = vmatpush.msra.mxu3 %v198_v35  ;;  %v116_v53 = vld [vmem:[#allocation2 + $0x108] sm:$0xff]  ;;  %v117_v54 = vld [vmem:[#allocation2 + $0x110] sm:$0xff]  ;;  %v118_v55 = vld [vmem:[#allocation2 + $0x118] sm:$0xff] }
  0x22   :  { %348 = vmatpush.msra.mxu0 %v179_v36  ;;  %368 = vmatpush.msra.mxu1 %v180_v37  ;;  %v99_v56 = vld [vmem:[#allocation2 + $0x80] sm:$0xff]  ;;  %v100_v57 = vld [vmem:[#allocation2 + $0x88] sm:$0xff]  ;;  %v101_v58 = vld [vmem:[#allocation2 + $0x90] sm:$0xff] }
  0x23   :  { %388 = vmatpush.msra.mxu2 %v181_v38  ;;  %408 = vmatpush.msra.mxu3 %v182_v39  ;;  %v102_v59 = vld [vmem:[#allocation2 + $0x98] sm:$0xff]  ;;  %v83_v60 = vld [vmem:[#allocation2] sm:$0xff]  ;;  %v84_v61 = vld [vmem:[#allocation2 + $0x8] sm:$0xff] }
  0x24   :  { %349 = vmatpush.msra.mxu0 %v163_v40  ;;  %369 = vmatpush.msra.mxu1 %v164_v41  ;;  %v85_v62 = vld [vmem:[#allocation2 + $0x10] sm:$0xff]  ;;  %v86_v63 = vld [vmem:[#allocation2 + $0x18] sm:$0xff]  ;;  %v327_v0 = vld [vmem:[#allocation2 + $0x7a0] sm:$0xff] }
  0x25   :  { %389 = vmatpush.msra.mxu2 %v165_v42  ;;  %409 = vmatpush.msra.mxu3 %v166_v43  ;;  %v328_v1 = vld [vmem:[#allocation2 + $0x7a8] sm:$0xff]  ;;  %v329_v2 = vld [vmem:[#allocation2 + $0x7b0] sm:$0xff]  ;;  %v330_v3 = vld [vmem:[#allocation2 + $0x7b8] sm:$0xff] }
  0x26   :  { %350 = vmatpush.msra.mxu0 %v147_v44  ;;  %370 = vmatpush.msra.mxu1 %v148_v45  ;;  %v311_v4 = vld [vmem:[#allocation2 + $0x720] sm:$0xff]  ;;  %v312_v5 = vld [vmem:[#allocation2 + $0x728] sm:$0xff]  ;;  %v313_v6 = vld [vmem:[#allocation2 + $0x730] sm:$0xff] }
  0x27   :  { %390 = vmatpush.msra.mxu2 %v149_v46  ;;  %410 = vmatpush.msra.mxu3 %v150_v47  ;;  %v314_v7 = vld [vmem:[#allocation2 + $0x738] sm:$0xff]  ;;  %v295_v8 = vld [vmem:[#allocation2 + $0x6a0] sm:$0xff]  ;;  %v296_v9 = vld [vmem:[#allocation2 + $0x6a8] sm:$0xff] }
  0x28   :  { %351 = vmatpush.msra.mxu0 %v131_v48  ;;  %371 = vmatpush.msra.mxu1 %v132_v49  ;;  %v297_v10 = vld [vmem:[#allocation2 + $0x6b0] sm:$0xff]  ;;  %v298_v11 = vld [vmem:[#allocation2 + $0x6b8] sm:$0xff]  ;;  %v279_v12 = vld [vmem:[#allocation2 + $0x620] sm:$0xff] }
  0x29   :  { %391 = vmatpush.msra.mxu2 %v133_v50  ;;  %411 = vmatpush.msra.mxu3 %v134_v51  ;;  %v280_v13 = vld [vmem:[#allocation2 + $0x628] sm:$0xff]  ;;  %v281_v14 = vld [vmem:[#allocation2 + $0x630] sm:$0xff]  ;;  %v282_v15 = vld [vmem:[#allocation2 + $0x638] sm:$0xff] }
  0x2a   :  { %352 = vmatpush.msra.mxu0 %v115_v52  ;;  %372 = vmatpush.msra.mxu1 %v116_v53  ;;  %v3071_v16 = vld [vmem:[%s3816_s0] sm:$0xff]  ;;  %v264_v18 = vld [vmem:[#allocation2 + $0x5a8] sm:$0xff]  ;;  %v265_v19 = vld [vmem:[#allocation2 + $0x5b0] sm:$0xff] }
  0x2b   :  { %392 = vmatpush.msra.mxu2 %v117_v54  ;;  %412 = vmatpush.msra.mxu3 %v118_v55  ;;  %v263_v17 = vld [vmem:[#allocation2 + $0x5a0] sm:$0xff]  ;;  %v266_v20 = vld [vmem:[#allocation2 + $0x5b8] sm:$0xff]  ;;  %v248_v22 = vld [vmem:[#allocation2 + $0x528] sm:$0xff] }
  0x2c   :  { %353 = vmatpush.msra.mxu0 %v99_v56  ;;  %373 = vmatpush.msra.mxu1 %v100_v57  ;;  %v247_v21 = vld [vmem:[#allocation2 + $0x520] sm:$0xff]  ;;  %v249_v23 = vld [vmem:[#allocation2 + $0x530] sm:$0xff]  ;;  %v250_v24 = vld [vmem:[#allocation2 + $0x538] sm:$0xff] }
  0x2d   :  { %393 = vmatpush.msra.mxu2 %v101_v58  ;;  %413 = vmatpush.msra.mxu3 %v102_v59  ;;  %v231_v25 = vld [vmem:[#allocation2 + $0x4a0] sm:$0xff]  ;;  %v232_v26 = vld [vmem:[#allocation2 + $0x4a8] sm:$0xff]  ;;  %v233_v27 = vld [vmem:[#allocation2 + $0x4b0] sm:$0xff] }
  0x2e   :  { %354 = vmatpush.msra.mxu0 %v83_v60  ;;  %374 = vmatpush.msra.mxu1 %v84_v61  ;;  %v234_v28 = vld [vmem:[#allocation2 + $0x4b8] sm:$0xff]  ;;  %v215_v29 = vld [vmem:[#allocation2 + $0x420] sm:$0xff]  ;;  %v216_v30 = vld [vmem:[#allocation2 + $0x428] sm:$0xff] }
  0x2f   :  { %394 = vmatpush.msra.mxu2 %v85_v62  ;;  %414 = vmatpush.msra.mxu3 %v86_v63  ;;  %v217_v31 = vld [vmem:[#allocation2 + $0x430] sm:$0xff]  ;;  %v218_v32 = vld [vmem:[#allocation2 + $0x438] sm:$0xff]  ;;  %v199_v33 = vld [vmem:[#allocation2 + $0x3a0] sm:$0xff] }
  0x30   :  { %419 = vmatpush.msrb.mxu0 %v327_v0  ;;  %439 = vmatpush.msrb.mxu1 %v328_v1  ;;  %v200_v34 = vld [vmem:[#allocation2 + $0x3a8] sm:$0xff]  ;;  %v201_v35 = vld [vmem:[#allocation2 + $0x3b0] sm:$0xff]  ;;  %v202_v36 = vld [vmem:[#allocation2 + $0x3b8] sm:$0xff] }
  0x31   :  { %459 = vmatpush.msrb.mxu2 %v329_v2  ;;  %479 = vmatpush.msrb.mxu3 %v330_v3  ;;  %v183_v37 = vld [vmem:[#allocation2 + $0x320] sm:$0xff]  ;;  %v184_v38 = vld [vmem:[#allocation2 + $0x328] sm:$0xff]  ;;  %v185_v39 = vld [vmem:[#allocation2 + $0x330] sm:$0xff] }
  0x32   :  { %420 = vmatpush.msrb.mxu0 %v311_v4  ;;  %440 = vmatpush.msrb.mxu1 %v312_v5  ;;  %v186_v40 = vld [vmem:[#allocation2 + $0x338] sm:$0xff]  ;;  %v167_v41 = vld [vmem:[#allocation2 + $0x2a0] sm:$0xff]  ;;  %v168_v42 = vld [vmem:[#allocation2 + $0x2a8] sm:$0xff] }
  0x33   :  { %460 = vmatpush.msrb.mxu2 %v313_v6  ;;  %480 = vmatpush.msrb.mxu3 %v314_v7  ;;  %v169_v43 = vld [vmem:[#allocation2 + $0x2b0] sm:$0xff]  ;;  %v170_v44 = vld [vmem:[#allocation2 + $0x2b8] sm:$0xff]  ;;  %v151_v45 = vld [vmem:[#allocation2 + $0x220] sm:$0xff] }
  0x34   :  { %421 = vmatpush.msrb.mxu0 %v295_v8  ;;  %441 = vmatpush.msrb.mxu1 %v296_v9  ;;  %v152_v46 = vld [vmem:[#allocation2 + $0x228] sm:$0xff]  ;;  %v153_v47 = vld [vmem:[#allocation2 + $0x230] sm:$0xff]  ;;  %v154_v48 = vld [vmem:[#allocation2 + $0x238] sm:$0xff] }
  0x35   :  { %461 = vmatpush.msrb.mxu2 %v297_v10  ;;  %481 = vmatpush.msrb.mxu3 %v298_v11  ;;  %v135_v49 = vld [vmem:[#allocation2 + $0x1a0] sm:$0xff]  ;;  %v136_v50 = vld [vmem:[#allocation2 + $0x1a8] sm:$0xff]  ;;  %v137_v51 = vld [vmem:[#allocation2 + $0x1b0] sm:$0xff] }
  0x36   :  { %422 = vmatpush.msrb.mxu0 %v279_v12  ;;  %442 = vmatpush.msrb.mxu1 %v280_v13  ;;  %v138_v52 = vld [vmem:[#allocation2 + $0x1b8] sm:$0xff]  ;;  %v119_v53 = vld [vmem:[#allocation2 + $0x120] sm:$0xff]  ;;  %v120_v54 = vld [vmem:[#allocation2 + $0x128] sm:$0xff] }
  0x37   :  { %462 = vmatpush.msrb.mxu2 %v281_v14  ;;  %482 = vmatpush.msrb.mxu3 %v282_v15  ;;  %v121_v55 = vld [vmem:[#allocation2 + $0x130] sm:$0xff]  ;;  %v122_v56 = vld [vmem:[#allocation2 + $0x138] sm:$0xff]  ;;  %v103_v57 = vld [vmem:[#allocation2 + $0xa0] sm:$0xff] }
  0x38   :  { %395 = vmatmul.f32.vlgmr.msra.gmra.mxu2 %v3071_v16  ;;  %423 = vmatpush.msrb.mxu0 %v263_v17  ;;  %v104_v58 = vld [vmem:[#allocation2 + $0xa8] sm:$0xff]  ;;  %v105_v59 = vld [vmem:[#allocation2 + $0xb0] sm:$0xff]  ;;  %v106_v60 = vld [vmem:[#allocation2 + $0xb8] sm:$0xff] }
  0x39   :  { %443 = vmatpush.msrb.mxu1 %v264_v18  ;;  %463 = vmatpush.msrb.mxu2 %v265_v19  ;;  %v87_v61 = vld [vmem:[#allocation2 + $0x20] sm:$0xff]  ;;  %v88_v62 = vld [vmem:[#allocation2 + $0x28] sm:$0xff]  ;;  %v89_v63 = vld [vmem:[#allocation2 + $0x30] sm:$0xff] }
  0x3a   :  { %483 = vmatpush.msrb.mxu3 %v266_v20  ;;  %424 = vmatpush.msrb.mxu0 %v247_v21  ;;  %v90_v0 = vld [vmem:[#allocation2 + $0x38] sm:$0xff]  ;;  %v333_v1 = vld [vmem:[#allocation2 + $0x7d0] sm:$0xff]  ;;  %v331_v7 = vld [vmem:[#allocation2 + $0x7c0] sm:$0xff] }
  0x3b   :  { %444 = vmatpush.msrb.mxu1 %v248_v22  ;;  %464 = vmatpush.msrb.mxu2 %v249_v23  ;;  %v317_v2 = vld [vmem:[#allocation2 + $0x750] sm:$0xff]  ;;  %v334_v8 = vld [vmem:[#allocation2 + $0x7d8] sm:$0xff]  ;;  %v315_v10 = vld [vmem:[#allocation2 + $0x740] sm:$0xff] }
  0x3c   :  { %484 = vmatpush.msrb.mxu3 %v250_v24  ;;  %425 = vmatpush.msrb.mxu0 %v231_v25  ;;  %v301_v3 = vld [vmem:[#allocation2 + $0x6d0] sm:$0xff]  ;;  %v318_v11 = vld [vmem:[#allocation2 + $0x758] sm:$0xff]  ;;  %v299_v13 = vld [vmem:[#allocation2 + $0x6c0] sm:$0xff] }
  0x3d   :  { %445 = vmatpush.msrb.mxu1 %v232_v26  ;;  %465 = vmatpush.msrb.mxu2 %v233_v27  ;;  %v285_v4 = vld [vmem:[#allocation2 + $0x650] sm:$0xff]  ;;  %v302_v14 = vld [vmem:[#allocation2 + $0x6d8] sm:$0xff]  ;;  %v283_v17 = vld [vmem:[#allocation2 + $0x640] sm:$0xff] }
  0x3e   :  { %485 = vmatpush.msrb.mxu3 %v234_v28  ;;  %426 = vmatpush.msrb.mxu0 %v215_v29  ;;  %v269_v5 = vld [vmem:[#allocation2 + $0x5d0] sm:$0xff]  ;;  %v286_v18 = vld [vmem:[#allocation2 + $0x658] sm:$0xff]  ;;  %v267_v20 = vld [vmem:[#allocation2 + $0x5c0] sm:$0xff] }
  0x3f   :  { %446 = vmatpush.msrb.mxu1 %v216_v30  ;;  %466 = vmatpush.msrb.mxu2 %v217_v31  ;;  %v253_v6 = vld [vmem:[#allocation2 + $0x550] sm:$0xff]  ;;  %v332_v21 = vld [vmem:[#allocation2 + $0x7c8] sm:$0xff]  ;;  %v270_v22 = vld [vmem:[#allocation2 + $0x5d8] sm:$0xff] }
  0x40   :  { %486 = vmatpush.msrb.mxu3 %v218_v32  ;;  %427 = vmatpush.msrb.mxu0 %v199_v33  ;;  %v237_v9 = vld [vmem:[#allocation2 + $0x4d0] sm:$0xff]  ;;  %v251_v24 = vld [vmem:[#allocation2 + $0x540] sm:$0xff]  ;;  %v316_v25 = vld [vmem:[#allocation2 + $0x748] sm:$0xff] }
  0x41   :  { %447 = vmatpush.msrb.mxu1 %v200_v34  ;;  %467 = vmatpush.msrb.mxu2 %v201_v35  ;;  %v221_v12 = vld [vmem:[#allocation2 + $0x450] sm:$0xff]  ;;  %v254_v26 = vld [vmem:[#allocation2 + $0x558] sm:$0xff]  ;;  %v235_v28 = vld [vmem:[#allocation2 + $0x4c0] sm:$0xff] }
  0x42   :  { %487 = vmatpush.msrb.mxu3 %v202_v36  ;;  %428 = vmatpush.msrb.mxu0 %v183_v37  ;;  %v205_v15 = vld [vmem:[#allocation2 + $0x3d0] sm:$0xff]  ;;  %v300_v29 = vld [vmem:[#allocation2 + $0x6c8] sm:$0xff]  ;;  %v238_v30 = vld [vmem:[#allocation2 + $0x4d8] sm:$0xff] }
  0x43   :  { %448 = vmatpush.msrb.mxu1 %v184_v38  ;;  %468 = vmatpush.msrb.mxu2 %v185_v39  ;;  %v189_v19 = vld [vmem:[#allocation2 + $0x350] sm:$0xff]  ;;  %v219_v32 = vld [vmem:[#allocation2 + $0x440] sm:$0xff]  ;;  %v284_v33 = vld [vmem:[#allocation2 + $0x648] sm:$0xff] }
  0x44   :  { %488 = vmatpush.msrb.mxu3 %v186_v40  ;;  %429 = vmatpush.msrb.mxu0 %v167_v41  ;;  %v173_v23 = vld [vmem:[#allocation2 + $0x2d0] sm:$0xff]  ;;  %v222_v34 = vld [vmem:[#allocation2 + $0x458] sm:$0xff]  ;;  %v203_v36 = vld [vmem:[#allocation2 + $0x3c0] sm:$0xff] }
  0x45   :  { %449 = vmatpush.msrb.mxu1 %v168_v42  ;;  %469 = vmatpush.msrb.mxu2 %v169_v43  ;;  %v157_v27 = vld [vmem:[#allocation2 + $0x250] sm:$0xff]  ;;  %v268_v37 = vld [vmem:[#allocation2 + $0x5c8] sm:$0xff]  ;;  %v206_v38 = vld [vmem:[#allocation2 + $0x3d8] sm:$0xff] }
  0x46   :  { %489 = vmatpush.msrb.mxu3 %v170_v44  ;;  %430 = vmatpush.msrb.mxu0 %v151_v45  ;;  %v141_v31 = vld [vmem:[#allocation2 + $0x1d0] sm:$0xff]  ;;  %v187_v40 = vld [vmem:[#allocation2 + $0x340] sm:$0xff]  ;;  %v252_v41 = vld [vmem:[#allocation2 + $0x548] sm:$0xff] }
  0x47   :  { %450 = vmatpush.msrb.mxu1 %v152_v46  ;;  %470 = vmatpush.msrb.mxu2 %v153_v47  ;;  %v125_v35 = vld [vmem:[#allocation2 + $0x150] sm:$0xff]  ;;  %v190_v42 = vld [vmem:[#allocation2 + $0x358] sm:$0xff]  ;;  %v171_v44 = vld [vmem:[#allocation2 + $0x2c0] sm:$0xff] }
  0x48   :  { %355 = vmatmul.f32.vlgmr.msra.gmra.mxu0 %v3071_v16  ;;  %375 = vmatmul.f32.vlgmr.msra.gmra.mxu1 %v3071_v16  ;;  %v109_v39 = vld [vmem:[#allocation2 + $0xd0] sm:$0xff]  ;;  %v236_v45 = vld [vmem:[#allocation2 + $0x4c8] sm:$0xff]  ;;  %v174_v46 = vld [vmem:[#allocation2 + $0x2d8] sm:$0xff] }
  0x49   :  { %490 = vmatpush.msrb.mxu3 %v154_v48  ;;  %431 = vmatpush.msrb.mxu0 %v135_v49  ;;  %v93_v43 = vld [vmem:[#allocation2 + $0x50] sm:$0xff]  ;;  %v155_v48 = vld [vmem:[#allocation2 + $0x240] sm:$0xff]  ;;  %v220_v49 = vld [vmem:[#allocation2 + $0x448] sm:$0xff] }
  0x4a   :  { %415 = vmatmul.f32.vlgmr.msra.gmra.mxu3 %v3071_v16  ;;  %451 = vmatpush.msrb.mxu1 %v136_v50  ;;  %v337_v47 = vld [vmem:[#allocation2 + $0x7f0] sm:$0xff]  ;;  %v158_v50 = vld [vmem:[#allocation2 + $0x258] sm:$0xff] }
  0x4b   :  { %471 = vmatpush.msrb.mxu2 %v137_v51  ;;  %491 = vmatpush.msrb.mxu3 %v138_v52  ;;  %v321_v51 = vld [vmem:[#allocation2 + $0x770] sm:$0xff]  ;;  %v139_v52 = vld [vmem:[#allocation2 + $0x1c0] sm:$0xff] }
  0x4c   :  { %432 = vmatpush.msrb.mxu0 %v119_v53  ;;  %452 = vmatpush.msrb.mxu1 %v120_v54  ;;  %v204_v53 = vld [vmem:[#allocation2 + $0x3c8] sm:$0xff]  ;;  %v142_v54 = vld [vmem:[#allocation2 + $0x1d8] sm:$0xff] }
  0x4d   :  { %472 = vmatpush.msrb.mxu2 %v121_v55  ;;  %492 = vmatpush.msrb.mxu3 %v122_v56  ;;  %v123_v55 = vld [vmem:[#allocation2 + $0x140] sm:$0xff]  ;;  %v305_v56 = vld [vmem:[#allocation2 + $0x6f0] sm:$0xff] }
  0x4e   :  { %433 = vmatpush.msrb.mxu0 %v103_v57  ;;  %453 = vmatpush.msrb.mxu1 %v104_v58  ;;  %v188_v57 = vld [vmem:[#allocation2 + $0x348] sm:$0xff]  ;;  %v126_v58 = vld [vmem:[#allocation2 + $0x158] sm:$0xff] }
  0x4f   :  { %473 = vmatpush.msrb.mxu2 %v105_v59  ;;  %493 = vmatpush.msrb.mxu3 %v106_v60  ;;  %v107_v59 = vld [vmem:[#allocation2 + $0xc0] sm:$0xff]  ;;  %v289_v60 = vld [vmem:[#allocation2 + $0x670] sm:$0xff] }
  0x50   :  { %434 = vmatpush.msrb.mxu0 %v87_v61  ;;  %454 = vmatpush.msrb.mxu1 %v88_v62  ;;  %v172_v61 = vld [vmem:[#allocation2 + $0x2c8] sm:$0xff]  ;;  %v110_v62 = vld [vmem:[#allocation2 + $0xd8] sm:$0xff] }
  0x51   :  { %474 = vmatpush.msrb.mxu2 %v89_v63  ;;  %435 = vmatmul.f32.vlgmr.msrb.gmra.mxu0 %v3071_v16  ;;  %v91_v63 = vld [vmem:[#allocation2 + $0x40] sm:$0xff] }
  0x52   :  { %455 = vmatmul.f32.vlgmr.msrb.gmra.mxu1 %v3071_v16  ;;  %475 = vmatmul.f32.vlgmr.msrb.gmra.mxu2 %v3071_v16 }
  0x53   :  { %494 = vmatpush.msrb.mxu3 %v90_v0  ;;  %539 = vmatpush.msra.mxu2 %v333_v1  ;;  %v273_v0 = vld [vmem:[#allocation2 + $0x5f0] sm:$0xff]  ;;  %v156_v1 = vld [vmem:[#allocation2 + $0x248] sm:$0xff] }
  0x54   :  { %495 = vmatmul.f32.vlgmr.msrb.gmra.mxu3 %v3071_v16  ;;  %499 = vmatpush.msra.mxu0 %v331_v7  ;;  %v338_v7 = vld [vmem:[#allocation2 + $0x7f8] sm:$0xff] }
  0x55   :  { %540 = vmatpush.msra.mxu2 %v317_v2  ;;  %559 = vmatpush.msra.mxu3 %v334_v8  ;;  %v94_v2 = vld [vmem:[#allocation2 + $0x58] sm:$0xff]  ;;  %v124_v8 = vld [vmem:[#allocation2 + $0x148] sm:$0xff] }
  0x56   :  { %500 = vmatpush.msra.mxu0 %v315_v10  ;;  %519 = vmatpush.msra.mxu1 %v332_v21  ;;  %v225_v10 = vld [vmem:[#allocation2 + $0x470] sm:$0xff]  ;;  %v271_v21 = vld [vmem:[#allocation2 + $0x5e0] sm:$0xff] }
  0x57   :  { %541 = vmatpush.msra.mxu2 %v301_v3  ;;  %560 = vmatpush.msra.mxu3 %v318_v11  ;;  %v257_v3 = vld [vmem:[#allocation2 + $0x570] sm:$0xff]  ;;  %v322_v11 = vld [vmem:[#allocation2 + $0x778] sm:$0xff] }
  0x58   :  { %501 = vmatpush.msra.mxu0 %v299_v13  ;;  %520 = vmatpush.msra.mxu1 %v316_v25  ;;  %v303_v13 = vld [vmem:[#allocation2 + $0x6e0] sm:$0xff] }
  0x59   :  { %542 = vmatpush.msra.mxu2 %v285_v4  ;;  %561 = vmatpush.msra.mxu3 %v302_v14  ;;  %v140_v4 = vld [vmem:[#allocation2 + $0x1c8] sm:$0xff]  ;;  %v209_v14 = vld [vmem:[#allocation2 + $0x3f0] sm:$0xff]  ;;  %v255_v25 = vld [vmem:[#allocation2 + $0x560] sm:$0xff] }
  0x5a   :  { %502 = vmatpush.msra.mxu0 %v283_v17  ;;  %521 = vmatpush.msra.mxu1 %v300_v29  ;;  %v92_v17 = vld [vmem:[#allocation2 + $0x48] sm:$0xff]  ;;  %v239_v29 = vld [vmem:[#allocation2 + $0x4e0] sm:$0xff] }
  0x5b   :  { %543 = vmatpush.msra.mxu2 %v269_v5  ;;  %562 = vmatpush.msra.mxu3 %v286_v18  ;;  %v335_v5 = vld [vmem:[#allocation2 + $0x7e0] sm:$0xff] }
  0x5c   :  { %503 = vmatpush.msra.mxu0 %v267_v20  ;;  %522 = vmatpush.msra.mxu1 %v284_v33  ;;  %v287_v18 = vld [vmem:[#allocation2 + $0x660] sm:$0xff]  ;;  %v290_v20 = vld [vmem:[#allocation2 + $0x678] sm:$0xff] }
  0x5d   :  { %544 = vmatpush.msra.mxu2 %v253_v6  ;;  %563 = vmatpush.msra.mxu3 %v270_v22  ;;  %v241_v6 = vld [vmem:[#allocation2 + $0x4f0] sm:$0xff]  ;;  %v223_v33 = vld [vmem:[#allocation2 + $0x460] sm:$0xff] }
  0x5e   :  { %504 = vmatpush.msra.mxu0 %v251_v24  ;;  %523 = vmatpush.msra.mxu1 %v268_v37  ;;  %v177_v22 = vld [vmem:[#allocation2 + $0x2f0] sm:$0xff]  ;;  %v274_v24 = vld [vmem:[#allocation2 + $0x5f8] sm:$0xff]  ;;  %v207_v37 = vld [vmem:[#allocation2 + $0x3e0] sm:$0xff] }
  0x5f   :  { %545 = vmatpush.msra.mxu2 %v237_v9  ;;  %564 = vmatpush.msra.mxu3 %v254_v26  ;;  %v319_v9 = vld [vmem:[#allocation2 + $0x760] sm:$0xff]  ;;  %v161_v26 = vld [vmem:[#allocation2 + $0x270] sm:$0xff] }
  0x60   :  { %505 = vmatpush.msra.mxu0 %v235_v28  ;;  %524 = vmatpush.msra.mxu1 %v252_v41  ;;  %v258_v28 = vld [vmem:[#allocation2 + $0x578] sm:$0xff]  ;;  %v191_v41 = vld [vmem:[#allocation2 + $0x360] sm:$0xff] }
  0x61   :  { %546 = vmatpush.msra.mxu2 %v221_v12  ;;  %565 = vmatpush.msra.mxu3 %v238_v30  ;;  %v108_v12 = vld [vmem:[#allocation2 + $0xc8] sm:$0xff]  ;;  %v145_v30 = vld [vmem:[#allocation2 + $0x1f0] sm:$0xff] }
  0x62   :  { %506 = vmatpush.msra.mxu0 %v219_v32  ;;  %525 = vmatpush.msra.mxu1 %v236_v45  ;;  %v242_v32 = vld [vmem:[#allocation2 + $0x4f8] sm:$0xff]  ;;  %v175_v45 = vld [vmem:[#allocation2 + $0x2e0] sm:$0xff] }
  0x63   :  { %547 = vmatpush.msra.mxu2 %v205_v15  ;;  %566 = vmatpush.msra.mxu3 %v222_v34  ;;  %v306_v15 = vld [vmem:[#allocation2 + $0x6f8] sm:$0xff]  ;;  %v129_v34 = vld [vmem:[#allocation2 + $0x170] sm:$0xff] }
  0x64   :  { %507 = vmatpush.msra.mxu0 %v203_v36  ;;  %526 = vmatpush.msra.mxu1 %v220_v49  ;;  %v226_v36 = vld [vmem:[#allocation2 + $0x478] sm:$0xff]  ;;  %v224_v49 = vld [vmem:[#allocation2 + $0x468] sm:$0xff] }
  0x65   :  { %548 = vmatpush.msra.mxu2 %v189_v19  ;;  %567 = vmatpush.msra.mxu3 %v206_v38  ;;  %v193_v19 = vld [vmem:[#allocation2 + $0x370] sm:$0xff] }
  0x66   :  { %508 = vmatpush.msra.mxu0 %v187_v40  ;;  %527 = vmatpush.msra.mxu1 %v204_v53  ;;  %v113_v38 = vld [vmem:[#allocation2 + $0xf0] sm:$0xff]  ;;  %v210_v40 = vld [vmem:[#allocation2 + $0x3f8] sm:$0xff] }
  0x67   :  { %549 = vmatpush.msra.mxu2 %v173_v23  ;;  %568 = vmatpush.msra.mxu3 %v190_v42  ;;  %v336_v23 = vld [vmem:[#allocation2 + $0x7e8] sm:$0xff]  ;;  %v97_v42 = vld [vmem:[#allocation2 + $0x70] sm:$0xff]  ;;  %v146_v53 = vld [vmem:[#allocation2 + $0x1f8] sm:$0xff] }
  0x68   :  { %509 = vmatpush.msra.mxu0 %v171_v44  ;;  %528 = vmatpush.msra.mxu1 %v188_v57  ;;  %v194_v44 = vld [vmem:[#allocation2 + $0x378] sm:$0xff]  ;;  %v111_v57 = vld [vmem:[#allocation2 + $0xe0] sm:$0xff] }
  0x69   :  { %550 = vmatpush.msra.mxu2 %v157_v27  ;;  %569 = vmatpush.msra.mxu3 %v174_v46  ;;  %v320_v27 = vld [vmem:[#allocation2 + $0x768] sm:$0xff] }
  0x6a   :  { %510 = vmatpush.msra.mxu0 %v155_v48  ;;  %529 = vmatpush.msra.mxu1 %v172_v61  ;;  %v240_v46 = vld [vmem:[#allocation2 + $0x4e8] sm:$0xff]  ;;  %v159_v48 = vld [vmem:[#allocation2 + $0x260] sm:$0xff] }
  0x6b   :  { %551 = vmatpush.msra.mxu2 %v141_v31  ;;  %570 = vmatpush.msra.mxu3 %v158_v50  ;;  %v304_v31 = vld [vmem:[#allocation2 + $0x6e8] sm:$0xff]  ;;  %v162_v50 = vld [vmem:[#allocation2 + $0x278] sm:$0xff] }
  0x6c   :  { %511 = vmatpush.msra.mxu0 %v139_v52  ;;  %530 = vmatpush.msra.mxu1 %v156_v1  ;;  %v208_v52 = vld [vmem:[#allocation2 + $0x3e8] sm:$0xff] }
  0x6d   :  { %552 = vmatpush.msra.mxu2 %v125_v35  ;;  %571 = vmatpush.msra.mxu3 %v142_v54  ;;  %v288_v35 = vld [vmem:[#allocation2 + $0x668] sm:$0xff]  ;;  %v127_v54 = vld [vmem:[#allocation2 + $0x160] sm:$0xff] }
  0x6e   :  { %512 = vmatpush.msra.mxu0 %v123_v55  ;;  %531 = vmatpush.msra.mxu1 %v140_v4  ;;  %v192_v55 = vld [vmem:[#allocation2 + $0x368] sm:$0xff] }
  0x6f   :  { %553 = vmatpush.msra.mxu2 %v109_v39  ;;  %572 = vmatpush.msra.mxu3 %v126_v58  ;;  %v272_v39 = vld [vmem:[#allocation2 + $0x5e8] sm:$0xff] }
  0x70   :  { %513 = vmatpush.msra.mxu0 %v107_v59  ;;  %532 = vmatpush.msra.mxu1 %v124_v8  ;;  %v176_v58 = vld [vmem:[#allocation2 + $0x2e8] sm:$0xff]  ;;  %v114_v59 = vld [vmem:[#allocation2 + $0xf8] sm:$0xff] }
  0x71   :  { %554 = vmatpush.msra.mxu2 %v93_v43  ;;  %573 = vmatpush.msra.mxu3 %v110_v62  ;;  %v256_v43 = vld [vmem:[#allocation2 + $0x568] sm:$0xff]  ;;  %v98_v62 = vld [vmem:[#allocation2 + $0x78] sm:$0xff] }
  0x72   :  { %555 = vmatmul.f32.vlgmr.msra.gmra.mxu2 %v3071_v16  ;;  %514 = vmatpush.msra.mxu0 %v91_v63  ;;  %v160_v61 = vld [vmem:[#allocation2 + $0x268] sm:$0xff] }
  0x73   :  { %619 = vmatpush.msrb.mxu2 %v337_v47  ;;  %574 = vmatpush.msra.mxu3 %v94_v2  ;;  %v178_v47 = vld [vmem:[#allocation2 + $0x2f8] sm:$0xff]  ;;  %v144_v63 = vld [vmem:[#allocation2 + $0x1e8] sm:$0xff] }
  0x74   :  { %515 = vmatmul.f32.vlgmr.msra.gmra.mxu0 %v3071_v16  ;;  %575 = vmatmul.f32.vlgmr.msra.gmra.mxu3 %v3071_v16  ;;  %v112_v1 = vld [vmem:[#allocation2 + $0xe8] sm:$0xff] }
  0x75   :  { %620 = vmatpush.msrb.mxu2 %v321_v51  ;;  %579 = vmatpush.msrb.mxu0 %v335_v5  ;;  %v143_v51 = vld [vmem:[#allocation2 + $0x1e0] sm:$0xff]  ;;  %v96_v2 = vld [vmem:[#allocation2 + $0x68] sm:$0xff] }
  0x76   :  { %639 = vmatpush.msrb.mxu3 %v338_v7  ;;  %533 = vmatpush.msra.mxu1 %v108_v12  ;;  %v660_v5 = vld [vmem:[%s3819_s3 + $0x8] sm:$0xff] }
  0x77   :  { %621 = vmatpush.msrb.mxu2 %v305_v56  ;;  %580 = vmatpush.msrb.mxu0 %v319_v9  ;;  %v130_v56 = vld [vmem:[#allocation2 + $0x178] sm:$0xff]  ;;  %v2742_v9 = vld [vmem:[%s3819_s3 + $0x20] sm:$0xff] }
  0x78   :  { %640 = vmatpush.msrb.mxu3 %v322_v11  ;;  %534 = vmatpush.msra.mxu1 %v92_v17  ;;  %v2743_v11 = vld [vmem:[%s3819_s3 + $0x28] sm:$0xff]  ;;  %v2744_v17 = vld [vmem:[%s3819_s3 + $0x30] sm:$0xff] }
  0x79   :  { %622 = vmatpush.msrb.mxu2 %v289_v60  ;;  %581 = vmatpush.msrb.mxu0 %v303_v13  ;;  %v95_v60 = vld [vmem:[#allocation2 + $0x60] sm:$0xff]  ;;  %v662_v13 = vld [vmem:[%s3819_s3 + $0x18] sm:$0xff] }
  0x7a   :  { %641 = vmatpush.msrb.mxu3 %v306_v15  ;;  %535 = vmatmul.f32.vlgmr.msra.gmra.mxu1 %v3071_v16 }
  0x7b   :  { %623 = vmatpush.msrb.mxu2 %v273_v0  ;;  %582 = vmatpush.msrb.mxu0 %v287_v18  ;;  %v128_v0 = vld [vmem:[#allocation2 + $0x168] sm:$0xff] }
  0x7c   :  { %642 = vmatpush.msrb.mxu3 %v290_v20  ;;  %599 = vmatpush.msrb.mxu1 %v336_v23 }
  0x7d   :  { %624 = vmatpush.msrb.mxu2 %v257_v3  ;;  %583 = vmatpush.msrb.mxu0 %v271_v21  ;;  %v659_v3 = vld [vmem:[%s3819_s3] sm:$0xff] }
  0x7e   :  { %643 = vmatpush.msrb.mxu3 %v274_v24  ;;  %600 = vmatpush.msrb.mxu1 %v320_v27  ;;  %v2798_v27 = vld [vmem:[%s3819_s3 + $0x60] sm:$0xff] }
  0x7f   :  { %625 = vmatpush.msrb.mxu2 %v241_v6  ;;  %584 = vmatpush.msrb.mxu0 %v255_v25  ;;  %v2780_v25 = vld [vmem:[%s3819_s3 + $0x50] sm:$0xff] }
  0x80   :  { %644 = vmatpush.msrb.mxu3 %v258_v28  ;;  %601 = vmatpush.msrb.mxu1 %v304_v31 }
  0x81   :  { %626 = vmatpush.msrb.mxu2 %v225_v10  ;;  %585 = vmatpush.msrb.mxu0 %v239_v29 }
  0x82   :  { %645 = vmatpush.msrb.mxu3 %v242_v32  ;;  %602 = vmatpush.msrb.mxu1 %v288_v35 }
  0x83   :  { %627 = vmatpush.msrb.mxu2 %v209_v14  ;;  %586 = vmatpush.msrb.mxu0 %v223_v33  ;;  %v2745_v14 = vld [vmem:[%s3819_s3 + $0x38] sm:$0xff]  ;;  %v2800_v33 = vld [vmem:[%s3819_s3 + $0x70] sm:$0xff] }
  0x84   :  { %646 = vmatpush.msrb.mxu3 %v226_v36  ;;  %603 = vmatpush.msrb.mxu1 %v272_v39 }
  0x85   :  { %628 = vmatpush.msrb.mxu2 %v193_v19  ;;  %587 = vmatpush.msrb.mxu0 %v207_v37  ;;  %v2778_v19 = vld [vmem:[%s3819_s3 + $0x40] sm:$0xff] }
  0x86   :  { %647 = vmatpush.msrb.mxu3 %v210_v40  ;;  %604 = vmatpush.msrb.mxu1 %v256_v43 }
  0x87   :  { %629 = vmatpush.msrb.mxu2 %v177_v22  ;;  %588 = vmatpush.msrb.mxu0 %v191_v41  ;;  %v2779_v22 = vld [vmem:[%s3819_s3 + $0x48] sm:$0xff] }
  0x88   :  { %648 = vmatpush.msrb.mxu3 %v194_v44  ;;  %605 = vmatpush.msrb.mxu1 %v240_v46 }
  0x89   :  { %630 = vmatpush.msrb.mxu2 %v161_v26  ;;  %589 = vmatpush.msrb.mxu0 %v175_v45  ;;  %v2781_v26 = vld [vmem:[%s3819_s3 + $0x58] sm:$0xff]  ;;  %v1418_v45 = vld [vmem:[#allocation4 + $0x2f0] sm:$0xff] }
  0x8a   :  { %649 = vmatpush.msrb.mxu3 %v178_v47  ;;  %606 = vmatpush.msrb.mxu1 %v224_v49  ;;  %v1414_v49 = vld [vmem:[#allocation4 + $0x2d0] sm:$0xff] }
  0x8b   :  { %631 = vmatpush.msrb.mxu2 %v145_v30  ;;  %590 = vmatpush.msrb.mxu0 %v159_v48  ;;  %v2799_v30 = vld [vmem:[%s3819_s3 + $0x68] sm:$0xff]  ;;  %v1416_v48 = vld [vmem:[#allocation4 + $0x2e0] sm:$0xff] }
  0x8c   :  { %650 = vmatpush.msrb.mxu3 %v162_v50  ;;  %607 = vmatpush.msrb.mxu1 %v208_v52  ;;  %v1412_v52 = vld [vmem:[#allocation4 + $0x2c0] sm:$0xff] }
  0x8d   :  { %632 = vmatpush.msrb.mxu2 %v129_v34  ;;  %591 = vmatpush.msrb.mxu0 %v143_v51  ;;  %v2801_v34 = vld [vmem:[%s3819_s3 + $0x78] sm:$0xff] }
  0x8e   :  { %651 = vmatpush.msrb.mxu3 %v146_v53  ;;  %608 = vmatpush.msrb.mxu1 %v192_v55  ;;  %v1410_v53 = vld [vmem:[#allocation4 + $0x2b0] sm:$0xff] }
  0x8f   :  { %633 = vmatpush.msrb.mxu2 %v113_v38  ;;  %592 = vmatpush.msrb.mxu0 %v127_v54 }
  0x90   :  { %652 = vmatpush.msrb.mxu3 %v130_v56  ;;  %609 = vmatpush.msrb.mxu1 %v176_v58  ;;  %v1408_v56 = vld [vmem:[#allocation4 + $0x2a0] sm:$0xff] }
  0x91   :  { %634 = vmatpush.msrb.mxu2 %v97_v42  ;;  %593 = vmatpush.msrb.mxu0 %v111_v57  ;;  %v1406_v57 = vld [vmem:[#allocation4 + $0x290] sm:$0xff] }
  0x92   :  { %635 = vmatmul.f32.vlgmr.msrb.gmra.mxu2 %v3071_v16  ;;  %653 = vmatpush.msrb.mxu3 %v114_v59 }
  0x93   :  { %594 = vmatpush.msrb.mxu0 %v95_v60  ;;  %610 = vmatpush.msrb.mxu1 %v160_v61  ;;  %v1404_v60 = vld [vmem:[#allocation4 + $0x280] sm:$0xff]  ;;  %v1402_v61 = vld [vmem:[#allocation4 + $0x270] sm:$0xff] }
  0x94   :  { %654 = vmatpush.msrb.mxu3 %v98_v62  ;;  %595 = vmatmul.f32.vlgmr.msrb.gmra.mxu0 %v3071_v16 }
  0x95   :  { %655 = vmatmul.f32.vlgmr.msrb.gmra.mxu3 %v3071_v16  ;;  %611 = vmatpush.msrb.mxu1 %v144_v63 }
  0x97   :  { %612 = vmatpush.msrb.mxu1 %v128_v0  ;;  %v1400_v0 = vld [vmem:[#allocation4 + $0x260] sm:$0xff] }
  0x99   :  { %613 = vmatpush.msrb.mxu1 %v112_v1  ;;  %v1398_v1 = vld [vmem:[#allocation4 + $0x250] sm:$0xff] }
  0x9b   :  { %614 = vmatpush.msrb.mxu1 %v96_v2 }
  0x9c   :  { %615 = vmatmul.f32.vlgmr.msrb.gmra.mxu1 %v3071_v16  ;;  %v3100_v16 = vld [vmem:[%s3819_s3 + $0x10] sm:$0xff] }
  0xbb   :  { %v396_v4 = vpop.f32.mrf.mxu2 }
  0xbc   :  { %882 = vmatpush.msra.mxu2 %v396_v4  ;;  %v1396_v4 = vld [vmem:[#allocation4 + $0x240] sm:$0xff] }
  0xbd   :  { %2770 = vmatmul.msk.f32.vlgmr.msra.gmra.mxu2 %vm668_vm0, %v659_v3 }
  0xc5   :  { %v356_v6 = vpop.f32.mrf.mxu0  ;;  %v376_v7 = vpop.f32.mrf.mxu1  ;;  %2771 = vmatmul.msk.f32.gmra.mxu2 %vm668_vm0, %v660_v5 }
  0xcd   :  { %v416_v8 = vpop.f32.mrf.mxu3  ;;  %2772 = vmatmul.msk.f32.gmra.mxu2 %vm668_vm0, %v3100_v16 }
  0xce   :  { %v436_v10 = vpop.f32.mrf.mxu0 }
  0xcf   :  { %v456_v12 = vpop.f32.mrf.mxu1  ;;  %696 = vmatpush.msra.mxu0 %v436_v10 }
  0xd0   :  { %2886 = vmatpush.msra.mxu1 %v456_v12  ;;  %2746 = vmatmul.msk.f32.vlgmr.msra.gmra.mxu0 %vm668_vm0, %v2742_v9 }
  0xd1   :  { %2751 = vmatmul.msk.f32.vlgmr.msra.gmra.mxu1 %vm668_vm0, %v2743_v11  ;;  %725 = vmatpush.msrb.mxu0 %v456_v12  ;;  %v1388_v12 = vld [vmem:[#allocation4 + $0x200] sm:$0xff] }
  0xd3   :  { %824 = vmatpush.msra.mxu0 %v356_v6 }
  0xd5   :  { %v476_v15 = vpop.f32.mrf.mxu2  ;;  %2773 = vmatmul.msk.f32.gmra.mxu2 %vm668_vm0, %v662_v13 }
  0xd6   :  { %754 = vmatpush.msrb.mxu1 %v476_v15  ;;  %2887 = vmatpush.msra.mxu3 %v476_v15 }
  0xd7   :  { %v496_v18 = vpop.f32.mrf.mxu3  ;;  %2757 = vmatmul.msk.f32.vlgmr.msra.gmra.mxu3 %vm668_vm0, %v2745_v14 }
  0xd8   :  { %853 = vmatpush.msra.mxu1 %v376_v7  ;;  %783 = vmatpush.msrb.mxu3 %v496_v18 }
  0xd9   :  { %2747 = vmatmul.msk.f32.gmra.mxu0 %vm668_vm0, %v2743_v11  ;;  %2752 = vmatmul.msk.f32.gmra.mxu1 %vm668_vm0, %v2744_v17 }
  0xda   :  { %911 = vmatpush.msra.mxu3 %v416_v8  ;;  %v1390_v8 = vld [vmem:[#allocation4 + $0x210] sm:$0xff] }
  0xdf   :  { %2758 = vmatmul.msk.f32.vlgmr.msrb.gmra.mxu3 %vm668_vm0, %v2742_v9 }
  0xe1   :  { %2748 = vmatmul.msk.f32.gmra.mxu0 %vm668_vm0, %v2744_v17  ;;  %2753 = vmatmul.msk.f32.gmra.mxu1 %vm668_vm0, %v2745_v14 }
  0xe7   :  { %2759 = vmatmul.msk.f32.gmra.mxu3 %vm668_vm0, %v2743_v11 }
  0xe9   :  { %2749 = vmatmul.msk.f32.gmra.mxu0 %vm668_vm0, %v2745_v14  ;;  %2754 = vmatmul.msk.f32.vlgmr.msrb.gmra.mxu1 %vm668_vm0, %v2742_v9 }
  0xef   :  { %2760 = vmatmul.msk.f32.gmra.mxu3 %vm668_vm0, %v2744_v17 }
  0xf1   :  { %2750 = vmatmul.msk.f32.vlgmr.msrb.gmra.mxu0 %vm668_vm0, %v2742_v9  ;;  %2755 = vmatmul.msk.f32.gmra.mxu1 %vm668_vm0, %v2743_v11  ;;  %v516_v21 = vpop.f32.mrf.mxu0  ;;  %v1354_v9 = vld [vmem:[#allocation4 + $0xf0] sm:$0xff] }
  0xf2   :  { %957 = vmatpush.msrb.mxu0 %v516_v21  ;;  %v1415_v21 = vld [vmem:[#allocation4 + $0x2d8] sm:$0xff] }
  0xf5   :  { %v556_v20 = vpop.f32.mrf.mxu2 }
  0xf6   :  { %1015 = vmatpush.msrb.mxu2 %v556_v20  ;;  %v1348_v20 = vld [vmem:[#allocation4 + $0xc0] sm:$0xff] }
  0xf7   :  { %2790 = vmatmul.msk.f32.vlgmr.msrb.gmra.mxu2 %vm668_vm0, %v2778_v19  ;;  %2761 = vmatmul.msk.f32.gmra.mxu3 %vm668_vm0, %v2745_v14  ;;  %v576_v23 = vpop.f32.mrf.mxu3  ;;  %v536_v24 = vpop.f32.mrf.mxu1  ;;  %v1419_v14 = vld [vmem:[#allocation4 + $0x2f8] sm:$0xff] }
  0xf8   :  { %1044 = vmatpush.msrb.mxu3 %v576_v23  ;;  %986 = vmatpush.msrb.mxu1 %v536_v24  ;;  %v1386_v23 = vld [vmem:[#allocation4 + $0x1f0] sm:$0xff] }
  0xf9   :  { %2762 = vmatmul.msk.f32.vlgmr.msra.gmra.mxu0 %vm668_vm0, %v659_v3  ;;  %2756 = vmatmul.msk.f32.gmra.mxu1 %vm668_vm0, %v2744_v17  ;;  %v1350_v17 = vld [vmem:[#allocation4 + $0xd0] sm:$0xff] }
  0xff   :  { %2791 = vmatmul.msk.f32.gmra.mxu2 %vm668_vm0, %v2779_v22  ;;  %2774 = vmatmul.msk.f32.vlgmr.msra.gmra.mxu3 %vm668_vm0, %v659_v3 }
 0x101   :  { %2763 = vmatmul.msk.f32.gmra.mxu0 %vm668_vm0, %v660_v5  ;;  %2766 = vmatmul.msk.f32.vlgmr.msra.gmra.mxu1 %vm668_vm0, %v659_v3 }
 0x107   :  { %2792 = vmatmul.msk.f32.gmra.mxu2 %vm668_vm0, %v2780_v25  ;;  %2775 = vmatmul.msk.f32.gmra.mxu3 %vm668_vm0, %v660_v5 }
 0x109   :  { %2764 = vmatmul.msk.f32.gmra.mxu0 %vm668_vm0, %v3100_v16  ;;  %2767 = vmatmul.msk.f32.gmra.mxu1 %vm668_vm0, %v660_v5  ;;  %v1394_v5 = vld [vmem:[#allocation4 + $0x230] sm:$0xff] }
 0x10f   :  { %2793 = vmatmul.msk.f32.gmra.mxu2 %vm668_vm0, %v2781_v26  ;;  %2776 = vmatmul.msk.f32.gmra.mxu3 %vm668_vm0, %v3100_v16 }
 0x111   :  { %2765 = vmatmul.msk.f32.gmra.mxu0 %vm668_vm0, %v662_v13  ;;  %2768 = vmatmul.msk.f32.gmra.mxu1 %vm668_vm0, %v3100_v16  ;;  %v596_v29 = vpop.f32.mrf.mxu0  ;;  %v1392_v16 = vld [vmem:[#allocation4 + $0x220] sm:$0xff] }
 0x112   :  { %1106 = vmatpush.msra.mxu0 %v596_v29  ;;  %v1411_v29 = vld [vmem:[#allocation4 + $0x2b8] sm:$0xff] }
 0x115   :  { %v636_v28 = vpop.f32.mrf.mxu2 }
 0x116   :  { %1164 = vmatpush.msra.mxu2 %v636_v28  ;;  %v1384_v28 = vld [vmem:[#allocation4 + $0x1e0] sm:$0xff] }
 0x117   :  { %2810 = vmatmul.msk.f32.vlgmr.msra.gmra.mxu2 %vm668_vm0, %v2798_v27  ;;  %2777 = vmatmul.msk.f32.gmra.mxu3 %vm668_vm0, %v662_v13 }
 0x118   :  { %v656_v31 = vpop.f32.mrf.mxu3  ;;  %1510 = vmatpush.msrb.mxu2 %v1418_v45  ;;  %v1409_v45 = vld [vmem:[#allocation4 + $0x2a8] sm:$0xff] }
 0x119   :  { %2782 = vmatmul.msk.f32.vlgmr.msrb.gmra.mxu0 %vm668_vm0, %v2778_v19  ;;  %2769 = vmatmul.msk.f32.gmra.mxu1 %vm668_vm0, %v662_v13  ;;  %v616_v32 = vpop.f32.mrf.mxu1  ;;  %v1352_v13 = vld [vmem:[#allocation4 + $0xe0] sm:$0xff] }
 0x11a   :  { %1193 = vmatpush.msra.mxu3 %v656_v31  ;;  %1135 = vmatpush.msra.mxu1 %v616_v32  ;;  %v1342_v31 = vld [vmem:[#allocation4 + $0x90] sm:$0xff] }
 0x11b   :  { %1511 = vmatpush.msrb.mxu2 %v1416_v48  ;;  %1452 = vmatpush.msrb.mxu0 %v1354_v9  ;;  %v1382_v32 = vld [vmem:[#allocation4 + $0x1d0] sm:$0xff]  ;;  %v1340_v48 = vld [vmem:[#allocation4 + $0x80] sm:$0xff] }
 0x11d   :  { %1512 = vmatpush.msrb.mxu2 %v1414_v49  ;;  %1453 = vmatpush.msrb.mxu0 %v1352_v13  ;;  %v1380_v49 = vld [vmem:[#allocation4 + $0x1c0] sm:$0xff]  ;;  %v1374_v13 = vld [vmem:[#allocation4 + $0x190] sm:$0xff] }
 0x11f   :  { %2811 = vmatmul.msk.f32.gmra.mxu2 %vm668_vm0, %v2799_v30  ;;  %2794 = vmatmul.msk.f32.vlgmr.msrb.gmra.mxu3 %vm668_vm0, %v2778_v19 }
 0x120   :  { %1513 = vmatpush.msrb.mxu2 %v1412_v52  ;;  %1454 = vmatpush.msrb.mxu0 %v1350_v17  ;;  %v1448_v52 = vld [vmem:[#allocation4 + $0x3e0] sm:$0xff] }
 0x121   :  { %2783 = vmatmul.msk.f32.gmra.mxu0 %vm668_vm0, %v2779_v22  ;;  %2786 = vmatmul.msk.f32.vlgmr.msrb.gmra.mxu1 %vm668_vm0, %v2778_v19  ;;  %v1417_v19 = vld [vmem:[#allocation4 + $0x2e8] sm:$0xff] }
 0x122   :  { %1514 = vmatpush.msrb.mxu2 %v1410_v53  ;;  %1455 = vmatpush.msrb.mxu0 %v1348_v20  ;;  %v1407_v53 = vld [vmem:[#allocation4 + $0x298] sm:$0xff] }
 0x123   :  { %1481 = vmatpush.msrb.mxu1 %v1386_v23  ;;  %v1440_v23 = vld [vmem:[#allocation4 + $0x3a0] sm:$0xff] }
 0x124   :  { %1515 = vmatpush.msrb.mxu2 %v1408_v56  ;;  %v1338_v56 = vld [vmem:[#allocation4 + $0x70] sm:$0xff] }
 0x125   :  { %1482 = vmatpush.msrb.mxu1 %v1384_v28 }
 0x126   :  { %1516 = vmatpush.msrb.mxu2 %v1406_v57  ;;  %v1378_v57 = vld [vmem:[#allocation4 + $0x1b0] sm:$0xff] }
 0x127   :  { %2812 = vmatmul.msk.f32.gmra.mxu2 %vm668_vm0, %v2800_v33  ;;  %2795 = vmatmul.msk.f32.gmra.mxu3 %vm668_vm0, %v2779_v22 }
 0x128   :  { %1517 = vmatpush.msrb.mxu2 %v1404_v60  ;;  %1483 = vmatpush.msrb.mxu1 %v1382_v32  ;;  %v1446_v60 = vld [vmem:[#allocation4 + $0x3d0] sm:$0xff] }
 0x129   :  { %2784 = vmatmul.msk.f32.gmra.mxu0 %vm668_vm0, %v2780_v25  ;;  %2787 = vmatmul.msk.f32.gmra.mxu1 %vm668_vm0, %v2779_v22  ;;  %v1346_v22 = vld [vmem:[#allocation4 + $0xb0] sm:$0xff] }
 0x12a   :  { %1518 = vmatpush.msrb.mxu2 %v1402_v61  ;;  %1456 = vmatpush.msrb.mxu0 %v1346_v22  ;;  %v1372_v22 = vld [vmem:[#allocation4 + $0x180] sm:$0xff] }
 0x12b   :  { %1484 = vmatpush.msrb.mxu1 %v1380_v49  ;;  %v1368_v49 = vld [vmem:[#allocation4 + $0x160] sm:$0xff] }
 0x12c   :  { %1519 = vmatpush.msrb.mxu2 %v1400_v0 }
 0x12d   :  { %1485 = vmatpush.msrb.mxu1 %v1378_v57  ;;  %v1326_v57 = vld [vmem:[#allocation4 + $0x10] sm:$0xff] }
 0x12e   :  { %1520 = vmatpush.msrb.mxu2 %v1398_v1  ;;  %v1405_v1 = vld [vmem:[#allocation4 + $0x288] sm:$0xff] }
 0x12f   :  { %2813 = vmatmul.msk.f32.gmra.mxu2 %vm668_vm0, %v2801_v34  ;;  %2796 = vmatmul.msk.f32.gmra.mxu3 %vm668_vm0, %v2780_v25 }
 0x130   :  { %1521 = vmatpush.msrb.mxu2 %v1396_v4  ;;  %v1336_v4 = vld [vmem:[#allocation4 + $0x60] sm:$0xff] }
 0x131   :  { %2785 = vmatmul.msk.f32.gmra.mxu0 %vm668_vm0, %v2781_v26  ;;  %2788 = vmatmul.msk.f32.gmra.mxu1 %vm668_vm0, %v2780_v25 }
 0x132   :  { %1522 = vmatpush.msrb.mxu2 %v1394_v5  ;;  %v1376_v5 = vld [vmem:[#allocation4 + $0x1a0] sm:$0xff] }
 0x133   :  { %1486 = vmatpush.msrb.mxu1 %v1376_v5  ;;  %v1434_v5 = vld [vmem:[#allocation4 + $0x370] sm:$0xff] }
 0x134   :  { %1523 = vmatpush.msrb.mxu2 %v1392_v16  ;;  %v1444_v16 = vld [vmem:[#allocation4 + $0x3c0] sm:$0xff] }
 0x135   :  { %1487 = vmatpush.msrb.mxu1 %v1374_v13 }
 0x136   :  { %1524 = vmatpush.msrb.mxu2 %v1390_v8  ;;  %v1403_v8 = vld [vmem:[#allocation4 + $0x278] sm:$0xff] }
 0x137   :  { %2797 = vmatmul.msk.f32.gmra.mxu3 %vm668_vm0, %v2781_v26  ;;  %1488 = vmatpush.msrb.mxu1 %v1372_v22 }
 0x138   :  { %1525 = vmatpush.msrb.mxu2 %v1388_v12  ;;  %v1334_v12 = vld [vmem:[#allocation4 + $0x50] sm:$0xff] }
 0x139   :  { %2802 = vmatmul.msk.f32.vlgmr.msra.gmra.mxu0 %vm668_vm0, %v2798_v27  ;;  %2789 = vmatmul.msk.f32.gmra.mxu1 %vm668_vm0, %v2781_v26  ;;  %v1413_v26 = vld [vmem:[#allocation4 + $0x2c8] sm:$0xff] }
 0x13a   :  { %1626 = vmatpush.msra.mxu2 %v1419_v14  ;;  %v1442_v14 = vld [vmem:[#allocation4 + $0x3b0] sm:$0xff] }
 0x13c   :  { %1627 = vmatpush.msra.mxu2 %v1417_v19  ;;  %v1401_v19 = vld [vmem:[#allocation4 + $0x268] sm:$0xff] }
 0x13e   :  { %1628 = vmatpush.msra.mxu2 %v1415_v21  ;;  %v1332_v21 = vld [vmem:[#allocation4 + $0x40] sm:$0xff] }
 0x13f   :  { %2814 = vmatmul.msk.f32.vlgmr.msra.gmra.mxu3 %vm668_vm0, %v2798_v27 }
 0x140   :  { %v3209_v37 = vpop.f32.mrf.mxu2  ;;  %1629 = vmatpush.msra.mxu2 %v1413_v26  ;;  %v3284_v26 = vld [vmem:[%s3817_s1] ss:$8 sm:$0xf] }
 0x141   :  { %2803 = vmatmul.msk.f32.gmra.mxu0 %vm668_vm0, %v2799_v30  ;;  %2806 = vmatmul.msk.f32.vlgmr.msra.gmra.mxu1 %vm668_vm0, %v2798_v27  ;;  %v1344_v27 = vld [vmem:[#allocation4 + $0xa0] sm:$0xff] }
 0x142   :  { %1457 = vmatpush.msrb.mxu0 %v1344_v27  ;;  %1630 = vmatpush.msra.mxu2 %v1411_v29  ;;  %v1399_v27 = vld [vmem:[#allocation4 + $0x258] sm:$0xff]  ;;  %v1330_v29 = vld [vmem:[#allocation4 + $0x30] sm:$0xff] }
 0x144   :  { %1458 = vmatpush.msrb.mxu0 %v1342_v31  ;;  %1631 = vmatpush.msra.mxu2 %v1409_v45  ;;  %v1370_v31 = vld [vmem:[#allocation4 + $0x170] sm:$0xff]  ;;  %v1397_v45 = vld [vmem:[#allocation4 + $0x248] sm:$0xff] }
 0x145   :  { %1489 = vmatpush.msrb.mxu1 %v1370_v31  ;;  %v1355_v31 = vld [vmem:[#allocation4 + $0xf8] sm:$0xff] }
 0x146   :  { %1459 = vmatpush.msrb.mxu0 %v1340_v48  ;;  %1632 = vmatpush.msra.mxu2 %v1407_v53  ;;  %v3295_v53 = vperm.slane %v3284_v26, 2 }
 0x147   :  { %2815 = vmatmul.msk.f32.gmra.mxu3 %vm668_vm0, %v2799_v30  ;;  %1490 = vmatpush.msrb.mxu1 %v1368_v49 }
 0x148   :  { %v3221_v42 = vpop.f32.mrf.mxu2  ;;  %1460 = vmatpush.msrb.mxu0 %v1338_v56  ;;  %1633 = vmatpush.msra.mxu2 %v1405_v1  ;;  %v1395_v56 = vld [vmem:[#allocation4 + $0x238] sm:$0xff] }
 0x149   :  { %2804 = vmatmul.msk.f32.gmra.mxu0 %vm668_vm0, %v2800_v33  ;;  %2807 = vmatmul.msk.f32.gmra.mxu1 %vm668_vm0, %v2799_v30 }
 0x14a   :  { %1461 = vmatpush.msrb.mxu0 %v1336_v4  ;;  %1634 = vmatpush.msra.mxu2 %v1403_v8 }
 0x14c   :  { %1462 = vmatpush.msrb.mxu0 %v1334_v12  ;;  %1635 = vmatpush.msra.mxu2 %v1401_v19  ;;  %v1393_v12 = vld [vmem:[#allocation4 + $0x228] sm:$0xff]  ;;  %v1324_v19 = vld [vmem:[#allocation4] sm:$0xff] }
 0x14d   :  { %v3202_v35 = vpop.f32.mrf.mxu0 }
 0x14e   :  { %v3204_v36 = vpop.f32.mrf.mxu1  ;;  %1463 = vmatpush.msrb.mxu0 %v1332_v21  ;;  %1636 = vmatpush.msra.mxu2 %v1399_v27  ;;  %v1432_v21 = vld [vmem:[#allocation4 + $0x360] sm:$0xff] }
 0x14f   :  { %2816 = vmatmul.msk.f32.gmra.mxu3 %vm668_vm0, %v2800_v33 }
 0x150   :  { %v3231_v50 = vpop.f32.mrf.mxu2  ;;  %1464 = vmatpush.msrb.mxu0 %v1330_v29  ;;  %1637 = vmatpush.msra.mxu2 %v1397_v45  ;;  %v1430_v29 = vld [vmem:[#allocation4 + $0x350] sm:$0xff] }
 0x151   :  { %2805 = vmatmul.msk.f32.gmra.mxu0 %vm668_vm0, %v2801_v34  ;;  %2808 = vmatmul.msk.f32.gmra.mxu1 %vm668_vm0, %v2800_v33  ;;  %v1450_v33 = vld [vmem:[#allocation4 + $0x3f0] sm:$0xff] }
 0x152   :  { %1539 = vmatpush.msrb.mxu3 %v1450_v33  ;;  %v3292_v33 = vld [vmem:[%s3817_s1 + $0x1] ss:$8 sm:$0xf]  ;;  %1638 = vmatpush.msra.mxu2 %v1395_v56 }
 0x153   :  { %v3302_v8 = vperm.slane %v3292_v33, 2  ;;  %v1358_v56 = vld [vmem:[#allocation4 + $0x110] sm:$0xff] }
 0x154   :  { %1540 = vmatpush.msrb.mxu3 %v1448_v52  ;;  %v1436_v52 = vld [vmem:[#allocation4 + $0x380] sm:$0xff]  ;;  %1639 = vmatpush.msra.mxu2 %v1393_v12 }
 0x156   :  { %v3211_v38 = vpop.f32.mrf.mxu0  ;;  %v3213_v39 = vpop.f32.mrf.mxu1  ;;  %1541 = vmatpush.msrb.mxu3 %v1446_v60  ;;  %v1366_v60 = vld [vmem:[#allocation4 + $0x150] sm:$0xff] }
 0x157   :  { %2817 = vmatmul.msk.f32.gmra.mxu3 %vm668_vm0, %v2801_v34  ;;  %1491 = vmatpush.msrb.mxu1 %v1366_v60  ;;  %v1351_v60 = vld [vmem:[#allocation4 + $0xd8] sm:$0xff] }
 0x158   :  { %v3239_v58 = vpop.f32.mrf.mxu2  ;;  %1542 = vmatpush.msrb.mxu3 %v1444_v16 }
 0x159   :  { %2809 = vmatmul.msk.f32.gmra.mxu1 %vm668_vm0, %v2801_v34 }
 0x15a   :  { %v3217_v40 = vpop.f32.mrf.mxu3  ;;  %1543 = vmatpush.msrb.mxu3 %v1442_v14 }
 0x15c   :  { %1544 = vmatpush.msrb.mxu3 %v1440_v23  ;;  %v1391_v23 = vld [vmem:[#allocation4 + $0x218] sm:$0xff] }
 0x15d   :  { %1640 = vmatpush.msra.mxu2 %v1391_v23  ;;  %v1347_v23 = vld [vmem:[#allocation4 + $0xb8] sm:$0xff] }
 0x15e   :  { %v3219_v41 = vpop.f32.mrf.mxu0  ;;  %v3223_v43 = vpop.f32.mrf.mxu1 }
 0x162   :  { %v3225_v44 = vpop.f32.mrf.mxu3 }
 0x166   :  { %v3227_v46 = vpop.f32.mrf.mxu0  ;;  %v3229_v47 = vpop.f32.mrf.mxu1 }
 0x167   :  { %v885_v20 = vadd.f32 %v3209_v37, %v3229_v47  ;;  %v1438_v37 = vld [vmem:[#allocation4 + $0x390] sm:$0xff] }
 0x168   :  { %1545 = vmatpush.msrb.mxu3 %v1438_v37 }
 0x16a   :  { %v3233_v51 = vpop.f32.mrf.mxu3  ;;  %1546 = vmatpush.msrb.mxu3 %v1436_v52 }
 0x16c   :  { %1547 = vmatpush.msrb.mxu3 %v1434_v5 }
 0x16e   :  { %v3235_v54 = vpop.f32.mrf.mxu0  ;;  %v3237_v55 = vpop.f32.mrf.mxu1  ;;  %1548 = vmatpush.msrb.mxu3 %v1432_v21 }
 0x16f   :  { %v888_v13 = vadd.f32 %v3221_v42, %v3237_v55 }
 0x170   :  { %1549 = vmatpush.msrb.mxu3 %v1430_v29 }
 0x172   :  { %v3241_v59 = vpop.f32.mrf.mxu3 }
 0x176   :  { %v3243_v62 = vpop.f32.mrf.mxu0  ;;  %v3245_v63 = vpop.f32.mrf.mxu1 }
 0x177   :  { %v891_v5 = vadd.f32 %v3231_v50, %v3245_v63 }
 0x17a   :  { %v3247_v2 = vpop.f32.mrf.mxu2  ;;  %v3249_v3 = vpop.f32.mrf.mxu3 }
 0x17b   :  { %v1060_v28 = vadd.f32 %v3247_v2, %v885_v20  ;;  %v1328_v2 = vld [vmem:[#allocation4 + $0x20] sm:$0xff] }
 0x17c   :  { %1465 = vmatpush.msrb.mxu0 %v1328_v2  ;;  %v1364_v20 = vld [vmem:[#allocation4 + $0x140] sm:$0xff] }
 0x17d   :  { %1492 = vmatpush.msrb.mxu1 %v1364_v20  ;;  %v1428_v2 = vld [vmem:[#allocation4 + $0x340] sm:$0xff] }
 0x17e   :  { %v3251_v6 = vpop.f32.mrf.mxu0  ;;  %v3253_v7 = vpop.f32.mrf.mxu1  ;;  %1466 = vmatpush.msrb.mxu0 %v1326_v57  ;;  %1550 = vmatpush.msrb.mxu3 %v1428_v2  ;;  %v1426_v57 = vld [vmem:[#allocation4 + $0x330] sm:$0xff]  ;;  %v1383_v2 = vld [vmem:[#allocation4 + $0x1d8] sm:$0xff] }
 0x180   :  { %1467 = vmatpush.msrb.mxu0 %v1324_v19  ;;  %1551 = vmatpush.msrb.mxu3 %v1426_v57  ;;  %v1349_v19 = vld [vmem:[#allocation4 + $0xc8] sm:$0xff] }
 0x182   :  { %v3255_v10 = vpop.f32.mrf.mxu2  ;;  %v3257_v11 = vpop.f32.mrf.mxu3  ;;  %1568 = vmatpush.msra.mxu0 %v1355_v31  ;;  %v1420_v31 = vld [vmem:[#allocation4 + $0x300] sm:$0xff] }
 0x183   :  { %v1064_v27 = vadd.f32 %v3255_v10, %v888_v13  ;;  %v1353_v10 = vld [vmem:[#allocation4 + $0xe8] sm:$0xff]  ;;  %v1356_v13 = vld [vmem:[#allocation4 + $0x100] sm:$0xff] }
 0x184   :  { %1569 = vmatpush.msra.mxu0 %v1353_v10  ;;  %v1451_v10 = vld [vmem:[#allocation4 + $0x3f8] sm:$0xff] }
 0x186   :  { %v3259_v15 = vpop.f32.mrf.mxu0  ;;  %v3261_v18 = vpop.f32.mrf.mxu1  ;;  %1570 = vmatpush.msra.mxu0 %v1351_v60  ;;  %v1341_v60 = vld [vmem:[#allocation4 + $0x88] sm:$0xff] }
 0x188   :  { %1571 = vmatpush.msra.mxu0 %v1349_v19  ;;  %v1339_v19 = vld [vmem:[#allocation4 + $0x78] sm:$0xff] }
 0x18a   :  { %v3263_v24 = vpop.f32.mrf.mxu2  ;;  %v3265_v25 = vpop.f32.mrf.mxu3  ;;  %1572 = vmatpush.msra.mxu0 %v1347_v23 }
 0x18b   :  { %v1068_v21 = vadd.f32 %v3263_v24, %v891_v5  ;;  %v1381_v5 = vld [vmem:[#allocation4 + $0x1c8] sm:$0xff] }
 0x18e   :  { %v3267_v30 = vpop.f32.mrf.mxu0  ;;  %v3269_v34 = vpop.f32.mrf.mxu1 }
 0x192   :  { %v3271_v61 = vpop.f32.mrf.mxu2  ;;  %v3273_v0 = vpop.f32.mrf.mxu3 }
 0x196   :  { %v3275_v9 = vpop.f32.mrf.mxu0  ;;  %v3277_v17 = vpop.f32.mrf.mxu1 }
 0x19a   :  { %v1166_v47 = vpop.f32.mrf.mxu2  ;;  %v3287_v32 = vpop.f32.mrf.mxu3 }
 0x19b   :  { %v1209_v48 = vadd.f32 %v1166_v47, %v1060_v28  ;;  %v1362_v28 = vld [vmem:[#allocation4 + $0x130] sm:$0xff]  ;;  %v1389_v47 = vld [vmem:[#allocation4 + $0x208] sm:$0xff] }
 0x19c   :  { %1493 = vmatpush.msrb.mxu1 %v1362_v28  ;;  %1641 = vmatpush.msra.mxu2 %v1389_v47  ;;  %v1385_v47 = vld [vmem:[#allocation4 + $0x1e8] sm:$0xff] }
 0x19d   :  { %vm1228_vm1 = vcmp.ge.f32.partialorder %v1209_v48, 0.0  ;;  %v1244_v1 = vmul.f32 0.2, %v1209_v48 }
 0x19e   :  { %v3297_v4 = vpop.f32.mrf.mxu0  ;;  %v3299_v16 = vpop.f32.mrf.mxu1 }
 0x19f   :  { %v1260_v14 = vsel %vm1228_vm1, %v1209_v48, %v1244_v1  ;;  %v1360_v48 = vld [vmem:[#allocation4 + $0x120] sm:$0xff] }
 0x1a0   :  { %v1285_v22 = vmul.f32 %v3295_v53, %v1260_v14  ;;  %1494 = vmatpush.msrb.mxu1 %v1360_v48  ;;  %v1424_v14 = vld [vmem:[#allocation4 + $0x320] sm:$0xff]  ;;  %v1343_v48 = vld [vmem:[#allocation4 + $0x98] sm:$0xff] }
 0x1a1   :  { %1552 = vmatpush.msrb.mxu3 %v1424_v14 }
 0x1a2   :  { %v1169_v37 = vpop.f32.mrf.mxu2  ;;  %v3308_v42 = vpop.f32.mrf.mxu3  ;;  %v3311_v55 = vadd.f32 %v3302_v8, %v1285_v22  ;;  %1495 = vmatpush.msrb.mxu1 %v1358_v56  ;;  %v1422_v22 = vld [vmem:[#allocation4 + $0x310] sm:$0xff]  ;;  %v894_v56 = vadd.f32 %v3239_v58, %v3217_v40 }
 0x1a3   :  { %v1213_v45 = vadd.f32 %v1169_v37, %v1064_v27  ;;  %v1387_v27 = vld [vmem:[#allocation4 + $0x1f8] sm:$0xff]  ;;  %1553 = vmatpush.msrb.mxu3 %v1422_v22  ;;  %v1345_v37 = vld [vmem:[#allocation4 + $0xa8] sm:$0xff]  ;;  %v827_v22 = vadd.f32 %v3243_v62, %v3202_v35 }
 0x1a4   :  { %1526 = vmatmul.f32.vlgmr.msrb.gmra.mxu2 %v3311_v55  ;;  %1496 = vmatpush.msrb.mxu1 %v1356_v13  ;;  %v1072_v14 = vadd.f32 %v3271_v61, %v894_v56  ;;  %v1445_v61 = vld [vmem:[#allocation4 + $0x3c8] sm:$0xff] }
 0x1a5   :  { %vm1232_vm2 = vcmp.ge.f32.partialorder %v1213_v45, 0.0  ;;  %v1248_v49 = vmul.f32 0.2, %v1213_v45  ;;  %1554 = vmatpush.msrb.mxu3 %v1420_v31  ;;  %1573 = vmatpush.msra.mxu0 %v1345_v37  ;;  %v1058_v31 = vadd.f32 %v3275_v9, %v827_v22  ;;  %v1335_v37 = vld [vmem:[#allocation4 + $0x58] sm:$0xff]  ;;  %v1333_v9 = vld [vmem:[#allocation4 + $0x48] sm:$0xff] }
 0x1a6   :  { %v3314_v52 = vpop.f32.mrf.mxu0  ;;  %v3316_v1 = vpop.f32.mrf.mxu1  ;;  %1597 = vmatpush.msra.mxu1 %v1387_v27 }
 0x1a7   :  { %v1264_v12 = vsel %vm1232_vm2, %v1213_v45, %v1248_v49  ;;  %1655 = vmatpush.msra.mxu3 %v1451_v10  ;;  %1574 = vmatpush.msra.mxu0 %v1343_v48  ;;  %v3348_v10 = vperm.slane %v3284_v26, 0 }
 0x1a8   :  { %v1289_v20 = vmul.f32 %v3295_v53, %v1264_v12  ;;  %1598 = vmatpush.msra.mxu1 %v1385_v47  ;;  %v1449_v12 = vld [vmem:[#allocation4 + $0x3e8] sm:$0xff]  ;;  %v1375_v47 = vld [vmem:[#allocation4 + $0x198] sm:$0xff] }
 0x1a9   :  { %1656 = vmatpush.msra.mxu3 %v1449_v12  ;;  %1575 = vmatpush.msra.mxu0 %v1341_v60  ;;  %v1441_v60 = vld [vmem:[#allocation4 + $0x3a8] sm:$0xff] }
 0x1aa   :  { %v1172_v28 = vpop.f32.mrf.mxu2  ;;  %v3322_v29 = vpop.f32.mrf.mxu3  ;;  %v3325_v50 = vadd.f32 %v3302_v8, %v1289_v20  ;;  %1599 = vmatpush.msra.mxu1 %v1383_v2  ;;  %v1379_v20 = vld [vmem:[#allocation4 + $0x1b8] sm:$0xff] }
 0x1ab   :  { %v1217_v63 = vadd.f32 %v1172_v28, %v1068_v21  ;;  %v1447_v21 = vld [vmem:[#allocation4 + $0x3d8] sm:$0xff]  ;;  %1576 = vmatpush.msra.mxu0 %v1339_v19  ;;  %v1337_v28 = vld [vmem:[#allocation4 + $0x68] sm:$0xff] }
 0x1ac   :  { %1529 = vmatmul.f32.gmra.mxu2 %v3325_v50  ;;  %1600 = vmatpush.msra.mxu1 %v1381_v5  ;;  %v1371_v19 = vld [vmem:[#allocation4 + $0x178] sm:$0xff] }
 0x1ad   :  { %vm1236_vm3 = vcmp.ge.f32.partialorder %v1217_v63, 0.0  ;;  %v1252_v24 = vmul.f32 0.2, %v1217_v63  ;;  %1657 = vmatpush.msra.mxu3 %v1447_v21  ;;  %1577 = vmatpush.msra.mxu0 %v1337_v28  ;;  %v830_v21 = vadd.f32 %v3251_v6, %v3211_v38 }
 0x1ae   :  { %v3328_v45 = vpop.f32.mrf.mxu0  ;;  %v3330_v49 = vpop.f32.mrf.mxu1  ;;  %1601 = vmatpush.msra.mxu1 %v1379_v20  ;;  %v1439_v20 = vld [vmem:[#allocation4 + $0x398] sm:$0xff] }
 0x1af   :  { %v1268_v57 = vsel %vm1236_vm3, %v1217_v63, %v1252_v24  ;;  %v1377_v63 = vld [vmem:[#allocation4 + $0x1a8] sm:$0xff]  ;;  %1658 = vmatpush.msra.mxu3 %v1445_v61  ;;  %v1443_v24 = vld [vmem:[#allocation4 + $0x3b8] sm:$0xff]  ;;  %1578 = vmatpush.msra.mxu0 %v1335_v37 }
 0x1b0   :  { %v1293_v13 = vmul.f32 %v3295_v53, %v1268_v57  ;;  %1602 = vmatpush.msra.mxu1 %v1377_v63  ;;  %v1373_v57 = vld [vmem:[#allocation4 + $0x188] sm:$0xff] }
 0x1b1   :  { %1659 = vmatpush.msra.mxu3 %v1443_v24  ;;  %1579 = vmatpush.msra.mxu0 %v1333_v9  ;;  %v1329_v63 = vld [vmem:[#allocation4 + $0x28] sm:$0xff] }
 0x1b2   :  { %v1175_v23 = vpop.f32.mrf.mxu2  ;;  %v3338_v40 = vpop.f32.mrf.mxu3  ;;  %v3341_v58 = vadd.f32 %v3302_v8, %v1293_v13  ;;  %1603 = vmatpush.msra.mxu1 %v1375_v47  ;;  %v3352_v13 = vperm.slane %v3292_v33, 0  ;;  %v1369_v61 = vld [vmem:[#allocation4 + $0x168] sm:$0xff] }
 0x1b3   :  { %v1221_v27 = vadd.f32 %v1175_v23, %v1072_v14  ;;  %1660 = vmatpush.msra.mxu3 %v1441_v60  ;;  %v1331_v14 = vld [vmem:[#allocation4 + $0x38] sm:$0xff] }
 0x1b4   :  { %1532 = vmatmul.f32.gmra.mxu2 %v3341_v58  ;;  %1604 = vmatpush.msra.mxu1 %v1373_v57  ;;  %v3374_v57 = vperm.slane %v3284_v26, 1  ;;  %v1363_v60 = vld [vmem:[#allocation4 + $0x138] sm:$0xff] }
 0x1b5   :  { %vm1240_vm4 = vcmp.ge.f32.partialorder %v1221_v27, 0.0  ;;  %v1256_v35 = vmul.f32 0.2, %v1221_v27  ;;  %1580 = vmatpush.msra.mxu0 %v1331_v14  ;;  %1661 = vmatpush.msra.mxu3 %v1439_v20  ;;  %v833_v14 = vadd.f32 %v3259_v15, %v3219_v41  ;;  %v3388_v15 = vperm.slane %v3284_v26, 3 }
 0x1b6   :  { %v1108_v62 = vpop.f32.mrf.mxu0  ;;  %v3345_v48 = vpop.f32.mrf.mxu1  ;;  %1605 = vmatpush.msra.mxu1 %v1371_v19  ;;  %v3399_v26 = vperm.slane %v3292_v33, 3 }
 0x1b7   :  { %v1207_v2 = vadd.f32 %v1108_v62, %v1058_v31  ;;  %v1272_v56 = vsel %vm1240_vm4, %v1221_v27, %v1256_v35  ;;  %v1437_v31 = vld [vmem:[#allocation4 + $0x388] sm:$0xff]  ;;  %v1062_v35 = vadd.f32 %v3297_v4, %v830_v21  ;;  %1581 = vmatpush.msra.mxu0 %v1329_v63  ;;  %v1435_v62 = vld [vmem:[#allocation4 + $0x378] sm:$0xff]  ;;  %v914_v4 = vadd.f32 %v3257_v11, %v3225_v44 }
 0x1b8   :  { %v1297_v12 = vmul.f32 %v3295_v53, %v1272_v56  ;;  %v856_v53 = vadd.f32 %v3253_v7, %v3235_v54  ;;  %1606 = vmatpush.msra.mxu1 %v1369_v61  ;;  %1662 = vmatpush.msra.mxu3 %v1437_v31  ;;  %v1327_v54 = vld [vmem:[#allocation4 + $0x18] sm:$0xff]  ;;  %v1433_v56 = vld [vmem:[#allocation4 + $0x368] sm:$0xff]  ;;  %v3380_v21 = vperm.slane %v3292_v33, 1  ;;  %v1066_v61 = vadd.f32 %v3314_v52, %v833_v14 }
 0x1b9   :  { %vm1226_vm5 = vcmp.ge.f32.partialorder %v1207_v2, 0.0  ;;  %v1242_v5 = vmul.f32 0.2, %v1207_v2  ;;  %v1367_v7 = vld [vmem:[#allocation4 + $0x158] sm:$0xff]  ;;  %1582 = vmatpush.msra.mxu0 %v1327_v54  ;;  %v1361_v11 = vld [vmem:[#allocation4 + $0x128] sm:$0xff] }
 0x1ba   :  { %v3356_v23 = vpop.f32.mrf.mxu3  ;;  %v3359_v27 = vadd.f32 %v3302_v8, %v1297_v12  ;;  %v1059_v38 = vadd.f32 %v3299_v16, %v856_v53  ;;  %1607 = vmatpush.msra.mxu1 %v1367_v7  ;;  %1663 = vmatpush.msra.mxu3 %v1435_v62  ;;  %v1325_v16 = vld [vmem:[#allocation4 + $0x8] sm:$0xff]  ;;  %v1061_v12 = vadd.f32 %v3308_v42, %v914_v4  ;;  %v1359_v31 = vld [vmem:[#allocation4 + $0x118] sm:$0xff] }
 0x1bb   :  { %v1258_v22 = vsel %vm1226_vm5, %v1207_v2, %v1242_v5  ;;  %v1365_v2 = vld [vmem:[#allocation4 + $0x148] sm:$0xff]  ;;  %v1431_v5 = vld [vmem:[#allocation4 + $0x358] sm:$0xff]  ;;  %1583 = vmatpush.msra.mxu0 %v1325_v16  ;;  %v859_v53 = vadd.f32 %v3261_v18, %v3204_v36 }
 0x1bc   :  { %v1283_v28 = vmul.f32 %v3348_v10, %v1258_v22  ;;  %1535 = vmatmul.f32.gmra.mxu2 %v3359_v27  ;;  %1608 = vmatpush.msra.mxu1 %v1365_v2  ;;  %v1429_v22 = vld [vmem:[#allocation4 + $0x348] sm:$0xff]  ;;  %v1423_v16 = vld [vmem:[#allocation4 + $0x318] sm:$0xff] }
 0x1bd   :  { %1664 = vmatpush.msra.mxu3 %v1433_v56  ;;  %v1425_v62 = vld [vmem:[#allocation4 + $0x328] sm:$0xff] }
 0x1be   :  { %v1111_v6 = vpop.f32.mrf.mxu0  ;;  %v3368_v8 = vadd.f32 %v3352_v13, %v1283_v28  ;;  %v1137_v47 = vpop.f32.mrf.mxu1  ;;  %1609 = vmatpush.msra.mxu1 %v1363_v60  ;;  %v1421_v60 = vld [vmem:[#allocation4 + $0x308] sm:$0xff] }
 0x1bf   :  { %v1211_v37 = vadd.f32 %v1111_v6, %v1062_v35  ;;  %v1208_v24 = vadd.f32 %v1137_v47, %v1059_v38  ;;  %1665 = vmatpush.msra.mxu3 %v1431_v5  ;;  %v1427_v35 = vld [vmem:[#allocation4 + $0x338] sm:$0xff]  ;;  %v1063_v38 = vadd.f32 %v3316_v1, %v859_v53  ;;  %v917_v1 = vadd.f32 %v3265_v25, %v3233_v51 }
 0x1c0   :  { %1468 = vmatmul.f32.vlgmr.msrb.gmra.mxu0 %v3368_v8  ;;  %1610 = vmatpush.msra.mxu1 %v1361_v11  ;;  %v836_v51 = vadd.f32 %v3267_v30, %v3227_v46  ;;  %v862_v5 = vadd.f32 %v3269_v34, %v3213_v39 }
 0x1c1   :  { %vm1230_vm6 = vcmp.ge.f32.partialorder %v1211_v37, 0.0  ;;  %v1246_v9 = vmul.f32 0.2, %v1211_v37  ;;  %vm1227_vm7 = vcmp.ge.f32.partialorder %v1208_v24, 0.0  ;;  %v1243_v44 = vmul.f32 0.2, %v1208_v24  ;;  %1666 = vmatpush.msra.mxu3 %v1429_v22 }
 0x1c2   :  { %v1195_v19 = vpop.f32.mrf.mxu3  ;;  %1611 = vmatpush.msra.mxu1 %v1359_v31  ;;  %v1065_v33 = vadd.f32 %v3322_v29, %v917_v1  ;;  %v1070_v11 = vadd.f32 %v3328_v45, %v836_v51  ;;  %v1067_v30 = vadd.f32 %v3330_v49, %v862_v5  ;;  %v920_v45 = vadd.f32 %v3273_v0, %v3241_v59  ;;  %v1778_v51 = vld [vmem:[#allocation6 + $0x140] sm:$0xff]  ;;  %v1771_v5 = vld [vmem:[#allocation6 + $0x108] sm:$0xff] }
 0x1c3   :  { %v1262_v20 = vsel %vm1230_vm6, %v1211_v37, %v1246_v9  ;;  %v1259_v28 = vsel %vm1227_vm7, %v1208_v24, %v1243_v44  ;;  %v1210_v42 = vadd.f32 %v1195_v19, %v1061_v12  ;;  %1667 = vmatpush.msra.mxu3 %v1427_v35  ;;  %v865_v35 = vadd.f32 %v3277_v17, %v3223_v43 }
 0x1c4   :  { %v1287_v63 = vmul.f32 %v3348_v10, %v1262_v20  ;;  %v1284_v41 = vmul.f32 %v3374_v57, %v1259_v28  ;;  %1642 = vmatmul.f32.vlgmr.msra.gmra.mxu2 %v3311_v55  ;;  %v1357_v55 = vld [vmem:[#allocation4 + $0x108] sm:$0xff]  ;;  %v923_v43 = vadd.f32 %v3287_v32, %v3249_v3 }
 0x1c5   :  { %vm1229_vm8 = vcmp.ge.f32.partialorder %v1210_v42, 0.0  ;;  %v1245_v36 = vmul.f32 0.2, %v1210_v42  ;;  %1612 = vmatpush.msra.mxu1 %v1357_v55  ;;  %1668 = vmatpush.msra.mxu3 %v1425_v62 }
 0x1c6   :  { %v1114_v18 = vpop.f32.mrf.mxu0  ;;  %v3393_v6 = vadd.f32 %v3352_v13, %v1287_v63  ;;  %v1140_v54 = vpop.f32.mrf.mxu1  ;;  %v3396_v7 = vadd.f32 %v3380_v21, %v1284_v41  ;;  %v1073_v62 = vadd.f32 %v3356_v23, %v923_v43  ;;  %v1788_v43 = vld [vmem:[#allocation6 + $0x190] sm:$0xff] }
 0x1c7   :  { %v1215_v52 = vadd.f32 %v1114_v18, %v1066_v61  ;;  %v1261_v37 = vsel %vm1229_vm8, %v1210_v42, %v1245_v36  ;;  %v1212_v47 = vadd.f32 %v1140_v54, %v1063_v38  ;;  %1669 = vmatpush.msra.mxu3 %v1423_v16  ;;  %v1069_v42 = vadd.f32 %v3338_v40, %v920_v45  ;;  %v1742_v45 = vld [vmem:[#allocation6 + $0x20] sm:$0xff] }
 0x1c8   :  { %1471 = vmatmul.f32.gmra.mxu0 %v3393_v6  ;;  %v1286_v4 = vmul.f32 %v3388_v15, %v1261_v37  ;;  %1497 = vmatmul.f32.vlgmr.msrb.gmra.mxu1 %v3396_v7  ;;  %v1071_v40 = vadd.f32 %v3345_v48, %v865_v35  ;;  %v1859_v35 = vld [vmem:[#allocation6 + $0x3c8] sm:$0xff] }
 0x1c9   :  { %vm1234_vm9 = vcmp.ge.f32.partialorder %v1215_v52, 0.0  ;;  %v1250_v24 = vmul.f32 0.2, %v1215_v52  ;;  %vm1231_vm10 = vcmp.ge.f32.partialorder %v1212_v47, 0.0  ;;  %v1247_v2 = vmul.f32 0.2, %v1212_v47  ;;  %1670 = vmatpush.msra.mxu3 %v1421_v60 }
 0x1ca   :  { %v1198_v25 = vpop.f32.mrf.mxu3  ;;  %v3410_v56 = vadd.f32 %v3399_v26, %v1286_v4  ;;  %v1770_v60 = vld [vmem:[#allocation6 + $0x100] sm:$0xff] }
 0x1cb   :  { %v1266_v9 = vsel %vm1234_vm9, %v1215_v52, %v1250_v24  ;;  %v1214_v12 = vadd.f32 %v1198_v25, %v1065_v33  ;;  %v1263_v29 = vsel %vm1231_vm10, %v1212_v47, %v1247_v2  ;;  %v1782_v33 = vld [vmem:[#allocation6 + $0x160] sm:$0xff]  ;;  %v1783_v2 = vld [vmem:[#allocation6 + $0x168] sm:$0xff]  ;;  %vm2111_vm9 = vcmask 261120  }
 0x1cc   :  { %v1291_v44 = vmul.f32 %v3348_v10, %v1266_v9  ;;  %1645 = vmatmul.f32.gmra.mxu2 %v3325_v50  ;;  %1555 = vmatmul.f32.vlgmr.msrb.gmra.mxu3 %v3410_v56  ;;  %v1288_v46 = vmul.f32 %v3374_v57, %v1263_v29  ;;  %v1779_v25 = vld [vmem:[#allocation6 + $0x148] sm:$0xff]  ;;  %v1762_v29 = vld [vmem:[#allocation6 + $0xc0] sm:$0xff] }
 0x1cd   :  { %vm1233_vm11 = vcmp.ge.f32.partialorder %v1214_v12, 0.0  ;;  %v1249_v14 = vmul.f32 0.2, %v1214_v12  ;;  %v1775_v9 = vld [vmem:[#allocation6 + $0x128] sm:$0xff] }
 0x1ce   :  { %v1117_v19 = vpop.f32.mrf.mxu0  ;;  %v1316_v39 = vadd.f32 %v3352_v13, %v1291_v44  ;;  %v1143_v20 = vpop.f32.mrf.mxu1  ;;  %v1313_v22 = vadd.f32 %v3380_v21, %v1288_v46  ;;  %v1767_v44 = vld [vmem:[#allocation6 + $0xe8] sm:$0xff]  ;;  %v1758_v46 = vld [vmem:[#allocation6 + $0xa0] sm:$0xff] }
 0x1cf   :  { %v1219_v34 = vadd.f32 %v1117_v19, %v1070_v11  ;;  %v1216_v50 = vadd.f32 %v1143_v20, %v1067_v30  ;;  %v1265_v53 = vsel %vm1233_vm11, %v1214_v12, %v1249_v14  ;;  %v1766_v12 = vld [vmem:[#allocation6 + $0xe0] sm:$0xff]  ;;  %v1763_v11 = vld [vmem:[#allocation6 + $0xc8] sm:$0xff] }
 0x1d0   :  { %1474 = vmatmul.f32.gmra.mxu0 %v1316_v39  ;;  %1500 = vmatmul.f32.gmra.mxu1 %v1313_v22  ;;  %v1290_v49 = vmul.f32 %v3388_v15, %v1265_v53  ;;  %v1759_v30 = vld [vmem:[#allocation6 + $0xa8] sm:$0xff]  ;;  %v1754_v14 = vld [vmem:[#allocation6 + $0x80] sm:$0xff] }
 0x1d1   :  { %vm1238_vm12 = vcmp.ge.f32.partialorder %v1219_v34, 0.0  ;;  %v1254_v28 = vmul.f32 0.2, %v1219_v34  ;;  %vm1235_vm13 = vcmp.ge.f32.partialorder %v1216_v50, 0.0  ;;  %v1251_v63 = vmul.f32 0.2, %v1216_v50 }
 0x1d2   :  { %v1201_v41 = vpop.f32.mrf.mxu3  ;;  %v1315_v31 = vadd.f32 %v3399_v26, %v1290_v49  ;;  %v1755_v19 = vld [vmem:[#allocation6 + $0x88] sm:$0xff]  ;;  %v1746_v20 = vld [vmem:[#allocation6 + $0x40] sm:$0xff] }
 0x1d3   :  { %v1270_v61 = vsel %vm1238_vm12, %v1219_v34, %v1254_v28  ;;  %v1267_v59 = vsel %vm1235_vm13, %v1216_v50, %v1251_v63  ;;  %v1218_v0 = vadd.f32 %v1201_v41, %v1069_v42  ;;  %v1751_v34 = vld [vmem:[#allocation6 + $0x68] sm:$0xff]  ;;  %v1738_v53 = vld [vmem:[#allocation6] sm:$0xff]  ;;  %v1800_v63 = vld [vmem:[#allocation6 + $0x1f0] sm:$0xff] }
 0x1d4   :  { %v1295_v38 = vmul.f32 %v3348_v10, %v1270_v61  ;;  %1648 = vmatmul.f32.gmra.mxu2 %v3341_v58  ;;  %1558 = vmatmul.f32.gmra.mxu3 %v1315_v31  ;;  %v1292_v36 = vmul.f32 %v3374_v57, %v1267_v59  ;;  %v1743_v50 = vld [vmem:[#allocation6 + $0x28] sm:$0xff]  ;;  %v1862_v49 = vld [vmem:[#allocation6 + $0x3e0] sm:$0xff]  ;;  %v1801_v61 = vld [vmem:[#allocation6 + $0x1f8] sm:$0xff] }
 0x1d5   :  { %vm1237_vm14 = vcmp.ge.f32.partialorder %v1218_v0, 0.0  ;;  %v1253_v18 = vmul.f32 0.2, %v1218_v0  ;;  %v1739_v28 = vld [vmem:[#allocation6 + $0x8] sm:$0xff]  ;;  %1895 = vmatpush.msrb.mxu1 %v1862_v49  ;;  %v1796_v59 = vld [vmem:[#allocation6 + $0x1d0] sm:$0xff]  ;;  %v1814_v49 = vld [vmem:[#allocation6 + $0x260] sm:$0xff] }
 0x1d6   :  { %v1320_v52 = vadd.f32 %v3352_v13, %v1295_v38  ;;  %v1146_v54 = vpop.f32.mrf.mxu1  ;;  %v1317_v55 = vadd.f32 %v3380_v21, %v1292_v36  ;;  %v1863_v42 = vld [vmem:[#allocation6 + $0x3e8] sm:$0xff]  ;;  %v1854_v38 = vld [vmem:[#allocation6 + $0x3a0] sm:$0xff] }
 0x1d7   :  { %v1220_v17 = vadd.f32 %v1146_v54, %v1071_v40  ;;  %v1269_v10 = vsel %vm1237_vm14, %v1218_v0, %v1253_v18  ;;  %1953 = vmatpush.msrb.mxu3 %v1863_v42  ;;  %v1797_v0 = vld [vmem:[#allocation6 + $0x1d8] sm:$0xff]  ;;  %v1855_v36 = vld [vmem:[#allocation6 + $0x3a8] sm:$0xff]  ;;  %v1792_v40 = vld [vmem:[#allocation6 + $0x1b0] sm:$0xff] }
 0x1d8   :  { %1477 = vmatmul.f32.gmra.mxu0 %v1320_v52  ;;  %1503 = vmatmul.f32.gmra.mxu1 %v1317_v55  ;;  %v1294_v58 = vmul.f32 %v3388_v15, %v1269_v10  ;;  %v1850_v54 = vld [vmem:[#allocation6 + $0x380] sm:$0xff]  ;;  %v1815_v42 = vld [vmem:[#allocation6 + $0x268] sm:$0xff] }
 0x1d9   :  { %vm1239_vm15 = vcmp.ge.f32.partialorder %v1220_v17, 0.0  ;;  %v1255_v48 = vmul.f32 0.2, %v1220_v17  ;;  %1954 = vmatpush.msrb.mxu3 %v1859_v35  ;;  %v1846_v10 = vld [vmem:[#allocation6 + $0x360] sm:$0xff] }
 0x1da   :  { %v1204_v1 = vpop.f32.mrf.mxu3  ;;  %v1319_v37 = vadd.f32 %v3399_v26, %v1294_v58  ;;  %v1847_v58 = vld [vmem:[#allocation6 + $0x368] sm:$0xff] }
 0x1db   :  { %v1271_v13 = vsel %vm1239_vm15, %v1220_v17, %v1255_v48  ;;  %v1222_v47 = vadd.f32 %v1204_v1, %v1073_v62  ;;  %1955 = vmatpush.msrb.mxu3 %v1855_v36  ;;  %v1789_v17 = vld [vmem:[#allocation6 + $0x198] sm:$0xff]  ;;  %v1784_v62 = vld [vmem:[#allocation6 + $0x170] sm:$0xff]  ;;  %v1842_v1 = vld [vmem:[#allocation6 + $0x340] sm:$0xff] }
 0x1dc   :  { %1651 = vmatmul.f32.gmra.mxu2 %v3359_v27  ;;  %1561 = vmatmul.f32.gmra.mxu3 %v1319_v37  ;;  %v1296_v3 = vmul.f32 %v3374_v57, %v1271_v13  ;;  %v1798_v27 = vld [vmem:[#allocation6 + $0x1e0] sm:$0xff]  ;;  %v1785_v48 = vld [vmem:[#allocation6 + $0x178] sm:$0xff]  ;;  %v1780_v13 = vld [vmem:[#allocation6 + $0x150] sm:$0xff] }
 0x1dd   :  { %vm1241_vm0 = vcmp.ge.f32.partialorder %v1222_v47, 0.0  ;;  %v1257_v32 = vmul.f32 0.2, %v1222_v47  ;;  %v1794_v57 = vld [vmem:[#allocation6 + $0x1c0] sm:$0xff]  ;;  %1866 = vmatpush.msrb.mxu0 %v1798_v27 }
 0x1de   :  { %v1321_v4 = vadd.f32 %v3380_v21, %v1296_v3  ;;  %v1795_v21 = vld [vmem:[#allocation6 + $0x1c8] sm:$0xff]  ;;  %v1834_v27 = vld [vmem:[#allocation6 + $0x300] sm:$0xff] }
 0x1df   :  { %v1273_v24 = vsel %vm1241_vm0, %v1222_v47, %v1257_v32  ;;  %1867 = vmatpush.msrb.mxu0 %v1794_v57  ;;  %v1781_v32 = vld [vmem:[#allocation6 + $0x158] sm:$0xff]  ;;  %v1772_v57 = vld [vmem:[#allocation6 + $0x110] sm:$0xff]  ;;  %vm2478_vm0 = vcmask 1041408  }
 0x1e0   :  { %1584 = vmatmul.f32.vlgmr.msra.gmra.mxu0 %v3368_v8  ;;  %1506 = vmatmul.f32.gmra.mxu1 %v1321_v4  ;;  %v1298_v23 = vmul.f32 %v3388_v15, %v1273_v24  ;;  %v1799_v8 = vld [vmem:[#allocation6 + $0x1e8] sm:$0xff]  ;;  %v1790_v15 = vld [vmem:[#allocation6 + $0x1a0] sm:$0xff] }
 0x1e1   :  { %1924 = vmatpush.msrb.mxu2 %v1799_v8  ;;  %1868 = vmatpush.msrb.mxu0 %v1790_v15  ;;  %v1839_v24 = vld [vmem:[#allocation6 + $0x328] sm:$0xff]  ;;  %v1773_v15 = vld [vmem:[#allocation6 + $0x118] sm:$0xff] }
 0x1e2   :  { %v1323_v16 = vadd.f32 %v3399_v26, %v1298_v23  ;;  %v1787_v26 = vld [vmem:[#allocation6 + $0x188] sm:$0xff]  ;;  %v1776_v23 = vld [vmem:[#allocation6 + $0x130] sm:$0xff] }
 0x1e3   :  { %1925 = vmatpush.msrb.mxu2 %v1795_v21  ;;  %v1835_v8 = vld [vmem:[#allocation6 + $0x308] sm:$0xff] }
 0x1e4   :  { %1564 = vmatmul.f32.gmra.mxu3 %v1323_v16 }
 0x1e8   :  { %1587 = vmatmul.f32.gmra.mxu0 %v3393_v6  ;;  %1613 = vmatmul.f32.vlgmr.msra.gmra.mxu1 %v3396_v7  ;;  %v1791_v6 = vld [vmem:[#allocation6 + $0x1a8] sm:$0xff]  ;;  %v1786_v7 = vld [vmem:[#allocation6 + $0x180] sm:$0xff] }
 0x1e9   :  { %1926 = vmatpush.msrb.mxu2 %v1791_v6  ;;  %1869 = vmatpush.msrb.mxu0 %v1786_v7  ;;  %v1830_v7 = vld [vmem:[#allocation6 + $0x2e0] sm:$0xff] }
 0x1eb   :  { %1927 = vmatpush.msrb.mxu2 %v1787_v26  ;;  %1870 = vmatpush.msrb.mxu0 %v1782_v33  ;;  %v1831_v26 = vld [vmem:[#allocation6 + $0x2e8] sm:$0xff]  ;;  %v1768_v33 = vld [vmem:[#allocation6 + $0xf0] sm:$0xff] }
 0x1ec   :  { %1671 = vmatmul.f32.vlgmr.msra.gmra.mxu3 %v3410_v56  ;;  %v1774_v56 = vld [vmem:[#allocation6 + $0x120] sm:$0xff] }
 0x1ed   :  { %1928 = vmatpush.msrb.mxu2 %v1783_v2  ;;  %1871 = vmatpush.msrb.mxu0 %v1778_v51  ;;  %v1769_v2 = vld [vmem:[#allocation6 + $0xf8] sm:$0xff]  ;;  %v1826_v51 = vld [vmem:[#allocation6 + $0x2c0] sm:$0xff] }
 0x1ef   :  { %1929 = vmatpush.msrb.mxu2 %v1779_v25  ;;  %1872 = vmatpush.msrb.mxu0 %v1774_v56  ;;  %v1827_v25 = vld [vmem:[#allocation6 + $0x2c8] sm:$0xff]  ;;  %v1764_v56 = vld [vmem:[#allocation6 + $0xd0] sm:$0xff] }
 0x1f0   :  { %1590 = vmatmul.f32.gmra.mxu0 %v1316_v39  ;;  %1616 = vmatmul.f32.gmra.mxu1 %v1313_v22  ;;  %v1750_v39 = vld [vmem:[#allocation6 + $0x60] sm:$0xff]  ;;  %v1747_v22 = vld [vmem:[#allocation6 + $0x48] sm:$0xff] }
 0x1f1   :  { %1930 = vmatpush.msrb.mxu2 %v1775_v9  ;;  %1873 = vmatpush.msrb.mxu0 %v1770_v60  ;;  %v3458_v60 = vld [vmem:[%s3817_s1 + $0x2] ss:$8 sm:$0x3] }
 0x1f3   :  { %1931 = vmatpush.msrb.mxu2 %v1771_v5  ;;  %1874 = vmatpush.msrb.mxu0 %v1766_v12  ;;  %v1765_v5 = vld [vmem:[#allocation6 + $0xd8] sm:$0xff] }
 0x1f4   :  { %1674 = vmatmul.f32.gmra.mxu3 %v1315_v31  ;;  %v1858_v31 = vld [vmem:[#allocation6 + $0x3c0] sm:$0xff] }
 0x1f5   :  { %1932 = vmatpush.msrb.mxu2 %v1767_v44  ;;  %1875 = vmatpush.msrb.mxu0 %v1762_v29  ;;  %v1822_v44 = vld [vmem:[#allocation6 + $0x2a0] sm:$0xff]  ;;  %v1823_v29 = vld [vmem:[#allocation6 + $0x2a8] sm:$0xff] }
 0x1f6   :  { %1896 = vmatpush.msrb.mxu1 %v1858_v31  ;;  %v1753_v31 = vld [vmem:[#allocation6 + $0x78] sm:$0xff] }
 0x1f7   :  { %1933 = vmatpush.msrb.mxu2 %v1763_v11  ;;  %1876 = vmatpush.msrb.mxu0 %v1758_v46  ;;  %v1760_v11 = vld [vmem:[#allocation6 + $0xb0] sm:$0xff] }
 0x1f8   :  { %1593 = vmatmul.f32.gmra.mxu0 %v1320_v52  ;;  %1619 = vmatmul.f32.gmra.mxu1 %v1317_v55  ;;  %v1793_v52 = vld [vmem:[#allocation6 + $0x1b8] sm:$0xff]  ;;  %v1851_v55 = vld [vmem:[#allocation6 + $0x388] sm:$0xff] }
 0x1f9   :  { %1934 = vmatpush.msrb.mxu2 %v1759_v30  ;;  %1877 = vmatpush.msrb.mxu0 %v1754_v14  ;;  %v3464_v14 = vld [vmem:[%s3817_s1 + $0x3] ss:$8 sm:$0x3] }
 0x1fa   :  { %1897 = vmatpush.msrb.mxu1 %v1854_v38  ;;  %1956 = vmatpush.msrb.mxu3 %v1851_v55  ;;  %v1748_v38 = vld [vmem:[#allocation6 + $0x50] sm:$0xff]  ;;  %v1807_v55 = vld [vmem:[#allocation6 + $0x228] sm:$0xff] }
 0x1fb   :  { %1935 = vmatpush.msrb.mxu2 %v1755_v19  ;;  %1878 = vmatpush.msrb.mxu0 %v1750_v39  ;;  %v1761_v19 = vld [vmem:[#allocation6 + $0xb8] sm:$0xff] }
 0x1fc   :  { %1677 = vmatmul.f32.gmra.mxu3 %v1319_v37  ;;  %1898 = vmatpush.msrb.mxu1 %v1850_v54  ;;  %v1843_v37 = vld [vmem:[#allocation6 + $0x348] sm:$0xff]  ;;  %v1806_v54 = vld [vmem:[#allocation6 + $0x220] sm:$0xff] }
 0x1fd   :  { %1936 = vmatpush.msrb.mxu2 %v1751_v34  ;;  %1879 = vmatpush.msrb.mxu0 %v1746_v20  ;;  %v1818_v34 = vld [vmem:[#allocation6 + $0x280] sm:$0xff]  ;;  %v1819_v20 = vld [vmem:[#allocation6 + $0x288] sm:$0xff] }
 0x1fe   :  { %1899 = vmatpush.msrb.mxu1 %v1846_v10  ;;  %1957 = vmatpush.msrb.mxu3 %v1847_v58  ;;  %v1745_v58 = vld [vmem:[#allocation6 + $0x38] sm:$0xff] }
 0x1ff   :  { %1937 = vmatpush.msrb.mxu2 %v1747_v22  ;;  %1880 = vmatpush.msrb.mxu0 %v1742_v45  ;;  %v1756_v22 = vld [vmem:[#allocation6 + $0x90] sm:$0xff]  ;;  %v3467_v45 = vperm.slane %v3458_v60, 0 }
 0x200   :  { %1622 = vmatmul.f32.gmra.mxu1 %v1321_v4  ;;  %1958 = vmatpush.msrb.mxu3 %v1843_v37  ;;  %v1838_v4 = vld [vmem:[#allocation6 + $0x320] sm:$0xff]  ;;  %v1740_v37 = vld [vmem:[#allocation6 + $0x10] sm:$0xff] }
 0x201   :  { %1938 = vmatpush.msrb.mxu2 %v1743_v50  ;;  %1881 = vmatpush.msrb.mxu0 %v1738_v53  ;;  %v1757_v50 = vld [vmem:[#allocation6 + $0x98] sm:$0xff] }
 0x202   :  { %1900 = vmatpush.msrb.mxu1 %v1842_v1  ;;  %1959 = vmatpush.msrb.mxu3 %v1839_v24  ;;  %v1803_v1 = vld [vmem:[#allocation6 + $0x208] sm:$0xff]  ;;  %v1865_v24 = vld [vmem:[#allocation6 + $0x3f8] sm:$0xff] }
 0x203   :  { %1939 = vmatpush.msrb.mxu2 %v1739_v28  ;;  %1982 = vmatpush.msra.mxu0 %v1800_v63  ;;  %v1752_v63 = vld [vmem:[#allocation6 + $0x70] sm:$0xff] }
 0x204   :  { %1680 = vmatmul.f32.gmra.mxu3 %v1323_v16  ;;  %1901 = vmatpush.msrb.mxu1 %v1838_v4  ;;  %v1777_v16 = vld [vmem:[#allocation6 + $0x138] sm:$0xff]  ;;  %v1864_v4 = vld [vmem:[#allocation6 + $0x3f0] sm:$0xff] }
 0x205   :  { %2040 = vmatpush.msra.mxu2 %v1801_v61  ;;  %1983 = vmatpush.msra.mxu0 %v1796_v59  ;;  %v1810_v59 = vld [vmem:[#allocation6 + $0x240] sm:$0xff] }
 0x206   :  { %1902 = vmatpush.msrb.mxu1 %v1834_v27  ;;  %1960 = vmatpush.msrb.mxu3 %v1835_v8  ;;  %v1861_v27 = vld [vmem:[#allocation6 + $0x3d8] sm:$0xff] }
 0x207   :  { %2041 = vmatpush.msra.mxu2 %v1797_v0  ;;  %1984 = vmatpush.msra.mxu0 %v1792_v40  ;;  %v1811_v0 = vld [vmem:[#allocation6 + $0x248] sm:$0xff] }
 0x208   :  { %1903 = vmatpush.msrb.mxu1 %v1830_v7  ;;  %1961 = vmatpush.msrb.mxu3 %v1831_v26  ;;  %v1857_v7 = vld [vmem:[#allocation6 + $0x3b8] sm:$0xff] }
 0x209   :  { %2042 = vmatpush.msra.mxu2 %v1793_v52  ;;  %1985 = vmatpush.msra.mxu0 %v1788_v43  ;;  %v1744_v43 = vld [vmem:[#allocation6 + $0x30] sm:$0xff] }
 0x20a   :  { %1904 = vmatpush.msrb.mxu1 %v1826_v51  ;;  %1962 = vmatpush.msrb.mxu3 %v1827_v25  ;;  %v1852_v51 = vld [vmem:[#allocation6 + $0x390] sm:$0xff]  ;;  %v1853_v25 = vld [vmem:[#allocation6 + $0x398] sm:$0xff] }
 0x20b   :  { %2043 = vmatpush.msra.mxu2 %v1789_v17  ;;  %1986 = vmatpush.msra.mxu0 %v1784_v62 }
 0x20c   :  { %1905 = vmatpush.msrb.mxu1 %v1822_v44  ;;  %1963 = vmatpush.msrb.mxu3 %v1823_v29 }
 0x20d   :  { %2044 = vmatpush.msra.mxu2 %v1785_v48  ;;  %1987 = vmatpush.msra.mxu0 %v1780_v13  ;;  %v1802_v48 = vld [vmem:[#allocation6 + $0x200] sm:$0xff] }
 0x20e   :  { %1906 = vmatpush.msrb.mxu1 %v1818_v34  ;;  %1964 = vmatpush.msrb.mxu3 %v1819_v20  ;;  %v1841_v34 = vld [vmem:[#allocation6 + $0x338] sm:$0xff] }
 0x20f   :  { %2045 = vmatpush.msra.mxu2 %v1781_v32  ;;  %1988 = vmatpush.msra.mxu0 %v1776_v23 }
 0x210   :  { %1907 = vmatpush.msrb.mxu1 %v1814_v49  ;;  %1965 = vmatpush.msrb.mxu3 %v1815_v42  ;;  %v1836_v49 = vld [vmem:[#allocation6 + $0x310] sm:$0xff]  ;;  %v1837_v42 = vld [vmem:[#allocation6 + $0x318] sm:$0xff] }
 0x211   :  { %2046 = vmatpush.msra.mxu2 %v1777_v16  ;;  %1989 = vmatpush.msra.mxu0 %v1772_v57  ;;  %v1860_v16 = vld [vmem:[#allocation6 + $0x3d0] sm:$0xff] }
 0x212   :  { %1908 = vmatpush.msrb.mxu1 %v1810_v59  ;;  %1966 = vmatpush.msrb.mxu3 %v1811_v0  ;;  %v1828_v0 = vld [vmem:[#allocation6 + $0x2d0] sm:$0xff] }
 0x213   :  { %2047 = vmatpush.msra.mxu2 %v1773_v15  ;;  %1990 = vmatpush.msra.mxu0 %v1768_v33 }
 0x214   :  { %1909 = vmatpush.msrb.mxu1 %v1806_v54  ;;  %1967 = vmatpush.msrb.mxu3 %v1807_v55  ;;  %v1825_v54 = vld [vmem:[#allocation6 + $0x2b8] sm:$0xff] }
 0x215   :  { %2048 = vmatpush.msra.mxu2 %v1769_v2  ;;  %1991 = vmatpush.msra.mxu0 %v1764_v56 }
 0x216   :  { %1910 = vmatpush.msrb.mxu1 %v1802_v48  ;;  %1968 = vmatpush.msrb.mxu3 %v1803_v1 }
 0x217   :  { %2049 = vmatpush.msra.mxu2 %v1765_v5  ;;  %1992 = vmatpush.msra.mxu0 %v1760_v11  ;;  %v1848_v5 = vld [vmem:[#allocation6 + $0x370] sm:$0xff] }
 0x218   :  { %2011 = vmatpush.msra.mxu1 %v1864_v4  ;;  %2069 = vmatpush.msra.mxu3 %v1865_v24  ;;  %v1844_v11 = vld [vmem:[#allocation6 + $0x350] sm:$0xff]  ;;  %v1813_v4 = vld [vmem:[#allocation6 + $0x258] sm:$0xff] }
 0x219   :  { %2050 = vmatpush.msra.mxu2 %v1761_v19  ;;  %1993 = vmatpush.msra.mxu0 %v1756_v22 }
 0x21a   :  { %2012 = vmatpush.msra.mxu1 %v1860_v16  ;;  %2070 = vmatpush.msra.mxu3 %v1861_v27  ;;  %v1808_v16 = vld [vmem:[#allocation6 + $0x230] sm:$0xff]  ;;  %v1809_v27 = vld [vmem:[#allocation6 + $0x238] sm:$0xff] }
 0x21b   :  { %2051 = vmatpush.msra.mxu2 %v1757_v50  ;;  %1994 = vmatpush.msra.mxu0 %v1752_v63 }
 0x21c   :  { %2071 = vmatpush.msra.mxu3 %v1857_v7  ;;  %v1805_v7 = vld [vmem:[#allocation6 + $0x218] sm:$0xff] }
 0x21d   :  { %2052 = vmatpush.msra.mxu2 %v1753_v31  ;;  %1995 = vmatpush.msra.mxu0 %v1748_v38  ;;  %v1832_v31 = vld [vmem:[#allocation6 + $0x2f0] sm:$0xff]  ;;  %v1829_v38 = vld [vmem:[#allocation6 + $0x2d8] sm:$0xff] }
 0x21e   :  { %2072 = vmatpush.msra.mxu3 %v1853_v25 }
 0x21f   :  { %1996 = vmatpush.msra.mxu0 %v1744_v43 }
 0x221   :  { %1997 = vmatpush.msra.mxu0 %v1740_v37  ;;  %v3497_v37 = vperm.slane %v3458_v60, 1 }
 0x227   :  { %v3449_v18 = vpop.f32.mrf.mxu2 }
 0x22f   :  { %v3453_v21 = vpop.f32.mrf.mxu2 }
 0x237   :  { %v1533_v61 = vpop.f32.mrf.mxu2 }
 0x23d   :  { %v1469_v41 = vpop.f32.mrf.mxu0 }
 0x23f   :  { %v1536_v8 = vpop.f32.mrf.mxu2 }
 0x245   :  { %v3451_v47 = vpop.f32.mrf.mxu0  ;;  %v1498_v3 = vpop.f32.mrf.mxu1 }
 0x246   :  { %v1499_v6 = vadd.f32 %v1498_v3, %v1469_v41  ;;  %v3471_v41 = vperm.slane %v3464_v14, 0 }
 0x247   :  { %v1643_v22 = vpop.f32.mrf.mxu2 }
 0x248   :  { %v1528_v12 = vadd.f32 %v3449_v18, %v1499_v6  ;;  %v1749_v18 = vld [vmem:[#allocation6 + $0x58] sm:$0xff]  ;;  %v1856_v6 = vld [vmem:[#allocation6 + $0x3b0] sm:$0xff] }
 0x249   :  { %2053 = vmatpush.msra.mxu2 %v1749_v18  ;;  %2013 = vmatpush.msra.mxu1 %v1856_v6 }
 0x24b   :  { %2054 = vmatpush.msra.mxu2 %v1745_v58  ;;  %2014 = vmatpush.msra.mxu1 %v1852_v51  ;;  %v1820_v58 = vld [vmem:[#allocation6 + $0x290] sm:$0xff] }
 0x24d   :  { %v1501_v9 = vpop.f32.mrf.mxu1  ;;  %v1475_v46 = vpop.f32.mrf.mxu0  ;;  %2015 = vmatpush.msra.mxu1 %v1848_v5 }
 0x24e   :  { %v1502_v53 = vadd.f32 %v1501_v9, %v3451_v47  ;;  %v1741_v47 = vld [vmem:[#allocation6 + $0x18] sm:$0xff] }
 0x24f   :  { %v1556_v30 = vpop.f32.mrf.mxu3  ;;  %2055 = vmatpush.msra.mxu2 %v1741_v47  ;;  %2016 = vmatpush.msra.mxu1 %v1844_v11  ;;  %v1646_v1 = vpop.f32.mrf.mxu2  ;;  %v1817_v47 = vld [vmem:[#allocation6 + $0x278] sm:$0xff] }
 0x250   :  { %v1557_v39 = vadd.f32 %v1556_v30, %v1528_v12  ;;  %v1531_v52 = vadd.f32 %v3453_v21, %v1502_v53  ;;  %v1849_v12 = vld [vmem:[#allocation6 + $0x378] sm:$0xff] }
 0x251   :  { %2073 = vmatpush.msra.mxu3 %v1849_v12 }
 0x252   :  { %vm1688_vm1 = vcmp.ge.f32.partialorder %v1557_v39, 0.0  ;;  %v1696_v28 = vmul.f32 0.2, %v1557_v39 }
 0x254   :  { %v1704_v35 = vsel %vm1688_vm1, %v1557_v39, %v1696_v28  ;;  %v1840_v39 = vld [vmem:[#allocation6 + $0x330] sm:$0xff]  ;;  %vm2444_vm1 = vcmask 343040  }
 0x255   :  { %v1717_v36 = vmul.f32 %v3467_v45, %v1704_v35  ;;  %v1504_v40 = vpop.f32.mrf.mxu1  ;;  %v1478_v13 = vpop.f32.mrf.mxu0  ;;  %2017 = vmatpush.msra.mxu1 %v1840_v39  ;;  %v1833_v35 = vld [vmem:[#allocation6 + $0x2f8] sm:$0xff] }
 0x256   :  { %v1505_v3 = vadd.f32 %v1504_v40, %v1475_v46  ;;  %v1845_v46 = vld [vmem:[#allocation6 + $0x358] sm:$0xff] }
 0x257   :  { %v3476_v17 = vadd.f32 %v3471_v41, %v1717_v36  ;;  %v1559_v10 = vpop.f32.mrf.mxu3  ;;  %2074 = vmatpush.msra.mxu3 %v1845_v46  ;;  %2018 = vmatpush.msra.mxu1 %v1836_v49  ;;  %v1649_v51 = vpop.f32.mrf.mxu2 }
 0x258   :  { %v1560_v62 = vadd.f32 %v1559_v10, %v1531_v52  ;;  %v1534_v15 = vadd.f32 %v1533_v61, %v1505_v3  ;;  %v1824_v52 = vld [vmem:[#allocation6 + $0x2b0] sm:$0xff]  ;;  %v1727_v3 = vperm.slane %v3464_v14, 1 }
 0x259   :  { %1882 = vmatmul.f32.vlgmr.msrb.gmra.mxu0 %v3476_v17  ;;  %1940 = vmatmul.f32.vlgmr.msrb.gmra.mxu2 %v3476_v17  ;;  %v1804_v14 = vld [vmem:[#allocation6 + $0x210] sm:$0xff] }
 0x25a   :  { %vm1690_vm2 = vcmp.ge.f32.partialorder %v1560_v62, 0.0  ;;  %v1698_v32 = vmul.f32 0.2, %v1560_v62  ;;  %2075 = vmatpush.msra.mxu3 %v1841_v34  ;;  %2019 = vmatpush.msra.mxu1 %v1832_v31 }
 0x25c   :  { %v1706_v23 = vsel %vm1690_vm2, %v1560_v62, %v1698_v32  ;;  %2076 = vmatpush.msra.mxu3 %v1837_v42  ;;  %2020 = vmatpush.msra.mxu1 %v1828_v0  ;;  %v1821_v62 = vld [vmem:[#allocation6 + $0x298] sm:$0xff]  ;;  %v1812_v32 = vld [vmem:[#allocation6 + $0x250] sm:$0xff] }
 0x25d   :  { %v1719_v57 = vmul.f32 %v3467_v45, %v1706_v23  ;;  %v1507_v21 = vpop.f32.mrf.mxu1  ;;  %v1585_v44 = vpop.f32.mrf.mxu0 }
 0x25e   :  { %v1508_v56 = vadd.f32 %v1507_v21, %v1478_v13  ;;  %2077 = vmatpush.msra.mxu3 %v1833_v35  ;;  %2021 = vmatpush.msra.mxu1 %v1824_v52 }
 0x25f   :  { %v1562_v26 = vpop.f32.mrf.mxu3  ;;  %v3482_v33 = vadd.f32 %v3471_v41, %v1719_v57 }
 0x260   :  { %v1563_v2 = vadd.f32 %v1562_v26, %v1534_v15  ;;  %v1537_v20 = vadd.f32 %v1536_v8, %v1508_v56  ;;  %2078 = vmatpush.msra.mxu3 %v1829_v38  ;;  %2022 = vmatpush.msra.mxu1 %v1820_v58 }
 0x261   :  { %1885 = vmatmul.f32.gmra.mxu0 %v3482_v33  ;;  %1943 = vmatmul.f32.gmra.mxu2 %v3482_v33 }
 0x262   :  { %vm1692_vm3 = vcmp.ge.f32.partialorder %v1563_v2, 0.0  ;;  %v1700_v9 = vmul.f32 0.2, %v1563_v2  ;;  %2079 = vmatpush.msra.mxu3 %v1825_v54 }
 0x264   :  { %v1708_v29 = vsel %vm1692_vm3, %v1563_v2, %v1700_v9  ;;  %2080 = vmatpush.msra.mxu3 %v1821_v62  ;;  %vm2597_vm3 = vcmask 523264  }
 0x265   :  { %v1721_v30 = vmul.f32 %v3467_v45, %v1708_v29  ;;  %v1614_v19 = vpop.f32.mrf.mxu1  ;;  %v1588_v36 = vpop.f32.mrf.mxu0 }
 0x266   :  { %v1615_v63 = vadd.f32 %v1614_v19, %v1585_v44  ;;  %2081 = vmatpush.msra.mxu3 %v1817_v47  ;;  %v1652_v19 = vpop.f32.mrf.mxu2 }
 0x267   :  { %v1565_v50 = vpop.f32.mrf.mxu3  ;;  %v3488_v53 = vadd.f32 %v3471_v41, %v1721_v30 }
 0x268   :  { %v1566_v28 = vadd.f32 %v1565_v50, %v1537_v20  ;;  %v1644_v55 = vadd.f32 %v1643_v22, %v1615_v63  ;;  %2082 = vmatpush.msra.mxu3 %v1813_v4 }
 0x269   :  { %1888 = vmatmul.f32.gmra.mxu0 %v3488_v53  ;;  %1946 = vmatmul.f32.gmra.mxu2 %v3488_v53 }
 0x26a   :  { %vm1694_vm4 = vcmp.ge.f32.partialorder %v1566_v28, 0.0  ;;  %v1702_v61 = vmul.f32 0.2, %v1566_v28  ;;  %2083 = vmatpush.msra.mxu3 %v1809_v27 }
 0x26c   :  { %v1710_v59 = vsel %vm1694_vm4, %v1566_v28, %v1702_v61  ;;  %2084 = vmatpush.msra.mxu3 %v1805_v7 }
 0x26d   :  { %v1723_v40 = vmul.f32 %v3467_v45, %v1710_v59  ;;  %v1617_v18 = vpop.f32.mrf.mxu1  ;;  %v1591_v57 = vpop.f32.mrf.mxu0 }
 0x26e   :  { %v1618_v45 = vadd.f32 %v1617_v18, %v1588_v36 }
 0x26f   :  { %v1672_v43 = vpop.f32.mrf.mxu3  ;;  %v3494_v10 = vadd.f32 %v3471_v41, %v1723_v40  ;;  %v1816_v41 = vld [vmem:[#allocation6 + $0x270] sm:$0xff] }
 0x270   :  { %v1673_v48 = vadd.f32 %v1672_v43, %v1644_v55  ;;  %2023 = vmatpush.msra.mxu1 %v1816_v41  ;;  %v1647_v8 = vadd.f32 %v1646_v1, %v1618_v45 }
 0x271   :  { %1891 = vmatmul.f32.gmra.mxu0 %v3494_v10  ;;  %1949 = vmatmul.f32.gmra.mxu2 %v3494_v10 }
 0x272   :  { %vm1689_vm5 = vcmp.ge.f32.partialorder %v1673_v48, 0.0  ;;  %v1697_v13 = vmul.f32 0.2, %v1673_v48  ;;  %2024 = vmatpush.msra.mxu1 %v1812_v32 }
 0x274   :  { %v1705_v24 = vsel %vm1689_vm5, %v1673_v48, %v1697_v13  ;;  %2025 = vmatpush.msra.mxu1 %v1808_v16  ;;  %v2098_v13 = vld [vmem:[%s3822_s6] sm:$0xff]  ;;  %v2099_v16 = vld [vmem:[%s3822_s6 + $0x8] sm:$0xff] }
 0x275   :  { %v1718_v60 = vmul.f32 %v3497_v37, %v1705_v24  ;;  %v1620_v23 = vpop.f32.mrf.mxu1  ;;  %v1594_v11 = vpop.f32.mrf.mxu0 }
 0x276   :  { %v1621_v26 = vadd.f32 %v1620_v23, %v1591_v57  ;;  %2026 = vmatpush.msra.mxu1 %v1804_v14  ;;  %v2822_v57 = vld [vmem:[%s3822_s6 + $0x38] sm:$0xff] }
 0x277   :  { %v1731_v21 = vadd.f32 %v1727_v3, %v1718_v60  ;;  %v1675_v15 = vpop.f32.mrf.mxu3  ;;  %v2821_v60 = vld [vmem:[%s3822_s6 + $0x30] sm:$0xff] }
 0x278   :  { %v1676_v6 = vadd.f32 %v1675_v15, %v1647_v8  ;;  %v1650_v9 = vadd.f32 %v1649_v51, %v1621_v26  ;;  %v2823_v26 = vld [vmem:[%s3822_s6 + $0x40] sm:$0xff]  ;;  %v2101_v51 = vld [vmem:[%s3822_s6 + $0x18] sm:$0xff] }
 0x279   :  { %1911 = vmatmul.f32.vlgmr.msrb.gmra.mxu1 %v1731_v21  ;;  %1969 = vmatmul.f32.vlgmr.msrb.gmra.mxu3 %v1731_v21 }
 0x27a   :  { %vm1691_vm6 = vcmp.ge.f32.partialorder %v1676_v6, 0.0  ;;  %v1699_v2 = vmul.f32 0.2, %v1676_v6  ;;  %1998 = vmatmul.f32.vlgmr.msra.gmra.mxu0 %v3476_v17  ;;  %2056 = vmatmul.f32.vlgmr.msra.gmra.mxu2 %v3476_v17 }
 0x27c   :  { %v1707_v25 = vsel %vm1691_vm6, %v1676_v6, %v1699_v2  ;;  %v2100_v6 = vld [vmem:[%s3822_s6 + $0x10] sm:$0xff] }
 0x27d   :  { %v1720_v56 = vmul.f32 %v3497_v37, %v1707_v25  ;;  %v1623_v5 = vpop.f32.mrf.mxu1 }
 0x27e   :  { %v1624_v46 = vadd.f32 %v1623_v5, %v1594_v11 }
 0x27f   :  { %v1678_v12 = vpop.f32.mrf.mxu3  ;;  %v1733_v44 = vadd.f32 %v1727_v3, %v1720_v56 }
 0x280   :  { %v1679_v29 = vadd.f32 %v1678_v12, %v1650_v9  ;;  %v1653_v34 = vadd.f32 %v1652_v19, %v1624_v46  ;;  %v2839_v19 = vld [vmem:[%s3822_s6 + $0x60] sm:$0xff] }
 0x281   :  { %1914 = vmatmul.f32.gmra.mxu1 %v1733_v44  ;;  %1972 = vmatmul.f32.gmra.mxu3 %v1733_v44 }
 0x282   :  { %vm1693_vm7 = vcmp.ge.f32.partialorder %v1679_v29, 0.0  ;;  %v1701_v30 = vmul.f32 0.2, %v1679_v29  ;;  %2001 = vmatmul.f32.gmra.mxu0 %v3482_v33  ;;  %2059 = vmatmul.f32.gmra.mxu2 %v3482_v33 }
 0x284   :  { %v1709_v17 = vsel %vm1693_vm7, %v1679_v29, %v1701_v30 }
 0x285   :  { %v1722_v39 = vmul.f32 %v3497_v37, %v1709_v17  ;;  %v2102_v17 = vld [vmem:[%s3822_s6 + $0x20] sm:$0xff] }
 0x287   :  { %v1681_v20 = vpop.f32.mrf.mxu3  ;;  %v1735_v22 = vadd.f32 %v1727_v3, %v1722_v39 }
 0x288   :  { %v1682_v50 = vadd.f32 %v1681_v20, %v1653_v34 }
 0x289   :  { %1917 = vmatmul.f32.gmra.mxu1 %v1735_v22  ;;  %1975 = vmatmul.f32.gmra.mxu3 %v1735_v22 }
 0x28a   :  { %vm1695_vm8 = vcmp.ge.f32.partialorder %v1682_v50, 0.0  ;;  %v1703_v28 = vmul.f32 0.2, %v1682_v50  ;;  %2004 = vmatmul.f32.gmra.mxu0 %v3488_v53  ;;  %2062 = vmatmul.f32.gmra.mxu2 %v3488_v53 }
 0x28c   :  { %v1711_v49 = vsel %vm1695_vm8, %v1682_v50, %v1703_v28  ;;  %v2103_v50 = vld [vmem:[%s3822_s6 + $0x28] sm:$0x3] }
 0x28d   :  { %v1724_v42 = vmul.f32 %v3497_v37, %v1711_v49  ;;  %v2840_v28 = vld [vmem:[%s3822_s6 + $0x68] sm:$0xff]  ;;  %v2826_v49 = vld [vmem:[%s3822_s6 + $0x58] sm:$0x3] }
 0x28f   :  { %v1737_v33 = vadd.f32 %v1727_v3, %v1724_v42  ;;  %v2841_v42 = vld [vmem:[%s3822_s6 + $0x70] sm:$0xff] }
 0x291   :  { %1920 = vmatmul.f32.gmra.mxu1 %v1737_v33  ;;  %1978 = vmatmul.f32.gmra.mxu3 %v1737_v33 }
 0x292   :  { %2007 = vmatmul.f32.gmra.mxu0 %v3494_v10  ;;  %2065 = vmatmul.f32.gmra.mxu2 %v3494_v10 }
 0x299   :  { %2027 = vmatmul.f32.vlgmr.msra.gmra.mxu1 %v1731_v21  ;;  %2085 = vmatmul.f32.vlgmr.msra.gmra.mxu3 %v1731_v21 }
 0x2a1   :  { %2030 = vmatmul.f32.gmra.mxu1 %v1733_v44  ;;  %2088 = vmatmul.f32.gmra.mxu3 %v1733_v44  ;;  %v2824_v44 = vld [vmem:[%s3822_s6 + $0x48] sm:$0xff] }
 0x2a9   :  { %2033 = vmatmul.f32.gmra.mxu1 %v1735_v22  ;;  %2091 = vmatmul.f32.gmra.mxu3 %v1735_v22  ;;  %v2825_v22 = vld [vmem:[%s3822_s6 + $0x50] sm:$0xff] }
 0x2b1   :  { %2036 = vmatmul.f32.gmra.mxu1 %v1737_v33  ;;  %2094 = vmatmul.f32.gmra.mxu3 %v1737_v33  ;;  %v2851_v33 = vld [vmem:[%s3822_s6 + $0x90] sm:$0xff] }
 0x2d6   :  { %v1883_v63 = vpop.f32.mrf.mxu0 }
 0x2dc   :  { %v1941_v53 = vpop.f32.mrf.mxu2 }
 0x2de   :  { %v1886_v61 = vpop.f32.mrf.mxu0 }
 0x2e4   :  { %v1944_v35 = vpop.f32.mrf.mxu2 }
 0x2e6   :  { %v1889_v59 = vpop.f32.mrf.mxu0 }
 0x2ec   :  { %v1947_v36 = vpop.f32.mrf.mxu2 }
 0x2ee   :  { %v1892_v18 = vpop.f32.mrf.mxu0 }
 0x2f4   :  { %v1950_v54 = vpop.f32.mrf.mxu2 }
 0x2f6   :  { %v1912_v31 = vpop.f32.mrf.mxu1 }
 0x2f7   :  { %v1999_v58 = vpop.f32.mrf.mxu0  ;;  %v1913_v37 = vadd.f32 %v1912_v31, %v1883_v63  ;;  %v2842_v63 = vld [vmem:[%s3822_s6 + $0x78] sm:$0xff]  ;;  %v2853_v31 = vld [vmem:[%s3822_s6 + $0xa0] sm:$0xff] }
 0x2fc   :  { %v1970_v0 = vpop.f32.mrf.mxu3 }
 0x2fd   :  { %v2057_v41 = vpop.f32.mrf.mxu2  ;;  %v1971_v24 = vadd.f32 %v1970_v0, %v1941_v53  ;;  %v2852_v53 = vld [vmem:[%s3822_s6 + $0x98] sm:$0xff]  ;;  %v2855_v0 = vld [vmem:[%s3822_s6 + $0xb0] sm:$0xff] }
 0x2fe   :  { %v1915_v38 = vpop.f32.mrf.mxu1 }
 0x2ff   :  { %v1916_v48 = vadd.f32 %v1915_v38, %v1886_v61  ;;  %v2002_v4 = vpop.f32.mrf.mxu0  ;;  %v2843_v61 = vld [vmem:[%s3822_s6 + $0x80] sm:$0xff]  ;;  %v2856_v38 = vld [vmem:[%s3822_s6 + $0xb8] sm:$0x3] }
 0x304   :  { %v1973_v40 = vpop.f32.mrf.mxu3 }
 0x305   :  { %v1974_v32 = vadd.f32 %v1973_v40, %v1944_v35  ;;  %v2060_v8 = vpop.f32.mrf.mxu2  ;;  %v2844_v35 = vld [vmem:[%s3822_s6 + $0x88] sm:$0x3]  ;;  %v2396_v40 = vld [vmem:[%s3823_s7 + $0x70] sm:$0xff] }
 0x306   :  { %v1918_v52 = vpop.f32.mrf.mxu1 }
 0x307   :  { %v1919_v62 = vadd.f32 %v1918_v52, %v1889_v59  ;;  %v2005_v21 = vpop.f32.mrf.mxu0  ;;  %v2854_v59 = vld [vmem:[%s3822_s6 + $0xa8] sm:$0xff] }
 0x30c   :  { %v1976_v55 = vpop.f32.mrf.mxu3 }
 0x30d   :  { %v1977_v3 = vadd.f32 %v1976_v55, %v1947_v36  ;;  %v2063_v7 = vpop.f32.mrf.mxu2  ;;  %v2397_v36 = vld [vmem:[%s3823_s7 + $0x78] sm:$0xff] }
 0x30e   :  { %v1921_v43 = vpop.f32.mrf.mxu1  ;;  %v2393_v55 = vld [vmem:[%s3823_s7 + $0x58] sm:$0xff] }
 0x30f   :  { %v1922_v10 = vadd.f32 %v1921_v43, %v1892_v18  ;;  %v2008_v25 = vpop.f32.mrf.mxu0  ;;  %v2395_v18 = vld [vmem:[%s3823_s7 + $0x68] sm:$0xff]  ;;  %v2392_v43 = vld [vmem:[%s3823_s7 + $0x50] sm:$0xff] }
 0x311   :  { %2195 = vmatpush.msrb.mxu3 %v1922_v10  ;;  %v2391_v10 = vld [vmem:[%s3823_s7 + $0x48] sm:$0xff] }
 0x313   :  { %2196 = vmatpush.msrb.mxu3 %v1919_v62  ;;  %v2390_v62 = vld [vmem:[%s3823_s7 + $0x40] sm:$0xff] }
 0x314   :  { %v1979_v1 = vpop.f32.mrf.mxu3 }
 0x315   :  { %v1980_v45 = vadd.f32 %v1979_v1, %v1950_v54  ;;  %2197 = vmatpush.msrb.mxu3 %v1916_v48  ;;  %v2066_v29 = vpop.f32.mrf.mxu2  ;;  %v2394_v54 = vld [vmem:[%s3823_s7 + $0x60] sm:$0xff]  ;;  %v2389_v48 = vld [vmem:[%s3823_s7 + $0x38] sm:$0xff]  ;;  %v2388_v1 = vld [vmem:[%s3823_s7 + $0x30] sm:$0xff] }
 0x316   :  { %v2028_v47 = vpop.f32.mrf.mxu1 }
 0x317   :  { %2142 = vmatpush.msrb.mxu0 %v1980_v45  ;;  %2198 = vmatpush.msrb.mxu3 %v1913_v37  ;;  %v2029_v46 = vadd.f32 %v2028_v47, %v1999_v58  ;;  %v2387_v37 = vld [vmem:[%s3823_s7 + $0x28] sm:$0xff]  ;;  %v2384_v47 = vld [vmem:[%s3823_s7 + $0x10] sm:$0xff] }
 0x318   :  { %2833 = vmatmul.msk.f32.vlgmr.msrb.gmra.mxu3 %vm2111_vm9, %v2098_v13  ;;  %v2386_v13 = vld [vmem:[%s3823_s7 + $0x20] sm:$0xff] }
 0x319   :  { %2143 = vmatpush.msrb.mxu0 %v1977_v3  ;;  %v2383_v3 = vld [vmem:[%s3823_s7 + $0x8] sm:$0xff] }
 0x31b   :  { %2144 = vmatpush.msrb.mxu0 %v1974_v32 }
 0x31c   :  { %v2086_v23 = vpop.f32.mrf.mxu3 }
 0x31d   :  { %2145 = vmatpush.msrb.mxu0 %v1971_v24  ;;  %v2087_v20 = vadd.f32 %v2086_v23, %v2057_v41  ;;  %v2385_v41 = vld [vmem:[%s3823_s7 + $0x18] sm:$0xff] }
 0x31e   :  { %v2031_v27 = vpop.f32.mrf.mxu1  ;;  %2827 = vmatmul.msk.f32.vlgmr.msrb.gmra.mxu0 %vm2111_vm9, %v2821_v60 }
 0x31f   :  { %v2032_v12 = vadd.f32 %v2031_v27, %v2002_v4  ;;  %2398 = vmatpush.msra.mxu0 %v2397_v36  ;;  %v2382_v4 = vld [vmem:[%s3823_s7] sm:$0xff] }
 0x320   :  { %2834 = vmatmul.msk.f32.gmra.mxu3 %vm2111_vm9, %v2099_v16 }
 0x321   :  { %2399 = vmatpush.msra.mxu0 %v2396_v40 }
 0x323   :  { %2400 = vmatpush.msra.mxu0 %v2395_v18 }
 0x324   :  { %v2089_v15 = vpop.f32.mrf.mxu3 }
 0x325   :  { %v2090_v34 = vadd.f32 %v2089_v15, %v2060_v8  ;;  %2401 = vmatpush.msra.mxu0 %v2394_v54 }
 0x326   :  { %v2034_v14 = vpop.f32.mrf.mxu1  ;;  %2828 = vmatmul.msk.f32.gmra.mxu0 %vm2111_vm9, %v2822_v57 }
 0x327   :  { %v2035_v5 = vadd.f32 %v2034_v14, %v2005_v21  ;;  %2402 = vmatpush.msra.mxu0 %v2393_v55  ;;  %v3661_v14 = vld [vmem:[%s3817_s1 + $0x4] ss:$0 sm:$0xff] }
 0x328   :  { %2835 = vmatmul.msk.f32.gmra.mxu3 %vm2111_vm9, %v2100_v6 }
 0x329   :  { %2403 = vmatpush.msra.mxu0 %v2392_v43 }
 0x32b   :  { %2404 = vmatpush.msra.mxu0 %v2391_v10 }
 0x32c   :  { %v2092_v2 = vpop.f32.mrf.mxu3 }
 0x32d   :  { %v2093_v39 = vadd.f32 %v2092_v2, %v2063_v7  ;;  %2405 = vmatpush.msra.mxu0 %v2390_v62 }
 0x32e   :  { %v2037_v56 = vpop.f32.mrf.mxu1  ;;  %2829 = vmatmul.msk.f32.gmra.mxu0 %vm2111_vm9, %v2823_v26 }
 0x32f   :  { %v2038_v9 = vadd.f32 %v2037_v56, %v2008_v25  ;;  %2406 = vmatpush.msra.mxu0 %v2389_v48 }
 0x330   :  { %2836 = vmatmul.msk.f32.gmra.mxu3 %vm2111_vm9, %v2101_v51  ;;  %v2351_v51 = vld [vmem:[%s3817_s1 + $0x5] ss:$0 sm:$0xff] }
 0x331   :  { %2255 = vmatpush.msrb.mxu2 %v2038_v9  ;;  %2407 = vmatpush.msra.mxu0 %v2388_v1 }
 0x333   :  { %2256 = vmatpush.msrb.mxu2 %v2035_v5  ;;  %2408 = vmatpush.msra.mxu0 %v2387_v37 }
 0x334   :  { %v2095_v11 = vpop.f32.mrf.mxu3 }
 0x335   :  { %v2096_v30 = vadd.f32 %v2095_v11, %v2066_v29  ;;  %2257 = vmatpush.msrb.mxu2 %v2032_v12  ;;  %2409 = vmatpush.msra.mxu0 %v2386_v13 }
 0x336   :  { %2830 = vmatmul.msk.f32.gmra.mxu0 %vm2111_vm9, %v2824_v44 }
 0x337   :  { %2258 = vmatpush.msrb.mxu2 %v2029_v46  ;;  %2321 = vmatpush.msra.mxu3 %v2096_v30 }
 0x338   :  { %2837 = vmatmul.msk.f32.gmra.mxu3 %vm2111_vm9, %v2102_v17  ;;  %2845 = vmatmul.msk.f32.vlgmr.msrb.gmra.mxu2 %vm2111_vm9, %v2839_v19 }
 0x339   :  { %2322 = vmatpush.msra.mxu3 %v2093_v39  ;;  %2410 = vmatpush.msra.mxu0 %v2385_v41 }
 0x33b   :  { %2323 = vmatpush.msra.mxu3 %v2090_v34  ;;  %2411 = vmatpush.msra.mxu0 %v2384_v47 }
 0x33d   :  { %2324 = vmatpush.msra.mxu3 %v2087_v20  ;;  %2412 = vmatpush.msra.mxu0 %v2383_v3 }
 0x33e   :  { %2831 = vmatmul.msk.f32.gmra.mxu0 %vm2111_vm9, %v2825_v22 }
 0x33f   :  { %2413 = vmatpush.msra.mxu0 %v2382_v4 }
 0x340   :  { %2838 = vmatmul.msk.f32.gmra.mxu3 %vm2111_vm9, %v2103_v50  ;;  %2846 = vmatmul.msk.f32.gmra.mxu2 %vm2111_vm9, %v2840_v28 }
 0x346   :  { %2832 = vmatmul.msk.f32.gmra.mxu0 %vm2111_vm9, %v2826_v49 }
 0x348   :  { %2847 = vmatmul.msk.f32.gmra.mxu2 %vm2111_vm9, %v2841_v42  ;;  %2857 = vmatmul.msk.f32.vlgmr.msra.gmra.mxu3 %vm2111_vm9, %v2851_v33 }
 0x350   :  { %2848 = vmatmul.msk.f32.gmra.mxu2 %vm2111_vm9, %v2842_v63  ;;  %2858 = vmatmul.msk.f32.gmra.mxu3 %vm2111_vm9, %v2852_v53 }
 0x358   :  { %2849 = vmatmul.msk.f32.gmra.mxu2 %vm2111_vm9, %v2843_v61  ;;  %2859 = vmatmul.msk.f32.gmra.mxu3 %vm2111_vm9, %v2853_v31 }
 0x360   :  { %2850 = vmatmul.msk.f32.gmra.mxu2 %vm2111_vm9, %v2844_v35  ;;  %2860 = vmatmul.msk.f32.gmra.mxu3 %vm2111_vm9, %v2854_v59 }
 0x368   :  { %2861 = vmatmul.msk.f32.gmra.mxu3 %vm2111_vm9, %v2855_v0 }
 0x370   :  { %2862 = vmatmul.msk.f32.gmra.mxu3 %vm2111_vm9, %v2856_v38 }
 0x39b   :  { %v2200_v52 = vpop.f32.mrf.mxu3  ;;  %v2147_v24 = vpop.f32.mrf.mxu0 }
 0x39c   :  { %v2201_v57 = vadd.f32 %v2200_v52, %v2147_v24 }
 0x3a3   :  { %v2203_v58 = vpop.f32.mrf.mxu3  ;;  %v2150_v27 = vpop.f32.mrf.mxu0 }
 0x3a4   :  { %v2204_v2 = vadd.f32 %v2203_v58, %v2150_v27 }
 0x3ab   :  { %v2206_v45 = vpop.f32.mrf.mxu3  ;;  %v2153_v26 = vpop.f32.mrf.mxu0 }
 0x3ac   :  { %v2207_v46 = vadd.f32 %v2206_v45, %v2153_v26  ;;  %v2439_v26 = vld [vmem:[%s3824_s8 + $0x30] sm:$0xff] }
 0x3b3   :  { %v2209_v32 = vpop.f32.mrf.mxu3  ;;  %v2156_v17 = vpop.f32.mrf.mxu0 }
 0x3b4   :  { %v2210_v49 = vadd.f32 %v2209_v32, %v2156_v17 }
 0x3bb   :  { %v2212_v60 = vpop.f32.mrf.mxu3  ;;  %v2260_v23 = vpop.f32.mrf.mxu2 }
 0x3bc   :  { %v2278_v21 = vadd.f32 %v2260_v23, %v2201_v57  ;;  %v2159_v53 = vpop.f32.mrf.mxu0  ;;  %v2433_v57 = vld [vmem:[%s3824_s8] sm:$0xff] }
 0x3bd   :  { %v2213_v38 = vadd.f32 %v2212_v60, %v2159_v53 }
 0x3c3   :  { %v2215_v16 = vpop.f32.mrf.mxu3  ;;  %v2263_v8 = vpop.f32.mrf.mxu2 }
 0x3c4   :  { %v2279_v5 = vadd.f32 %v2263_v8, %v2204_v2  ;;  %v2162_v43 = vpop.f32.mrf.mxu0  ;;  %v2596_v2 = vld [vmem:[%s3825_s9 + $0x38] sm:$0xff] }
 0x3c5   :  { %v2216_v62 = vadd.f32 %v2215_v16, %v2162_v43  ;;  %2639 = vmatpush.msra.mxu2 %v2596_v2 }
 0x3cb   :  { %v2326_v15 = vpop.f32.mrf.mxu3  ;;  %v2266_v56 = vpop.f32.mrf.mxu2 }
 0x3cc   :  { %v2344_v6 = vadd.f32 %v2326_v15, %v2278_v21  ;;  %v2280_v39 = vadd.f32 %v2266_v56, %v2207_v46  ;;  %v2434_v21 = vld [vmem:[%s3824_s8 + $0x8] sm:$0xff]  ;;  %v2435_v15 = vld [vmem:[%s3824_s8 + $0x10] sm:$0xff]  ;;  %v2593_v56 = vld [vmem:[%s3825_s9 + $0x20] sm:$0xff] }
 0x3cd   :  { %v2590_v46 = vld [vmem:[%s3825_s9 + $0x8] sm:$0xff] }
 0x3ce   :  { %vm2352_vm10 = vcmp.ge.f32.partialorder %v2344_v6, 0.0  ;;  %v2358_v7 = vmul.f32 0.2, %v2344_v6 }
 0x3d0   :  { %v2364_v25 = vsel %vm2352_vm10, %v2344_v6, %v2358_v7  ;;  %v2436_v6 = vld [vmem:[%s3824_s8 + $0x18] sm:$0xff]  ;;  %v2438_v7 = vld [vmem:[%s3824_s8 + $0x28] sm:$0xff] }
 0x3d1   :  { %v2370_v9 = vmul.f32 %v2364_v25, %v3661_v14  ;;  %v2594_v25 = vld [vmem:[%s3825_s9 + $0x28] sm:$0xff] }
 0x3d3   :  { %v2376_v12 = vadd.f32 %v2370_v9, %v2351_v51  ;;  %v2329_v44 = vpop.f32.mrf.mxu3  ;;  %v2269_v34 = vpop.f32.mrf.mxu2  ;;  %v2440_v9 = vld [vmem:[%s3824_s8 + $0x38] sm:$0xff] }
 0x3d4   :  { %v2345_v29 = vadd.f32 %v2329_v44, %v2279_v5  ;;  %v2281_v63 = vadd.f32 %v2269_v34, %v2210_v49  ;;  %v2592_v5 = vld [vmem:[%s3825_s9 + $0x18] sm:$0xff]  ;;  %v2441_v44 = vld [vmem:[%s3824_s8 + $0x40] sm:$0xff] }
 0x3d5   :  { %2414 = vmatmul.f32.vlgmr.msra.gmra.mxu0 %v2376_v12  ;;  %v2591_v12 = vld [vmem:[%s3825_s9 + $0x10] sm:$0xff]  ;;  %v3748_v34 = vld [vmem:[%s3817_s1 + $0x7] ss:$0 sm:$0xff] }
 0x3d6   :  { %vm2353_vm11 = vcmp.ge.f32.partialorder %v2345_v29, 0.0  ;;  %v2359_v11 = vmul.f32 0.2, %v2345_v29 }
 0x3d8   :  { %v2365_v30 = vsel %vm2353_vm11, %v2345_v29, %v2359_v11  ;;  %v2442_v29 = vld [vmem:[%s3824_s8 + $0x48] sm:$0xff]  ;;  %v2443_v11 = vld [vmem:[%s3824_s8 + $0x50] sm:$0x3] }
 0x3d9   :  { %v2371_v19 = vmul.f32 %v2365_v30, %v3661_v14  ;;  %v2589_v30 = vld [vmem:[%s3825_s9] sm:$0xff] }
 0x3db   :  { %v2332_v20 = vpop.f32.mrf.mxu3  ;;  %v2377_v22 = vadd.f32 %v2371_v19, %v2351_v51  ;;  %v2272_v59 = vpop.f32.mrf.mxu2  ;;  %v3743_v19 = vld [vmem:[%s3817_s1 + $0x6] ss:$0 sm:$0xff] }
 0x3dc   :  { %v2346_v50 = vadd.f32 %v2332_v20, %v2280_v39  ;;  %v2282_v18 = vadd.f32 %v2272_v59, %v2213_v38 }
 0x3dd   :  { %2417 = vmatmul.f32.gmra.mxu0 %v2377_v22 }
 0x3de   :  { %vm2354_vm12 = vcmp.ge.f32.partialorder %v2346_v50, 0.0  ;;  %v2360_v28 = vmul.f32 0.2, %v2346_v50 }
 0x3e0   :  { %v2366_v42 = vsel %vm2354_vm12, %v2346_v50, %v2360_v28 }
 0x3e1   :  { %v2372_v33 = vmul.f32 %v2366_v42, %v3661_v14 }
 0x3e3   :  { %v2335_v61 = vpop.f32.mrf.mxu3  ;;  %v2378_v31 = vadd.f32 %v2372_v33, %v2351_v51  ;;  %v2275_v58 = vpop.f32.mrf.mxu2 }
 0x3e4   :  { %v2347_v35 = vadd.f32 %v2335_v61, %v2281_v63  ;;  %v2283_v37 = vadd.f32 %v2275_v58, %v2216_v62 }
 0x3e5   :  { %2420 = vmatmul.f32.gmra.mxu0 %v2378_v31 }
 0x3e6   :  { %vm2355_vm13 = vcmp.ge.f32.partialorder %v2347_v35, 0.0  ;;  %v2361_v0 = vmul.f32 0.2, %v2347_v35 }
 0x3e8   :  { %v2367_v36 = vsel %vm2355_vm13, %v2347_v35, %v2361_v0 }
 0x3e9   :  { %v2373_v40 = vmul.f32 %v2367_v36, %v3661_v14 }
 0x3eb   :  { %v2338_v52 = vpop.f32.mrf.mxu3  ;;  %v2379_v54 = vadd.f32 %v2373_v40, %v2351_v51 }
 0x3ec   :  { %v2348_v55 = vadd.f32 %v2338_v52, %v2282_v18 }
 0x3ed   :  { %2423 = vmatmul.f32.gmra.mxu0 %v2379_v54 }
 0x3ee   :  { %vm2356_vm14 = vcmp.ge.f32.partialorder %v2348_v55, 0.0  ;;  %v2362_v10 = vmul.f32 0.2, %v2348_v55 }
 0x3f0   :  { %v2368_v48 = vsel %vm2356_vm14, %v2348_v55, %v2362_v10 }
 0x3f1   :  { %v2374_v1 = vmul.f32 %v2368_v48, %v3661_v14 }
 0x3f3   :  { %v2341_v45 = vpop.f32.mrf.mxu3  ;;  %v2380_v13 = vadd.f32 %v2374_v1, %v2351_v51 }
 0x3f4   :  { %v2349_v41 = vadd.f32 %v2341_v45, %v2283_v37 }
 0x3f5   :  { %2426 = vmatmul.f32.gmra.mxu0 %v2380_v13 }
 0x3f6   :  { %vm2357_vm15 = vcmp.ge.f32.partialorder %v2349_v41, 0.0  ;;  %v2363_v47 = vmul.f32 0.2, %v2349_v41 }
 0x3f8   :  { %v2369_v3 = vsel %vm2357_vm15, %v2349_v41, %v2363_v47 }
 0x3f9   :  { %v2375_v32 = vmul.f32 %v2369_v3, %v3661_v14  ;;  %v2437_v14 = vld [vmem:[%s3824_s8 + $0x20] sm:$0xff] }
 0x3fb   :  { %v2381_v4 = vadd.f32 %v2375_v32, %v2351_v51  ;;  %v2595_v51 = vld [vmem:[%s3825_s9 + $0x30] sm:$0xff] }
 0x3fc   :  { %2640 = vmatpush.msra.mxu2 %v2595_v51 }
 0x3fd   :  { %2429 = vmatmul.f32.gmra.mxu0 %v2381_v4 }
 0x3fe   :  { %2641 = vmatpush.msra.mxu2 %v2594_v25 }
 0x400   :  { %2642 = vmatpush.msra.mxu2 %v2593_v56 }
 0x402   :  { %2643 = vmatpush.msra.mxu2 %v2592_v5 }
 0x404   :  { %2644 = vmatpush.msra.mxu2 %v2591_v12 }
 0x406   :  { %2645 = vmatpush.msra.mxu2 %v2590_v46 }
 0x408   :  { %2646 = vmatpush.msra.mxu2 %v2589_v30 }
 0x452   :  { %v2415_v24 = vpop.f32.mrf.mxu0 }
 0x45a   :  { %v2418_v60 = vpop.f32.mrf.mxu0 }
 0x462   :  { %v2421_v23 = vpop.f32.mrf.mxu0 }
 0x46a   :  { %v2424_v27 = vpop.f32.mrf.mxu0 }
 0x472   :  { %v2427_v16 = vpop.f32.mrf.mxu0 }
 0x47a   :  { %v2430_v8 = vpop.f32.mrf.mxu0 }
 0x47b   :  { %2863 = vmatpush.msk.msrb.mxu1 %vm2478_vm0, %v2430_v8 }
 0x47d   :  { %2493 = vmatpush.msrb.mxu1 %v2427_v16 }
 0x47f   :  { %2494 = vmatpush.msrb.mxu1 %v2424_v27 }
 0x481   :  { %2495 = vmatpush.msrb.mxu1 %v2421_v23 }
 0x483   :  { %2496 = vmatpush.msrb.mxu1 %v2418_v60 }
 0x485   :  { %2497 = vmatpush.msrb.mxu1 %v2415_v24 }
 0x486   :  { %2864 = vmatmul.msk.f32.vlgmr.msrb.gmra.mxu1 %vm2444_vm1, %v2433_v57 }
 0x48e   :  { %2865 = vmatmul.msk.f32.gmra.mxu1 %vm2444_vm1, %v2434_v21 }
 0x496   :  { %2866 = vmatmul.msk.f32.gmra.mxu1 %vm2444_vm1, %v2435_v15 }
 0x49e   :  { %2867 = vmatmul.msk.f32.gmra.mxu1 %vm2444_vm1, %v2436_v6 }
 0x4a6   :  { %2868 = vmatmul.msk.f32.gmra.mxu1 %vm2444_vm1, %v2437_v14 }
 0x4ae   :  { %2869 = vmatmul.msk.f32.gmra.mxu1 %vm2444_vm1, %v2438_v7 }
 0x4b6   :  { %2870 = vmatmul.msk.f32.gmra.mxu1 %vm2444_vm1, %v2439_v26 }
 0x4be   :  { %2871 = vmatmul.msk.f32.gmra.mxu1 %vm2444_vm1, %v2440_v9 }
 0x4c6   :  { %2872 = vmatmul.msk.f32.gmra.mxu1 %vm2444_vm1, %v2441_v44 }
 0x4ce   :  { %2873 = vmatmul.msk.f32.gmra.mxu1 %vm2444_vm1, %v2442_v29 }
 0x4d6   :  { %2874 = vmatmul.msk.f32.gmra.mxu1 %vm2444_vm1, %v2443_v11 }
 0x503   :  { %v2499_v17 = vpop.f32.mrf.mxu1 }
 0x504   :  { %vm2534_vm2 = vcmp.ge.f32.partialorder %v2499_v17, 0.0  ;;  %v2545_v39 = vmul.f32 0.2, %v2499_v17 }
 0x506   :  { %v2556_v20 = vsel %vm2534_vm2, %v2499_v17, %v2545_v39 }
 0x507   :  { %v2567_v22 = vmul.f32 %v2556_v20, %v3743_v19 }
 0x509   :  { %v2578_v50 = vadd.f32 %v2567_v22, %v3748_v34 }
 0x50b   :  { %v2502_v28 = vpop.f32.mrf.mxu1  ;;  %2875 = vmatmul.msk.f32.vlgmr.msra.gmra.mxu2 %vm2597_vm3, %v2578_v50 }
 0x50c   :  { %vm2535_vm4 = vcmp.ge.f32.partialorder %v2502_v28, 0.0  ;;  %v2546_v49 = vmul.f32 0.2, %v2502_v28 }
 0x50e   :  { %v2557_v42 = vsel %vm2535_vm4, %v2502_v28, %v2546_v49 }
 0x50f   :  { %v2568_v33 = vmul.f32 %v2557_v42, %v3743_v19 }
 0x511   :  { %v2579_v63 = vadd.f32 %v2568_v33, %v3748_v34 }
 0x513   :  { %v2505_v53 = vpop.f32.mrf.mxu1  ;;  %2876 = vmatmul.msk.f32.gmra.mxu2 %vm2597_vm3, %v2579_v63 }
 0x514   :  { %vm2536_vm5 = vcmp.ge.f32.partialorder %v2505_v53, 0.0  ;;  %v2547_v61 = vmul.f32 0.2, %v2505_v53 }
 0x516   :  { %v2558_v31 = vsel %vm2536_vm5, %v2505_v53, %v2547_v61 }
 0x517   :  { %v2569_v35 = vmul.f32 %v2558_v31, %v3743_v19 }
 0x519   :  { %v2580_v59 = vadd.f32 %v2569_v35, %v3748_v34 }
 0x51b   :  { %v2508_v0 = vpop.f32.mrf.mxu1  ;;  %2877 = vmatmul.msk.f32.gmra.mxu2 %vm2597_vm3, %v2580_v59 }
 0x51c   :  { %vm2537_vm6 = vcmp.ge.f32.partialorder %v2508_v0, 0.0  ;;  %v2548_v38 = vmul.f32 0.2, %v2508_v0 }
 0x51e   :  { %v2559_v36 = vsel %vm2537_vm6, %v2508_v0, %v2548_v38 }
 0x51f   :  { %v2570_v40 = vmul.f32 %v2559_v36, %v3743_v19 }
 0x521   :  { %v2581_v18 = vadd.f32 %v2570_v40, %v3748_v34 }
 0x523   :  { %v2511_v52 = vpop.f32.mrf.mxu1  ;;  %2878 = vmatmul.msk.f32.gmra.mxu2 %vm2597_vm3, %v2581_v18 }
 0x524   :  { %vm2538_vm7 = vcmp.ge.f32.partialorder %v2511_v52, 0.0  ;;  %v2549_v54 = vmul.f32 0.2, %v2511_v52 }
 0x526   :  { %v2560_v55 = vsel %vm2538_vm7, %v2511_v52, %v2549_v54 }
 0x527   :  { %v2571_v43 = vmul.f32 %v2560_v55, %v3743_v19 }
 0x529   :  { %v2582_v10 = vadd.f32 %v2571_v43, %v3748_v34 }
 0x52b   :  { %v2514_v58 = vpop.f32.mrf.mxu1  ;;  %2879 = vmatmul.msk.f32.gmra.mxu2 %vm2597_vm3, %v2582_v10 }
 0x52c   :  { %vm2539_vm8 = vcmp.ge.f32.partialorder %v2514_v58, 0.0  ;;  %v2550_v62 = vmul.f32 0.2, %v2514_v58 }
 0x52e   :  { %v2561_v48 = vsel %vm2539_vm8, %v2514_v58, %v2550_v62 }
 0x52f   :  { %v2572_v1 = vmul.f32 %v2561_v48, %v3743_v19 }
 0x531   :  { %v2583_v37 = vadd.f32 %v2572_v1, %v3748_v34 }
 0x533   :  { %v2517_v45 = vpop.f32.mrf.mxu1  ;;  %2880 = vmatmul.msk.f32.gmra.mxu2 %vm2597_vm3, %v2583_v37 }
 0x534   :  { %vm2540_vm9 = vcmp.ge.f32.partialorder %v2517_v45, 0.0  ;;  %v2551_v13 = vmul.f32 0.2, %v2517_v45 }
 0x536   :  { %v2562_v41 = vsel %vm2540_vm9, %v2517_v45, %v2551_v13 }
 0x537   :  { %v2573_v47 = vmul.f32 %v2562_v41, %v3743_v19 }
 0x539   :  { %v2584_v3 = vadd.f32 %v2573_v47, %v3748_v34 }
 0x53b   :  { %v2520_v32 = vpop.f32.mrf.mxu1  ;;  %2881 = vmatmul.msk.f32.gmra.mxu2 %vm2597_vm3, %v2584_v3 }
 0x53c   :  { %vm2541_vm10 = vcmp.ge.f32.partialorder %v2520_v32, 0.0  ;;  %v2552_v4 = vmul.f32 0.2, %v2520_v32 }
 0x53e   :  { %v2563_v24 = vsel %vm2541_vm10, %v2520_v32, %v2552_v4 }
 0x53f   :  { %v2574_v60 = vmul.f32 %v2563_v24, %v3743_v19 }
 0x541   :  { %v2585_v23 = vadd.f32 %v2574_v60, %v3748_v34 }
 0x543   :  { %v2523_v27 = vpop.f32.mrf.mxu1  ;;  %2882 = vmatmul.msk.f32.gmra.mxu2 %vm2597_vm3, %v2585_v23 }
 0x544   :  { %vm2542_vm11 = vcmp.ge.f32.partialorder %v2523_v27, 0.0  ;;  %v2553_v16 = vmul.f32 0.2, %v2523_v27 }
 0x546   :  { %v2564_v8 = vsel %vm2542_vm11, %v2523_v27, %v2553_v16 }
 0x547   :  { %v2575_v57 = vmul.f32 %v2564_v8, %v3743_v19 }
 0x549   :  { %v2586_v21 = vadd.f32 %v2575_v57, %v3748_v34 }
 0x54b   :  { %v2526_v15 = vpop.f32.mrf.mxu1  ;;  %2883 = vmatmul.msk.f32.gmra.mxu2 %vm2597_vm3, %v2586_v21 }
 0x54c   :  { %vm2543_vm12 = vcmp.ge.f32.partialorder %v2526_v15, 0.0  ;;  %v2554_v6 = vmul.f32 0.2, %v2526_v15 }
 0x54e   :  { %v2565_v14 = vsel %vm2543_vm12, %v2526_v15, %v2554_v6 }
 0x54f   :  { %v2576_v7 = vmul.f32 %v2565_v14, %v3743_v19 }
 0x551   :  { %v2587_v26 = vadd.f32 %v2576_v7, %v3748_v34 }
 0x553   :  { %v2529_v2 = vpop.f32.mrf.mxu1  ;;  %2884 = vmatmul.msk.f32.gmra.mxu2 %vm2597_vm3, %v2587_v26 }
 0x554   :  { %vm2544_vm13 = vcmp.ge.f32.partialorder %v2529_v2, 0.0  ;;  %v2555_v51 = vmul.f32 0.2, %v2529_v2 }
 0x556   :  { %v2566_v25 = vsel %vm2544_vm13, %v2529_v2, %v2555_v51 }
 0x557   :  { %v2577_v56 = vmul.f32 %v2566_v25, %v3743_v19 }
 0x559   :  { %v2588_v9 = vadd.f32 %v2577_v56, %v3748_v34 }
 0x55b   :  { %2885 = vmatmul.msk.f32.gmra.mxu2 %vm2597_vm3, %v2588_v9 }
 0x58e   :  { %v2648_v5 = vpop.f32.mrf.mxu2 }
 0x58f   :  { %vm2681_vm14 = vcmp.ge.f32.partialorder %v2648_v5, 0.0  ;;  %v2692_v12 = vmul.f32 0.2, %v2648_v5 }
 0x591   :  { %v2703_v44 = vsel %vm2681_vm14, %v2648_v5, %v2692_v12 }
 0x592   :  { %2897 = vtanh.f32 %v2703_v44 }
 0x596   :  { %v2651_v29 = vpop.f32.mrf.mxu2 }
 0x597   :  { %vm2682_vm15 = vcmp.ge.f32.partialorder %v2651_v29, 0.0  ;;  %v2693_v11 = vmul.f32 0.2, %v2651_v29 }
 0x598   :  { %v2898_v46 = vpop.eup %2897 }
 0x599   :  { %2725 = vst [vmem:[%s3826_s10] sm:$0xff] %v2898_v46  ;;  %v2704_v30 = vsel %vm2682_vm15, %v2651_v29, %v2693_v11 }
 0x59a   :  { %2899 = vtanh.f32 %v2704_v30 }
 0x59e   :  { %v2654_v17 = vpop.f32.mrf.mxu2 }
 0x59f   :  { %vm2683_vm0 = vcmp.ge.f32.partialorder %v2654_v17, 0.0  ;;  %v2694_v19 = vmul.f32 0.2, %v2654_v17 }
 0x5a0   :  { %v2900_v39 = vpop.eup %2899 }
 0x5a1   :  { %2726 = vst [vmem:[%s3826_s10 + $0x8] sm:$0xff] %v2900_v39  ;;  %v2705_v34 = vsel %vm2683_vm0, %v2654_v17, %v2694_v19 }
 0x5a2   :  { %2901 = vtanh.f32 %v2705_v34 }
 0x5a6   :  { %v2657_v20 = vpop.f32.mrf.mxu2 }
 0x5a7   :  { %vm2684_vm1 = vcmp.ge.f32.partialorder %v2657_v20, 0.0  ;;  %v2695_v22 = vmul.f32 0.2, %v2657_v20 }
 0x5a8   :  { %v2902_v50 = vpop.eup %2901 }
 0x5a9   :  { %2727 = vst [vmem:[%s3826_s10 + $0x10] sm:$0xff] %v2902_v50  ;;  %v2706_v28 = vsel %vm2684_vm1, %v2657_v20, %v2695_v22 }
 0x5aa   :  { %2903 = vtanh.f32 %v2706_v28 }
 0x5ae   :  { %v2660_v49 = vpop.f32.mrf.mxu2 }
 0x5af   :  { %vm2685_vm2 = vcmp.ge.f32.partialorder %v2660_v49, 0.0  ;;  %v2696_v42 = vmul.f32 0.2, %v2660_v49 }
 0x5b0   :  { %v2904_v33 = vpop.eup %2903 }
 0x5b1   :  { %2728 = vst [vmem:[%s3826_s10 + $0x18] sm:$0xff] %v2904_v33  ;;  %v2707_v63 = vsel %vm2685_vm2, %v2660_v49, %v2696_v42 }
 0x5b2   :  { %2905 = vtanh.f32 %v2707_v63 }
 0x5b6   :  { %v2663_v53 = vpop.f32.mrf.mxu2 }
 0x5b7   :  { %vm2686_vm3 = vcmp.ge.f32.partialorder %v2663_v53, 0.0  ;;  %v2697_v61 = vmul.f32 0.2, %v2663_v53 }
 0x5b8   :  { %v2906_v31 = vpop.eup %2905 }
 0x5b9   :  { %2729 = vst [vmem:[%s3826_s10 + $0x20] sm:$0xff] %v2906_v31  ;;  %v2708_v35 = vsel %vm2686_vm3, %v2663_v53, %v2697_v61 }
 0x5ba   :  { %2907 = vtanh.f32 %v2708_v35 }
 0x5be   :  { %v2666_v59 = vpop.f32.mrf.mxu2 }
 0x5bf   :  { %vm2687_vm4 = vcmp.ge.f32.partialorder %v2666_v59, 0.0  ;;  %v2698_v0 = vmul.f32 0.2, %v2666_v59 }
 0x5c0   :  { %v2908_v38 = vpop.eup %2907 }
 0x5c1   :  { %2730 = vst [vmem:[%s3826_s10 + $0x28] sm:$0xff] %v2908_v38  ;;  %v2709_v36 = vsel %vm2687_vm4, %v2666_v59, %v2698_v0 }
 0x5c2   :  { %2909 = vtanh.f32 %v2709_v36 }
 0x5c6   :  { %v2669_v40 = vpop.f32.mrf.mxu2 }
 0x5c7   :  { %vm2688_vm5 = vcmp.ge.f32.partialorder %v2669_v40, 0.0  ;;  %v2699_v18 = vmul.f32 0.2, %v2669_v40 }
 0x5c8   :  { %v2910_v52 = vpop.eup %2909 }
 0x5c9   :  { %2731 = vst [vmem:[%s3826_s10 + $0x30] sm:$0xff] %v2910_v52  ;;  %v2710_v54 = vsel %vm2688_vm5, %v2669_v40, %v2699_v18 }
 0x5ca   :  { %2911 = vtanh.f32 %v2710_v54 }
 0x5ce   :  { %v2672_v55 = vpop.f32.mrf.mxu2 }
 0x5cf   :  { %vm2689_vm6 = vcmp.ge.f32.partialorder %v2672_v55, 0.0  ;;  %v2700_v43 = vmul.f32 0.2, %v2672_v55 }
 0x5d0   :  { %v2912_v10 = vpop.eup %2911 }
 0x5d1   :  { %2732 = vst [vmem:[%s3826_s10 + $0x38] sm:$0xff] %v2912_v10  ;;  %v2711_v58 = vsel %vm2689_vm6, %v2672_v55, %v2700_v43 }
 0x5d2   :  { %2913 = vtanh.f32 %v2711_v58 }
 0x5d6   :  { %v2675_v62 = vpop.f32.mrf.mxu2 }
 0x5d7   :  { %vm2690_vm7 = vcmp.ge.f32.partialorder %v2675_v62, 0.0  ;;  %v2701_v48 = vmul.f32 0.2, %v2675_v62 }
 0x5d8   :  { %v2914_v1 = vpop.eup %2913 }
 0x5d9   :  { %2733 = vst [vmem:[%s3826_s10 + $0x40] sm:$0xff] %v2914_v1  ;;  %v2712_v37 = vsel %vm2690_vm7, %v2675_v62, %v2701_v48 }
 0x5da   :  { %2915 = vtanh.f32 %v2712_v37 }
 0x5de   :  { %v2678_v45 = vpop.f32.mrf.mxu2 }
 0x5df   :  { %vm2691_vm8 = vcmp.ge.f32.partialorder %v2678_v45, 0.0  ;;  %v2702_v13 = vmul.f32 0.2, %v2678_v45 }
 0x5e0   :  { %v2916_v41 = vpop.eup %2915 }
 0x5e1   :  { %2734 = vst [vmem:[%s3826_s10 + $0x48] sm:$0xff] %v2916_v41  ;;  %v2713_v47 = vsel %vm2691_vm8, %v2678_v45, %v2702_v13 }
 0x5e2   :  { %2917 = vtanh.f32 %v2713_v47 }
 0x5e8   :  { %v2918_v3 = vpop.eup %2917 }
 0x5e9   :  { %2735 = vst [vmem:[%s3826_s10 + $0x50] sm:$0x3] %v2918_v3 }
 0x5ea   :  { %2740 = vsyncpa [#allocation3], 1 }
 0x5eb   :  { %2741 = vsyncpa [#allocation5], 1 }

</bundles_post_ra>
